<compile_context>
chip_gen: v7x
topology: tpu7x:2x2x1
jax: 0.10.0
libtpu: 0.0.40
codegen_flags: <defaults>
</compile_context>

<pallas_src>
import functools
import math

import jax
import jax.numpy as jnp
import numpy as np
from jax.experimental import pallas as pl
from jax.experimental.pallas import tpu as pltpu


def _mha_kernel(q_ref, k_ref, v_ref,
                wq_ref, wk_ref, wv_ref, wfc_ref,
                gamma_ref, beta_ref,
                out_ref,
                kp_ref, vp_ref,
                *, n_head, d_k, d_v, eps):
    """One (batch, q-tile) grid step.  The q-tile axis is sequential
    ("arbitrary"), so the per-batch projected-K/V scratch carried across it is
    valid."""
    H, dk, dv = n_head, d_k, d_v
    bf16, f32 = jnp.bfloat16, jnp.float32

    # ---- Per-batch K/V projection: computed once at q-tile 0, reused by all
    # q-tiles of this batch element from persistent VMEM scratch. ------------
    @pl.when(pl.program_id(1) == 0)
    def _project_kv():
        k = k_ref[0]                                            # [Lk, D] bf16
        v = v_ref[0]                                            # [Lv, D] bf16
        kp_ref[...] = jnp.dot(k, wk_ref[...],
                              preferred_element_type=f32).astype(bf16)
        vp_ref[...] = jnp.dot(v, wv_ref[...],
                              preferred_element_type=f32).astype(bf16)

    # ---- Q projection for this tile (1/sqrt(d_k) already folded into wq). ---
    q = q_ref[0]                                                # [TQ, D] f32
    residual = q                                                # exact f32 residual
    qp = jnp.dot(q.astype(bf16), wq_ref[...],
                 preferred_element_type=f32).astype(bf16)       # [TQ, H*dk]

    # ---- Per-head attention on lane-sliced operands (no [H, L, d] relayout).
    pv_heads = []
    for h in range(H):                                          # H is small; unrolled
        q_h = qp[:, h * dk:(h + 1) * dk]                        # [TQ, dk] bf16
        k_h = kp_ref[:, h * dk:(h + 1) * dk]                    # [Lk, dk] bf16
        v_h = vp_ref[:, h * dv:(h + 1) * dv]                    # [Lv, dv] bf16
        # scores = q_h @ k_h.T  (trans_b dot_general -- no explicit transpose)
        s = jax.lax.dot_general(q_h, k_h, (((1,), (1,)), ((), ())),
                                preferred_element_type=f32)     # [TQ, Lk] f32
        # Numerically-stable softmax; denominator via approx reciprocal (EUP).
        # NOTE: approx=True -> rows sum to 1 only to ~1e-3 (eval-quality).
        s = s - jnp.max(s, axis=-1, keepdims=True)
        p = jnp.exp(s)
        p = p * pl.reciprocal(jnp.sum(p, axis=-1, keepdims=True), approx=True)
        pv_heads.append(jnp.dot(p.astype(bf16), v_h,
                                preferred_element_type=f32))    # [TQ, dv] f32

    # ---- "Concat heads" = cheap lane concat; output projection is one
    # full-depth (K = H*dv) MXU matmul against the original 2-D fc weight. ---
    pv = jnp.concatenate(pv_heads, axis=-1)                     # [TQ, H*dv] f32
    o = jnp.dot(pv.astype(bf16), wfc_ref[...],
                preferred_element_type=f32)                     # [TQ, D] f32
    o = o + residual                       # dropout = identity (eval mode)

    # ---- LayerNorm(eps) in f32. ---------------------------------------------
    mean = jnp.mean(o, axis=-1, keepdims=True)
    var = jnp.mean((o - mean) ** 2, axis=-1, keepdims=True)
    norm = (o - mean) * jax.lax.rsqrt(var + eps)
    out_ref[0] = (norm * gamma_ref[...] + beta_ref[...]).astype(out_ref.dtype)


def prepare_mha_params(wq, wk, wv, wfc, gamma, beta, *, d_k):
    """One-time weight preparation (keep OUT of the per-call path):
    bf16 MXU-operand casts + the softmax 1/sqrt(d_k) scale folded into wq."""
    scale = 1.0 / math.sqrt(d_k)
    return dict(
        wq=(wq * scale).astype(jnp.bfloat16),   # scale folded in -> free at runtime
        wk=wk.astype(jnp.bfloat16),
        wv=wv.astype(jnp.bfloat16),
        wfc=wfc.astype(jnp.bfloat16),
        gamma=gamma.astype(jnp.float32),
        beta=beta.astype(jnp.float32),
    )


def _vmem_limit_bytes(TQ, Lk, Lv, D, n_head, d_k, d_v):
    """Scoped-VMEM cap derived from actual block residency: double-buffered
    streamed blocks + resident weights + persistent projected-K/V scratch,
    with headroom for in-kernel f32 temporaries (scores, PV, LN stats) and
    compiler scratch.  Clamped to v7x's 64 MiB/TC."""
    BF, F = 2, 4
    stream = 2 * (TQ * D * F            # q tile (f32)
                  + Lk * D * BF         # K block (bf16)
                  + Lv * D * BF         # V block (bf16)
                  + TQ * D * F)         # out tile (f32)
    weights = 2 * (2 * D * n_head * d_k * BF     # wq, wk
                   + D * n_head * d_v * BF       # wv
                   + n_head * d_v * D * BF       # wfc
                   + 2 * D * F)                  # gamma, beta
    scratch = Lk * n_head * d_k * BF + Lv * n_head * d_v * BF
    derived = stream + weights + scratch
    return int(min(max(4 * derived + (4 << 20), 32 << 20), 64 << 20))


def multi_head_attention(q, k, v, params, *, n_head, d_k, d_v,
                         eps=1e-6, block_q=128):
    """q,k,v: [B, L, d_model]; weights stored as [in, out] (nn.Linear.weight.T).

    Implements the eval-mode / no-mask / return_attns=False forward path."""
    B, Lq, D = q.shape
    _, Lk, _ = k.shape
    _, Lv, _ = v.shape
    assert Lk == Lv, "softmax over Lk is applied to V of length Lv"

    TQ = min(block_q, Lq)
    assert Lq % TQ == 0, "Lq must be divisible by the q-tile size"

    # K/V are pure MXU operands in the kernel -> stream them as bf16 (halves
    # HBM DMA bytes and resident K/V VMEM, no numerics change).  Q stays f32
    # so the residual add matches the module's f32 residual exactly.
    k_b = k.astype(jnp.bfloat16)
    v_b = v.astype(jnp.bfloat16)

    kernel = functools.partial(_mha_kernel, n_head=n_head, d_k=d_k, d_v=d_v,
                               eps=eps)

    grid = (B, Lq // TQ)
    return pl.pallas_call(
        kernel,
        out_shape=jax.ShapeDtypeStruct((B, Lq, D), q.dtype),
        grid_spec=pltpu.PrefetchScalarGridSpec(
            num_scalar_prefetch=0,
            grid=grid,
            in_specs=[
                pl.BlockSpec((1, TQ, D), lambda b, i: (b, i, 0)),    # q tile (f32)
                # Full K/V per batch element; constant block index within a
                # batch -> fetched once per batch, not once per q-tile.
                pl.BlockSpec((1, Lk, D), lambda b, i: (b, 0, 0)),    # K (bf16)
                pl.BlockSpec((1, Lv, D), lambda b, i: (b, 0, 0)),    # V (bf16)
                # Weights: constant index maps -> fetched once, kept resident.
                pl.BlockSpec((D, n_head * d_k), lambda b, i: (0, 0)),   # wq (scaled)
                pl.BlockSpec((D, n_head * d_k), lambda b, i: (0, 0)),   # wk
                pl.BlockSpec((D, n_head * d_v), lambda b, i: (0, 0)),   # wv
                pl.BlockSpec((n_head * d_v, D), lambda b, i: (0, 0)),   # wfc (2-D)
                pl.BlockSpec((1, D), lambda b, i: (0, 0)),              # gamma
                pl.BlockSpec((1, D), lambda b, i: (0, 0)),              # beta
            ],
            out_specs=pl.BlockSpec((1, TQ, D), lambda b, i: (b, i, 0)),
            scratch_shapes=[
                # Persistent per-batch projected K/V (bf16), reused by every
                # q-tile of the current batch element.
                pltpu.VMEM((Lk, n_head * d_k), jnp.bfloat16),
                pltpu.VMEM((Lv, n_head * d_v), jnp.bfloat16),
            ],
        ),
        compiler_params=pltpu.CompilerParams(
            # Batch axis shards across the two TensorCores on v7x; the q-tile
            # axis must run sequentially on one core so the carried projected
            # K/V scratch stays valid.
            dimension_semantics=("parallel", "arbitrary"),
            vmem_limit_bytes=_vmem_limit_bytes(TQ, Lk, Lv, D,
                                               n_head, d_k, d_v),
        ),
    )(q, k_b, v_b,
      params["wq"], params["wk"], params["wv"], params["wfc"],
      params["gamma"], params["beta"])


def _reference(q, k, v, wq, wk, wv, wfc, gamma, beta, *, n_head, d_k, d_v,
               eps=1e-6):
    """Pure-JAX model of the module's eval/no-mask forward, using the same
    bf16-MXU-operand / f32-accumulate casts as the kernel."""
    bf, f32 = jnp.bfloat16, jnp.float32
    B, Lq, D = q.shape
    _, Lk, _ = k.shape
    residual = q.astype(f32)
    qp = jnp.einsum('bqD,De->bqe', q.astype(bf), wq.astype(bf),
                    preferred_element_type=f32)
    kp = jnp.einsum('bkD,De->bke', k.astype(bf), wk.astype(bf),
                    preferred_element_type=f32)
    vp = jnp.einsum('bvD,De->bve', v.astype(bf), wv.astype(bf),
                    preferred_element_type=f32)
    qh = qp.reshape(B, Lq, n_head, d_k).transpose(0, 2, 1, 3).astype(bf)
    kh = kp.reshape(B, Lk, n_head, d_k).transpose(0, 2, 1, 3).astype(bf)
    vh = vp.reshape(B, Lk, n_head, d_v).transpose(0, 2, 1, 3).astype(bf)
    s = jnp.einsum('bhqd,bhkd->bhqk', qh, kh,
                   preferred_element_type=f32) / (d_k ** 0.5)
    p = jax.nn.softmax(s, axis=-1)
    o = jnp.einsum('bhqk,bhkd->bhqd', p.astype(bf), vh,
                   preferred_element_type=f32)
    o = o.transpose(0, 2, 1, 3).reshape(B, Lq, n_head * d_v)
    o = jnp.einsum('bqe,eD->bqD', o.astype(bf), wfc.astype(bf),
                   preferred_element_type=f32) + residual
    mean = jnp.mean(o, axis=-1, keepdims=True)
    var = jnp.mean((o - mean) ** 2, axis=-1, keepdims=True)
    return (o - mean) * jax.lax.rsqrt(var + eps) * gamma[0] + beta[0]


if __name__ == "__main__":
    # Small but lane-dense shapes (d_model = n_head*d_k = 128); Lq=256 with
    # block_q=128 gives 2 q-tiles per batch so the per-batch K/V-projection
    # hoist (pl.when at q-tile 0) is actually exercised.
    B, L, d_model = 2, 256, 128
    n_head, d_k, d_v = 4, 32, 32

    key = jax.random.PRNGKey(0)
    ks = jax.random.split(key, 9)
    q = jax.random.normal(ks[0], (B, L, d_model), jnp.float32)
    k = jax.random.normal(ks[1], (B, L, d_model), jnp.float32)
    v = jax.random.normal(ks[2], (B, L, d_model), jnp.float32)

    # Synthetic nn.Linear weights (stored transposed: [in, out]);
    # LayerNorm gamma/beta stored as [1, d_model] for 2-D VMEM tiles.
    wscale = 1.0 / np.sqrt(d_model)
    wq = jax.random.normal(ks[3], (d_model, n_head * d_k), jnp.float32) * wscale
    wk = jax.random.normal(ks[4], (d_model, n_head * d_k), jnp.float32) * wscale
    wv = jax.random.normal(ks[5], (d_model, n_head * d_v), jnp.float32) * wscale
    wfc = jax.random.normal(ks[6], (n_head * d_v, d_model), jnp.float32) * wscale
    gamma = 1.0 + 0.1 * jax.random.normal(ks[7], (1, d_model), jnp.float32)
    beta = 0.1 * jax.random.normal(ks[8], (1, d_model), jnp.float32)

    # One-time weight prep (bf16 casts + 1/sqrt(d_k) fold) outside the call.
    params = prepare_mha_params(wq, wk, wv, wfc, gamma, beta, d_k=d_k)

    out = multi_head_attention(q, k, v, params,
                               n_head=n_head, d_k=d_k, d_v=d_v, block_q=128)
    out = jax.block_until_ready(out)

    ref = _reference(q, k, v, wq, wk, wv, wfc, gamma, beta,
                     n_head=n_head, d_k=d_k, d_v=d_v)
    # Tolerance absorbs bf16 MXU operands and the approx (EUP) reciprocal used
    # for the softmax denominator; both paths accumulate in f32.
    np.testing.assert_allclose(np.asarray(out), np.asarray(ref),
                               rtol=2e-2, atol=2e-2)
    print("KERNEL_OK")
</pallas_src>

<mosaic_0001>
module attributes {stable_mosaic.version = 11 : i64} {
  func.func @_mha_kernel(%arg0: i32, %arg1: i32, %arg2: memref<1x128x128xf32, #tpu.memory_space<vmem>>, %arg3: memref<1x256x128xbf16, #tpu.memory_space<vmem>>, %arg4: memref<1x256x128xbf16, #tpu.memory_space<vmem>>, %arg5: memref<128x128xbf16, #tpu.memory_space<vmem>>, %arg6: memref<128x128xbf16, #tpu.memory_space<vmem>>, %arg7: memref<128x128xbf16, #tpu.memory_space<vmem>>, %arg8: memref<128x128xbf16, #tpu.memory_space<vmem>>, %arg9: memref<1x128xf32, #tpu.memory_space<vmem>>, %arg10: memref<1x128xf32, #tpu.memory_space<vmem>>, %arg11: memref<1x128x128xf32, #tpu.memory_space<vmem>>, %arg12: memref<256x128xbf16, #tpu.memory_space<vmem>>, %arg13: memref<256x128xbf16, #tpu.memory_space<vmem>>) attributes {dimension_semantics = [#tpu.dimension_semantics<parallel>, #tpu.dimension_semantics<arbitrary>], iteration_bounds = array<i64: 2, 2>, scalar_prefetch = 0 : i64, scratch_operands = 2 : i64, tpu.core_type = #tpu.core_type<tc>, window_params = [{transform_indices = @transform_0, window_bounds = array<i64: 1, 128, 128>}, {transform_indices = @transform_1, window_bounds = array<i64: 1, 256, 128>}, {transform_indices = @transform_2, window_bounds = array<i64: 1, 256, 128>}, {pipeline_mode = #tpu.pipeline_mode<synchronous>, transform_indices = @transform_3, window_bounds = array<i64: 128, 128>}, {pipeline_mode = #tpu.pipeline_mode<synchronous>, transform_indices = @transform_4, window_bounds = array<i64: 128, 128>}, {pipeline_mode = #tpu.pipeline_mode<synchronous>, transform_indices = @transform_5, window_bounds = array<i64: 128, 128>}, {pipeline_mode = #tpu.pipeline_mode<synchronous>, transform_indices = @transform_6, window_bounds = array<i64: 128, 128>}, {pipeline_mode = #tpu.pipeline_mode<synchronous>, transform_indices = @transform_7, window_bounds = array<i64: 1, 128>}, {pipeline_mode = #tpu.pipeline_mode<synchronous>, transform_indices = @transform_8, window_bounds = array<i64: 1, 128>}, {transform_indices = @transform_9, window_bounds = array<i64: 1, 128, 128>}]} {
    %c0_i32 = arith.constant 0 : i32
    %0 = arith.cmpi eq, %arg1, %c0_i32 : i32
    %1 = arith.extui %0 : i1 to i32
    %c0_i32_0 = arith.constant 0 : i32
    %2 = arith.cmpi ne, %1, %c0_i32_0 : i32
    scf.if %2 {
      %c0_49 = arith.constant 0 : index
      %c0_50 = arith.constant 0 : index
      %c0_51 = arith.constant 0 : index
      %105 = vector.load %arg3[%c0_49, %c0_50, %c0_51] : memref<1x256x128xbf16, #tpu.memory_space<vmem>>, vector<1x256x128xbf16>
      %106 = vector.shape_cast %105 : vector<1x256x128xbf16> to vector<256x128xbf16>
      %c0_52 = arith.constant 0 : index
      %c0_53 = arith.constant 0 : index
      %c0_54 = arith.constant 0 : index
      %107 = vector.load %arg4[%c0_52, %c0_53, %c0_54] : memref<1x256x128xbf16, #tpu.memory_space<vmem>>, vector<1x256x128xbf16>
      %108 = vector.shape_cast %107 : vector<1x256x128xbf16> to vector<256x128xbf16>
      %c0_55 = arith.constant 0 : index
      %c0_56 = arith.constant 0 : index
      %109 = vector.load %arg6[%c0_55, %c0_56] : memref<128x128xbf16, #tpu.memory_space<vmem>>, vector<128x128xbf16>
      %cst_57 = arith.constant dense<0.000000e+00> : vector<256x128xf32>
      %110 = tpu.matmul %106, %109, %cst_57 {dimension_numbers = #tpu.dot_dimension_numbers<[1], [0], [0], [1], [0, 0, 1, 1], [], []>} : vector<256x128xbf16>, vector<128x128xbf16>, vector<256x128xf32> -> vector<256x128xf32>
      %111 = arith.truncf %110 : vector<256x128xf32> to vector<256x128xbf16>
      %c0_58 = arith.constant 0 : index
      %c0_59 = arith.constant 0 : index
      %112 = vector.load %arg12[%c0_58, %c0_59] : memref<256x128xbf16, #tpu.memory_space<vmem>>, vector<256x128xbf16>
      tpu.vector_store %arg12[%c0_58, %c0_59], %111 {strides = array<i32>} : memref<256x128xbf16, #tpu.memory_space<vmem>>, vector<256x128xbf16>,
      %c0_60 = arith.constant 0 : index
      %c0_61 = arith.constant 0 : index
      %113 = vector.load %arg7[%c0_60, %c0_61] : memref<128x128xbf16, #tpu.memory_space<vmem>>, vector<128x128xbf16>
      %cst_62 = arith.constant dense<0.000000e+00> : vector<256x128xf32>
      %114 = tpu.matmul %108, %113, %cst_62 {dimension_numbers = #tpu.dot_dimension_numbers<[1], [0], [0], [1], [0, 0, 1, 1], [], []>} : vector<256x128xbf16>, vector<128x128xbf16>, vector<256x128xf32> -> vector<256x128xf32>
      %115 = arith.truncf %114 : vector<256x128xf32> to vector<256x128xbf16>
      %c0_63 = arith.constant 0 : index
      %c0_64 = arith.constant 0 : index
      %116 = vector.load %arg13[%c0_63, %c0_64] : memref<256x128xbf16, #tpu.memory_space<vmem>>, vector<256x128xbf16>
      tpu.vector_store %arg13[%c0_63, %c0_64], %115 {strides = array<i32>} : memref<256x128xbf16, #tpu.memory_space<vmem>>, vector<256x128xbf16>,
    } else {
    }
    %c0 = arith.constant 0 : index
    %c0_1 = arith.constant 0 : index
    %c0_2 = arith.constant 0 : index
    %3 = vector.load %arg2[%c0, %c0_1, %c0_2] : memref<1x128x128xf32, #tpu.memory_space<vmem>>, vector<1x128x128xf32>
    %4 = vector.shape_cast %3 : vector<1x128x128xf32> to vector<128x128xf32>
    %5 = arith.truncf %4 : vector<128x128xf32> to vector<128x128xbf16>
    %c0_3 = arith.constant 0 : index
    %c0_4 = arith.constant 0 : index
    %6 = vector.load %arg5[%c0_3, %c0_4] : memref<128x128xbf16, #tpu.memory_space<vmem>>, vector<128x128xbf16>
    %cst = arith.constant dense<0.000000e+00> : vector<128x128xf32>
    %7 = tpu.matmul %5, %6, %cst {dimension_numbers = #tpu.dot_dimension_numbers<[1], [0], [0], [1], [0, 0, 1, 1], [], []>} : vector<128x128xbf16>, vector<128x128xbf16>, vector<128x128xf32> -> vector<128x128xf32>
    %8 = arith.truncf %7 : vector<128x128xf32> to vector<128x128xbf16>
    %9 = vector.extract_strided_slice %8 {offsets = [0, 0], sizes = [128, 32], strides = [1, 1]} : vector<128x128xbf16> to vector<128x32xbf16>
    %c0_5 = arith.constant 0 : index
    %c0_6 = arith.constant 0 : index
    %10 = vector.load %arg12[%c0_5, %c0_6] : memref<256x128xbf16, #tpu.memory_space<vmem>>, vector<256x32xbf16>
    %c0_7 = arith.constant 0 : index
    %c0_8 = arith.constant 0 : index
    %11 = vector.load %arg13[%c0_7, %c0_8] : memref<256x128xbf16, #tpu.memory_space<vmem>>, vector<256x32xbf16>
    %cst_9 = arith.constant dense<0.000000e+00> : vector<128x256xf32>
    %12 = tpu.matmul %9, %10, %cst_9 {dimension_numbers = #tpu.dot_dimension_numbers<[1], [1], [0], [0], [0, 0, 1, 0], [], []>} : vector<128x32xbf16>, vector<256x32xbf16>, vector<128x256xf32> -> vector<128x256xf32>
    %cst_10 = arith.constant dense<0xFF800000> : vector<128xf32>
    %13 = vector.multi_reduction <maximumf>, %12, %cst_10 [1] : vector<128x256xf32> to vector<128xf32>
    %14 = vector.shape_cast %13 : vector<128xf32> to vector<128x1xf32>
    %15 = vector.broadcast %14 : vector<128x1xf32> to vector<128x256xf32>
    %16 = arith.subf %12, %15 : vector<128x256xf32>
    %17 = math.exp %16 : vector<128x256xf32>
    %cst_11 = arith.constant dense<0.000000e+00> : vector<128xf32>
    %18 = vector.multi_reduction <add>, %17, %cst_11 [1] : vector<128x256xf32> to vector<128xf32>
    %19 = vector.shape_cast %18 : vector<128xf32> to vector<128x1xf32>
    %20 = tpu.reciprocal %19 {approx = true} : vector<128x1xf32> -> vector<128x1xf32>
    %21 = vector.broadcast %20 : vector<128x1xf32> to vector<128x256xf32>
    %22 = arith.mulf %17, %21 : vector<128x256xf32>
    %23 = arith.truncf %22 : vector<128x256xf32> to vector<128x256xbf16>
    %cst_12 = arith.constant dense<0.000000e+00> : vector<128x32xf32>
    %24 = tpu.matmul %23, %11, %cst_12 {dimension_numbers = #tpu.dot_dimension_numbers<[1], [0], [0], [1], [0, 0, 1, 1], [], []>} : vector<128x256xbf16>, vector<256x32xbf16>, vector<128x32xf32> -> vector<128x32xf32>
    %25 = vector.extract_strided_slice %8 {offsets = [0, 32], sizes = [128, 32], strides = [1, 1]} : vector<128x128xbf16> to vector<128x32xbf16>
    %c0_13 = arith.constant 0 : index
    %c32 = arith.constant 32 : index
    %26 = vector.load %arg12[%c0_13, %c32] : memref<256x128xbf16, #tpu.memory_space<vmem>>, vector<256x32xbf16>
    %c0_14 = arith.constant 0 : index
    %c32_15 = arith.constant 32 : index
    %27 = vector.load %arg13[%c0_14, %c32_15] : memref<256x128xbf16, #tpu.memory_space<vmem>>, vector<256x32xbf16>
    %cst_16 = arith.constant dense<0.000000e+00> : vector<128x256xf32>
    %28 = tpu.matmul %25, %26, %cst_16 {dimension_numbers = #tpu.dot_dimension_numbers<[1], [1], [0], [0], [0, 0, 1, 0], [], []>} : vector<128x32xbf16>, vector<256x32xbf16>, vector<128x256xf32> -> vector<128x256xf32>
    %cst_17 = arith.constant dense<0xFF800000> : vector<128xf32>
    %29 = vector.multi_reduction <maximumf>, %28, %cst_17 [1] : vector<128x256xf32> to vector<128xf32>
    %30 = vector.shape_cast %29 : vector<128xf32> to vector<128x1xf32>
    %31 = vector.broadcast %30 : vector<128x1xf32> to vector<128x256xf32>
    %32 = arith.subf %28, %31 : vector<128x256xf32>
    %33 = math.exp %32 : vector<128x256xf32>
    %cst_18 = arith.constant dense<0.000000e+00> : vector<128xf32>
    %34 = vector.multi_reduction <add>, %33, %cst_18 [1] : vector<128x256xf32> to vector<128xf32>
    %35 = vector.shape_cast %34 : vector<128xf32> to vector<128x1xf32>
    %36 = tpu.reciprocal %35 {approx = true} : vector<128x1xf32> -> vector<128x1xf32>
    %37 = vector.broadcast %36 : vector<128x1xf32> to vector<128x256xf32>
    %38 = arith.mulf %33, %37 : vector<128x256xf32>
    %39 = arith.truncf %38 : vector<128x256xf32> to vector<128x256xbf16>
    %cst_19 = arith.constant dense<0.000000e+00> : vector<128x32xf32>
    %40 = tpu.matmul %39, %27, %cst_19 {dimension_numbers = #tpu.dot_dimension_numbers<[1], [0], [0], [1], [0, 0, 1, 1], [], []>} : vector<128x256xbf16>, vector<256x32xbf16>, vector<128x32xf32> -> vector<128x32xf32>
    %41 = vector.extract_strided_slice %8 {offsets = [0, 64], sizes = [128, 32], strides = [1, 1]} : vector<128x128xbf16> to vector<128x32xbf16>
    %c0_20 = arith.constant 0 : index
    %c64 = arith.constant 64 : index
    %42 = vector.load %arg12[%c0_20, %c64] : memref<256x128xbf16, #tpu.memory_space<vmem>>, vector<256x32xbf16>
    %c0_21 = arith.constant 0 : index
    %c64_22 = arith.constant 64 : index
    %43 = vector.load %arg13[%c0_21, %c64_22] : memref<256x128xbf16, #tpu.memory_space<vmem>>, vector<256x32xbf16>
    %cst_23 = arith.constant dense<0.000000e+00> : vector<128x256xf32>
    %44 = tpu.matmul %41, %42, %cst_23 {dimension_numbers = #tpu.dot_dimension_numbers<[1], [1], [0], [0], [0, 0, 1, 0], [], []>} : vector<128x32xbf16>, vector<256x32xbf16>, vector<128x256xf32> -> vector<128x256xf32>
    %cst_24 = arith.constant dense<0xFF800000> : vector<128xf32>
    %45 = vector.multi_reduction <maximumf>, %44, %cst_24 [1] : vector<128x256xf32> to vector<128xf32>
    %46 = vector.shape_cast %45 : vector<128xf32> to vector<128x1xf32>
    %47 = vector.broadcast %46 : vector<128x1xf32> to vector<128x256xf32>
    %48 = arith.subf %44, %47 : vector<128x256xf32>
    %49 = math.exp %48 : vector<128x256xf32>
    %cst_25 = arith.constant dense<0.000000e+00> : vector<128xf32>
    %50 = vector.multi_reduction <add>, %49, %cst_25 [1] : vector<128x256xf32> to vector<128xf32>
    %51 = vector.shape_cast %50 : vector<128xf32> to vector<128x1xf32>
    %52 = tpu.reciprocal %51 {approx = true} : vector<128x1xf32> -> vector<128x1xf32>
    %53 = vector.broadcast %52 : vector<128x1xf32> to vector<128x256xf32>
    %54 = arith.mulf %49, %53 : vector<128x256xf32>
    %55 = arith.truncf %54 : vector<128x256xf32> to vector<128x256xbf16>
    %cst_26 = arith.constant dense<0.000000e+00> : vector<128x32xf32>
    %56 = tpu.matmul %55, %43, %cst_26 {dimension_numbers = #tpu.dot_dimension_numbers<[1], [0], [0], [1], [0, 0, 1, 1], [], []>} : vector<128x256xbf16>, vector<256x32xbf16>, vector<128x32xf32> -> vector<128x32xf32>
    %57 = vector.extract_strided_slice %8 {offsets = [0, 96], sizes = [128, 32], strides = [1, 1]} : vector<128x128xbf16> to vector<128x32xbf16>
    %c0_27 = arith.constant 0 : index
    %c96 = arith.constant 96 : index
    %58 = vector.load %arg12[%c0_27, %c96] : memref<256x128xbf16, #tpu.memory_space<vmem>>, vector<256x32xbf16>
    %c0_28 = arith.constant 0 : index
    %c96_29 = arith.constant 96 : index
    %59 = vector.load %arg13[%c0_28, %c96_29] : memref<256x128xbf16, #tpu.memory_space<vmem>>, vector<256x32xbf16>
    %cst_30 = arith.constant dense<0.000000e+00> : vector<128x256xf32>
    %60 = tpu.matmul %57, %58, %cst_30 {dimension_numbers = #tpu.dot_dimension_numbers<[1], [1], [0], [0], [0, 0, 1, 0], [], []>} : vector<128x32xbf16>, vector<256x32xbf16>, vector<128x256xf32> -> vector<128x256xf32>
    %cst_31 = arith.constant dense<0xFF800000> : vector<128xf32>
    %61 = vector.multi_reduction <maximumf>, %60, %cst_31 [1] : vector<128x256xf32> to vector<128xf32>
    %62 = vector.shape_cast %61 : vector<128xf32> to vector<128x1xf32>
    %63 = vector.broadcast %62 : vector<128x1xf32> to vector<128x256xf32>
    %64 = arith.subf %60, %63 : vector<128x256xf32>
    %65 = math.exp %64 : vector<128x256xf32>
    %cst_32 = arith.constant dense<0.000000e+00> : vector<128xf32>
    %66 = vector.multi_reduction <add>, %65, %cst_32 [1] : vector<128x256xf32> to vector<128xf32>
    %67 = vector.shape_cast %66 : vector<128xf32> to vector<128x1xf32>
    %68 = tpu.reciprocal %67 {approx = true} : vector<128x1xf32> -> vector<128x1xf32>
    %69 = vector.broadcast %68 : vector<128x1xf32> to vector<128x256xf32>
    %70 = arith.mulf %65, %69 : vector<128x256xf32>
    %71 = arith.truncf %70 : vector<128x256xf32> to vector<128x256xbf16>
    %cst_33 = arith.constant dense<0.000000e+00> : vector<128x32xf32>
    %72 = tpu.matmul %71, %59, %cst_33 {dimension_numbers = #tpu.dot_dimension_numbers<[1], [0], [0], [1], [0, 0, 1, 1], [], []>} : vector<128x256xbf16>, vector<256x32xbf16>, vector<128x32xf32> -> vector<128x32xf32>
    %73 = tpu.concatenate %24, %40, %56, %72 in 1 : vector<128x32xf32>, vector<128x32xf32>, vector<128x32xf32>, vector<128x32xf32> -> vector<128x128xf32>
    %74 = arith.truncf %73 : vector<128x128xf32> to vector<128x128xbf16>
    %c0_34 = arith.constant 0 : index
    %c0_35 = arith.constant 0 : index
    %75 = vector.load %arg8[%c0_34, %c0_35] : memref<128x128xbf16, #tpu.memory_space<vmem>>, vector<128x128xbf16>
    %cst_36 = arith.constant dense<0.000000e+00> : vector<128x128xf32>
    %76 = tpu.matmul %74, %75, %cst_36 {dimension_numbers = #tpu.dot_dimension_numbers<[1], [0], [0], [1], [0, 0, 1, 1], [], []>} : vector<128x128xbf16>, vector<128x128xbf16>, vector<128x128xf32> -> vector<128x128xf32>
    %77 = arith.addf %76, %4 : vector<128x128xf32>
    %cst_37 = arith.constant dense<0.000000e+00> : vector<128xf32>
    %78 = vector.multi_reduction <add>, %77, %cst_37 [1] : vector<128x128xf32> to vector<128xf32>
    %79 = vector.shape_cast %78 : vector<128xf32> to vector<128x1xf32>
    %cst_38 = arith.constant 1.280000e+02 : f32
    %80 = vector.broadcast %cst_38 : f32 to vector<128x1xf32>
    %81 = arith.divf %79, %80 : vector<128x1xf32>
    %82 = vector.broadcast %81 : vector<128x1xf32> to vector<128x128xf32>
    %83 = arith.subf %77, %82 : vector<128x128xf32>
    %84 = arith.mulf %83, %83 : vector<128x128xf32>
    %cst_39 = arith.constant dense<0.000000e+00> : vector<128xf32>
    %85 = vector.multi_reduction <add>, %84, %cst_39 [1] : vector<128x128xf32> to vector<128xf32>
    %86 = vector.shape_cast %85 : vector<128xf32> to vector<128x1xf32>
    %cst_40 = arith.constant 1.280000e+02 : f32
    %87 = vector.broadcast %cst_40 : f32 to vector<128x1xf32>
    %88 = arith.divf %86, %87 : vector<128x1xf32>
    %89 = vector.broadcast %81 : vector<128x1xf32> to vector<128x128xf32>
    %90 = arith.subf %77, %89 : vector<128x128xf32>
    %cst_41 = arith.constant 9.99999997E-7 : f32
    %91 = vector.broadcast %cst_41 : f32 to vector<128x1xf32>
    %92 = arith.addf %88, %91 : vector<128x1xf32>
    %93 = math.rsqrt %92 : vector<128x1xf32>
    %94 = vector.broadcast %93 : vector<128x1xf32> to vector<128x128xf32>
    %95 = arith.mulf %90, %94 : vector<128x128xf32>
    %c0_42 = arith.constant 0 : index
    %c0_43 = arith.constant 0 : index
    %96 = vector.load %arg9[%c0_42, %c0_43] : memref<1x128xf32, #tpu.memory_space<vmem>>, vector<1x128xf32>
    %97 = vector.broadcast %96 : vector<1x128xf32> to vector<128x128xf32>
    %98 = arith.mulf %95, %97 : vector<128x128xf32>
    %c0_44 = arith.constant 0 : index
    %c0_45 = arith.constant 0 : index
    %99 = vector.load %arg10[%c0_44, %c0_45] : memref<1x128xf32, #tpu.memory_space<vmem>>, vector<1x128xf32>
    %100 = vector.broadcast %99 : vector<1x128xf32> to vector<128x128xf32>
    %101 = arith.addf %98, %100 : vector<128x128xf32>
    %c0_46 = arith.constant 0 : index
    %c0_47 = arith.constant 0 : index
    %c0_48 = arith.constant 0 : index
    %102 = vector.load %arg11[%c0_46, %c0_47, %c0_48] : memref<1x128x128xf32, #tpu.memory_space<vmem>>, vector<1x128x128xf32>
    %103 = vector.shape_cast %102 : vector<1x128x128xf32> to vector<128x128xf32>
    %104 = vector.shape_cast %101 : vector<128x128xf32> to vector<1x128x128xf32>
    tpu.vector_store %arg11[%c0_46, %c0_47, %c0_48], %104 {strides = array<i32>} : memref<1x128x128xf32, #tpu.memory_space<vmem>>, vector<1x128x128xf32>,
    return
  }
  func.func @transform_0(%arg0: i32, %arg1: i32) -> (i32, i32, i32) {
    %c0_i32 = arith.constant 0 : i32
    %c0_i32_0 = arith.constant 0 : i32
    return %arg0, %arg1, %c0_i32 : i32, i32, i32
  }
  func.func @transform_1(%arg0: i32, %arg1: i32) -> (i32, i32, i32) {
    %c0_i32 = arith.constant 0 : i32
    %c0_i32_0 = arith.constant 0 : i32
    %c0_i32_1 = arith.constant 0 : i32
    return %arg0, %c0_i32, %c0_i32_0 : i32, i32, i32
  }
  func.func @transform_2(%arg0: i32, %arg1: i32) -> (i32, i32, i32) {
    %c0_i32 = arith.constant 0 : i32
    %c0_i32_0 = arith.constant 0 : i32
    %c0_i32_1 = arith.constant 0 : i32
    return %arg0, %c0_i32, %c0_i32_0 : i32, i32, i32
  }
  func.func @transform_3(%arg0: i32, %arg1: i32) -> (i32, i32) {
    %c0_i32 = arith.constant 0 : i32
    %c0_i32_0 = arith.constant 0 : i32
    %c0_i32_1 = arith.constant 0 : i32
    return %c0_i32, %c0_i32_0 : i32, i32
  }
  func.func @transform_4(%arg0: i32, %arg1: i32) -> (i32, i32) {
    %c0_i32 = arith.constant 0 : i32
    %c0_i32_0 = arith.constant 0 : i32
    %c0_i32_1 = arith.constant 0 : i32
    return %c0_i32, %c0_i32_0 : i32, i32
  }
  func.func @transform_5(%arg0: i32, %arg1: i32) -> (i32, i32) {
    %c0_i32 = arith.constant 0 : i32
    %c0_i32_0 = arith.constant 0 : i32
    %c0_i32_1 = arith.constant 0 : i32
    return %c0_i32, %c0_i32_0 : i32, i32
  }
  func.func @transform_6(%arg0: i32, %arg1: i32) -> (i32, i32) {
    %c0_i32 = arith.constant 0 : i32
    %c0_i32_0 = arith.constant 0 : i32
    %c0_i32_1 = arith.constant 0 : i32
    return %c0_i32, %c0_i32_0 : i32, i32
  }
  func.func @transform_7(%arg0: i32, %arg1: i32) -> (i32, i32) {
    %c0_i32 = arith.constant 0 : i32
    %c0_i32_0 = arith.constant 0 : i32
    %c0_i32_1 = arith.constant 0 : i32
    return %c0_i32, %c0_i32_0 : i32, i32
  }
  func.func @transform_8(%arg0: i32, %arg1: i32) -> (i32, i32) {
    %c0_i32 = arith.constant 0 : i32
    %c0_i32_0 = arith.constant 0 : i32
    %c0_i32_1 = arith.constant 0 : i32
    return %c0_i32, %c0_i32_0 : i32, i32
  }
  func.func @transform_9(%arg0: i32, %arg1: i32) -> (i32, i32, i32) {
    %c0_i32 = arith.constant 0 : i32
    %c0_i32_0 = arith.constant 0 : i32
    return %arg0, %arg1, %c0_i32 : i32, i32, i32
  }
}

</mosaic_0001>

<bundles_post_ra>
// kernel: tpu_custom_call.1
= control target key start
LH: loop header
LB: loop body
LE: loop exit
PB: predicated region body
PF: predicated region fallthrough
CT: control target
= control target key end

     0   :  { %s9505_s0 = inlined_call_operand.hbm [shape: f32[2,256,128], index: 0, kind: input, shape index: {}]   ;;  %s9506_s1 = inlined_call_operand.hbm [shape: bf16[2,256,128], index: 1, kind: input, shape index: {}]   ;;  %s9507_s2 = inlined_call_operand.hbm [shape: bf16[2,256,128], index: 2, kind: input, shape index: {}]   ;;  %s9508_s3 = inlined_call_operand.hbm [shape: bf16[128,128], index: 3, kind: input, shape index: {}]   ;;  %s9509_s4 = inlined_call_operand.hbm [shape: bf16[128,128], index: 4, kind: input, shape index: {}]   ;;  %s9510_s5 = inlined_call_operand.hbm [shape: bf16[128,128], index: 5, kind: input, shape index: {}]   ;;  %s9511_s6 = inlined_call_operand.hbm [shape: bf16[128,128], index: 6, kind: input, shape index: {}]   ;;  %s9512_s7 = inlined_call_operand.vmem [shape: f32[1,128], index: 7, kind: input, shape index: {}]   ;;  %s9513_s8 = inlined_call_operand.vmem [shape: f32[1,128], index: 8, kind: input, shape index: {}]   ;;  %s9514_s9 = inlined_call_operand.hbm [shape: f32[2,256,128], index: 9, kind: output, shape index: {}]  }
   0x1   :  { %9650 = sst [smem:[#allocation130_spill]] %s9505_s0 }
   0x2   :  { %9651 = sst [smem:[#allocation131_spill]] %s9506_s1 }
   0x3   :  { %9652 = sst [smem:[#allocation132_spill]] %s9508_s3 }
   0x4   :  { %9653 = sst [smem:[#allocation133_spill]] %s9509_s4 }
   0x5   :  { %9654 = sst [smem:[#allocation134_spill]] %s9510_s5 }
   0x6   :  { %9655 = sst [smem:[#allocation135_spill]] %s9511_s6 }
   0x7   :  { %9656 = sst [smem:[#allocation136_spill]] %s9512_s7 }
   0x8   :  { %9657 = sst [smem:[#allocation137_spill]] %s9513_s8 }
   0x9   :  { %9658 = sst [smem:[#allocation138_spill]] %s9514_s9 }
   0xa   :  { %14 = vsyncpa [#allocation5], 0 }
   0xb   :  { %16 = vsyncpa [#allocation5 + $0x1], 0 }
   0xc   :  { %17 = vsyncpa [#allocation8], 0 }
   0xd   :  { %19 = vsyncpa [#allocation8 + $0x1], 0 }
   0xe   :  { %20 = vsyncpa [#allocation11], 0 }
   0xf   :  { %21 = vsyncpa [#allocation14], 0 }
  0x10   :  { %22 = vsyncpa [#allocation6], 0 }
  0x11   :  { %24 = vsyncpa [#allocation6 + $0x1], 0  ;;  %s6833_s30 = smov 0   ;;  %s6835_s10 = smov 0  }
  0x12   :  { %s6837_s11 = smov 0   ;;  %s6839_s12 = smov 0  }
  0x13   :  { %s6841_s13 = smov 0   ;;  %s6843_s14 = smov 0  }
  0x14   :  { %s6845_s15 = smov 0   ;;  %s6847_s16 = smov 0  }
  0x15   :  { %s6849_s17 = smov 0   ;;  %s6851_s18 = smov 0  }
  0x16   :  { %s6853_s19 = smov 0  }
  0x17 LB: > { %9659 = sst [smem:[#allocation22_spill]] %s6728_s10  ;;  %s6889_s20 = sadd.s32 4294967295, %s6764_s19   ;;  %s6764_s19 = sphi %s6853_s19, %s30_s19   ;;  %s6760_s18 = sphi %s6851_s18, %s10035_s18   ;;  %s6756_s17 = sphi %s6849_s17, %s10034_s17   ;;  %s6752_s16 = sphi %s6847_s16, %s10033_s16   ;;  %s6748_s15 = sphi %s6845_s15, %s10032_s15   ;;  %s6744_s14 = sphi %s6843_s14, %s10031_s14   ;;  %s6740_s13 = sphi %s6841_s13, %s10030_s13   ;;  %s6736_s12 = sphi %s6839_s12, %s10029_s12   ;;  %s6732_s11 = sphi %s6837_s11, %s10028_s11   ;;  %s6728_s10 = sphi %s6835_s10, %s10027_s10   ;;  %s6724_s30 = sphi %s6833_s30, %s10024_s30  }
  0x18   : > { %9660 = sst [smem:[#allocation23_spill]] %s6736_s12  ;;  %p4826_p0 = scmp.ge.s32.totalorder %s6764_s19, 1 }
  0x19   : > { %9661 = sst [smem:[#allocation24_spill]] %s6748_s15  ;;  %p9516_p1 = scmp.eq.s32.totalorder %s6889_s20, 0 }
  0x1a   : > { %9662 = sst [smem:[#allocation25_spill]] %s6752_s16  ;;  %p281_p3 = scmp.lt.s32.totalorder %s6764_s19, 5 }
  0x1b   : > { %9663 = sst [smem:[#allocation26_spill]] %s6889_s20  ;;  %s6766_s22 = smov [#allocation10]  }
  0x1c   : > { %p6895_p4 = pnand %p4826_p0, %p281_p3  ;;  %s293_s23 = sshll.u32 %s6766_s22, 4  ;;  %s294_s23 = int_to_ptr.vmem [resolvable:$true] %s293_s23 }
  0x1d   : > { %s6767_s25 = smov [#allocation13]   ;;  %s9667_s3 = sld [smem:[#allocation132_spill]] }
  0x1e   : > { %s9664_s21 = scalar_select %p6895_p4, 1, 0 }
  0x1f   : > { %p5654_p5 = pneg %p6895_p4  ;;  %s319_s26 = sshll.u32 %s6767_s25, 4  ;;  %s6907_s26 = int_to_ptr.vmem [resolvable:$true] %s319_s26 }
  0x20   : > { %9665 = sst [smem:[#allocation27_spill]] %s9664_s21 }
  0x21   : > { %p6903_p6 = pnand %p5654_p5, %p9516_p1 }
  0x23   : > { %s9666_s24 = scalar_select %p6903_p6, 1, 0 }
  0x24   : > { %s6428_s29 = scalar_lea.hbm %s9667_s3, 1024  ;;  %p6917_p8 = pneg %p6903_p6 }
  0x25   : > { %p6429_p7 = scmp.ne.s32.totalorder %s9667_s3, %s6428_s29  ;;  %p6435_p11 = scmp.lt.u32.totalorder %s6428_s29, %s9667_s3 }
  0x27   : > { %p6431_p9 = pnand %p6917_p8, %p6429_p7 }
  0x29   : > { %p6432_p10 = pneg %p6431_p9 }
  0x2b   : > { %p6437_p12 = pnand %p6435_p11, %p6432_p10 }
  0x2d   : > { %6440 = shalt.err (!%p6437_p12)
}
  0x2e   : > { %s6441_s27 = scalar_lea.vmem %s294_s23, 1024  ;;  %p6449_p5 = scmp.lt.s32.totalorder %s294_s23, %s294_s23 }
  0x2f   : > { %p6442_p13 = scmp.ne.s32.totalorder %s294_s23, %s6441_s27  ;;  %p6450_p2 = scmp.lt.s32.totalorder %s6441_s27, %s6441_s27 }
  0x31   : > { %p6444_p0 = pnand %p6442_p13, %p6917_p8  ;;  %p6451_p1 = por %p6450_p2, %p6449_p5 }
  0x33   : > { %p6445_p3 = pneg %p6444_p0 }
  0x35   : > { %p6452_p4 = pnand %p6451_p1, %p6445_p3 }
  0x37   : > { %6455 = shalt.err (!%p6452_p4)
}
  0x38   : > { %s9520_s9 = smov 64   ;;  %s9522_s16 = smov 4  }
  0x39   : > { %5657 = dma.hbm_to_vmem [thread:$0]  (!%p6903_p6), %s9667_s3, 1024, %s294_s23, [#allocation11], %s9520_s9, %s9520_s9, %s9522_s16  }
  0x3a   : > { %s9669_s5 = sld [smem:[#allocation134_spill]] }
  0x40   : > { %s6456_s7 = scalar_lea.hbm %s9669_s5, 1024 }
  0x41   : > { %p6457_p1 = scmp.ne.s32.totalorder %s9669_s5, %s6456_s7  ;;  %p6463_p7 = scmp.lt.u32.totalorder %s6456_s7, %s9669_s5 }
  0x43   : > { %p6459_p2 = pnand %p6457_p1, %p6917_p8 }
  0x45   : > { %p6460_p4 = pneg %p6459_p2 }
  0x47   : > { %p6465_p9 = pnand %p6463_p7, %p6460_p4 }
  0x49   : > { %6468 = shalt.err (!%p6465_p9)
}
  0x4a   : > { %s6469_s23 = scalar_lea.vmem %s6907_s26, 1024  ;;  %p6477_p13 = scmp.lt.s32.totalorder %s6907_s26, %s6907_s26 }
  0x4b   : > { %p6470_p10 = scmp.ne.s32.totalorder %s6907_s26, %s6469_s23  ;;  %p6478_p0 = scmp.lt.s32.totalorder %s6469_s23, %s6469_s23 }
  0x4d   : > { %p6472_p11 = pnand %p6470_p10, %p6917_p8  ;;  %p6479_p3 = por %p6478_p0, %p6477_p13 }
  0x4f   : > { %p6473_p12 = pneg %p6472_p11 }
  0x51   : > { %p6480_p5 = pnand %p6479_p3, %p6473_p12 }
  0x53   : > { %6483 = shalt.err (!%p6480_p5)
}
  0x54   : > { %5663 = dma.hbm_to_vmem [thread:$0]  (!%p6903_p6), %s9669_s5, 1024, %s6907_s26, [#allocation14], %s9520_s9, %s9520_s9, %s9522_s16  }
  0x55   : > { %p9527_p1 = scmp.eq.s32.totalorder %s6764_s19, 0  ;;  %p84_p2 = scmp.ne.s32.totalorder %s6732_s11, %s6728_s10 }
  0x56   : > { %p90_p4 = scmp.ne.s32.totalorder %s6728_s10, %s6724_s30  ;;  %p9526_p7 = scmp.lt.s32.totalorder %s6764_s19, 4 }
  0x57   : > { %s375_s8 = sand.u32 1, %s6764_s19   ;;  %p86_p9 = por %p84_p2, %p9527_p1 }
  0x58   : > { %p9670_p10 = scmp.eq.s32.totalorder %s6889_s20, 0  ;;  %s377_s29 = sand.u32 1, %s6732_s11  }
  0x59   : > { %s6980_s25 = sshll.u32 %s377_s29, 7  ;;  %s4956_s26 = sshll.u32 %s6760_s18, 11 }
  0x5a   : > { %p6975_p11 = por %p90_p4, %p9670_p10  ;;  %s9673_s1 = sld [smem:[#allocation131_spill]] }
  0x5b   : > { %s379_s30 = scalar_lea.vmem [#allocation7], %s6980_s25  ;;  %p6991_p12 = pnand %p9526_p7, %p86_p9 }
  0x5c   : > { %s9671_s28 = scalar_select %p6975_p11, 1, 0 }
  0x5d   : > { %s386_s7 = sshll.u32 %s379_s30, 4  ;;  %s7000_s27 = scalar_lea.hbm %s9507_s2, %s4956_s26  ;;  %s6995_s7 = int_to_ptr.vmem [resolvable:$true] %s386_s7 }
  0x5e   : > { %9672 = sst [smem:[#allocation28_spill]] %s9671_s28  ;;  %s7002_s23 = scalar_lea.sflag [#allocation8], %s375_s8 }
  0x5f   : > { %s9674_s21 = scalar_select %p6991_p12, 1, 0 }
  0x60   : > { %s6986_s0 = scalar_lea.hbm %s9673_s1, %s4956_s26  ;;  %p9532_p0 = pneg %p6991_p12 }
  0x61   : > { %s6484_s9 = scalar_lea.hbm %s6986_s0, 2048  ;;  %s6489_s3 = scalar_lea.hbm %s9673_s1, 4096 }
  0x62   : > { %p6485_p13 = scmp.ne.s32.totalorder %s6986_s0, %s6484_s9  ;;  %p6490_p2 = scmp.lt.u32.totalorder %s6986_s0, %s9673_s1 }
  0x63   : > { %p6491_p4 = scmp.lt.u32.totalorder %s6489_s3, %s6484_s9  ;;  %p6493_p10 = scmp.lt.u32.totalorder %s6484_s9, %s6986_s0 }
  0x64   : > { %p6487_p3 = pnand %p9532_p0, %p6485_p13 }
  0x65   : > { %p6492_p9 = por %p6491_p4, %p6490_p2 }
  0x66   : > { %p6488_p5 = pneg %p6487_p3 }
  0x67   : > { %p6494_p7 = por %p6493_p10, %p6492_p9 }
  0x69   : > { %p6495_p1 = pnand %p6494_p7, %p6488_p5 }
  0x6b   : > { %6498 = shalt.err (!%p6495_p1)
}
  0x6c   : > { %s6499_s15 = scalar_lea.vmem %s6995_s7, 2048  ;;  %s6770_s16 = smov [#allocation7]  }
  0x6d   : > { %p6500_p13 = scmp.ne.s32.totalorder %s6995_s7, %s6499_s15  ;;  %s6504_s8 = sshll.u32 %s6770_s16, 4  ;;  %s6505_s8 = int_to_ptr.vmem [resolvable:$false] %s6504_s8 }
  0x6e   : > { %s6506_s5 = scalar_lea.vmem %s6505_s8, 4096  ;;  %p6507_p6 = scmp.lt.s32.totalorder %s6995_s7, %s6505_s8 }
  0x6f   : > { %p6502_p3 = pnand %p6500_p13, %p9532_p0  ;;  %p6508_p2 = scmp.lt.s32.totalorder %s6506_s5, %s6499_s15 }
  0x71   : > { %p6503_p11 = pneg %p6502_p3  ;;  %p6509_p4 = por %p6508_p2, %p6507_p6 }
  0x73   : > { %p6510_p9 = pnand %p6509_p4, %p6503_p11 }
  0x75   : > { %6513 = shalt.err (!%p6510_p9)
}
  0x76   : > { %s9675_s3 = smov 4   ;;  %s9676_s9 = smov 64  }
  0x77   : > { %5673 = dma.hbm_to_vmem [thread:$0]  (!%p6991_p12), %s6986_s0, 2048, %s6995_s7, %s7002_s23, %s9676_s9, %s9676_s9, %s9675_s3  }
  0x78   : > { %s400_s28 = scalar_lea.vmem [#allocation9], %s6980_s25  ;;  %s6771_s29 = smov [#allocation12]  }
  0x79   : > { %s407_s26 = sshll.u32 %s400_s28, 4  ;;  %s306_s30 = sshll.u32 %s6771_s29, 4  ;;  %s7034_s26 = int_to_ptr.vmem [resolvable:$true] %s407_s26  ;;  %s307_s30 = int_to_ptr.vmem [resolvable:$true] %s306_s30 }
  0x7a   : > { %s9677_s4 = sld [smem:[#allocation133_spill]] }
  0x80   : > { %s6514_s8 = scalar_lea.hbm %s9677_s4, 1024 }
  0x81   : > { %p6515_p6 = scmp.ne.s32.totalorder %s9677_s4, %s6514_s8  ;;  %p6521_p11 = scmp.lt.u32.totalorder %s6514_s8, %s9677_s4 }
  0x83   : > { %p6517_p1 = pnand %p6515_p6, %p6917_p8 }
  0x85   : > { %p6518_p7 = pneg %p6517_p1 }
  0x87   : > { %p6523_p5 = pnand %p6521_p11, %p6518_p7 }
  0x89   : > { %6526 = shalt.err (!%p6523_p5)
}
  0x8a   : > { %s6527_s25 = scalar_lea.vmem %s307_s30, 1024  ;;  %p6535_p2 = scmp.lt.s32.totalorder %s307_s30, %s307_s30 }
  0x8b   : > { %p6528_p10 = scmp.ne.s32.totalorder %s307_s30, %s6527_s25  ;;  %p6536_p4 = scmp.lt.s32.totalorder %s6527_s25, %s6527_s25 }
  0x8d   : > { %p6530_p13 = pnand %p6528_p10, %p6917_p8  ;;  %p6537_p9 = por %p6536_p4, %p6535_p2 }
  0x8f   : > { %p6531_p3 = pneg %p6530_p13 }
  0x91   : > { %p6538_p0 = pnand %p6537_p9, %p6531_p3 }
  0x93   : > { %6541 = shalt.err (!%p6538_p0)
}
  0x94   : > { %p9678_p6 = scmp.ne.s32.totalorder %s9666_s24, 0  ;;  %s6772_s7 = smov [#allocation15]  }
  0x95   : > { %s332_s28 = sshll.u32 %s6772_s7, 4  ;;  %s9679_s6 = sld [smem:[#allocation135_spill]]  ;;  %s333_s28 = int_to_ptr.vmem [resolvable:$true] %s332_s28 }
  0x96   : > { %5660 = dma.hbm_to_vmem [thread:$0]  (!%p9678_p6), %s9677_s4, 1024, %s307_s30, [#allocation11], %s9676_s9, %s9676_s9, %s9675_s3  }
  0x9b   : > { %s6542_s16 = scalar_lea.hbm %s9679_s6, 1024 }
  0x9c   : > { %p6543_p0 = scmp.ne.s32.totalorder %s9679_s6, %s6542_s16  ;;  %p6549_p11 = scmp.lt.u32.totalorder %s6542_s16, %s9679_s6 }
  0x9e   : > { %p6545_p1 = pnand %p6543_p0, %p6917_p8 }
  0xa0   : > { %p6546_p7 = pneg %p6545_p1 }
  0xa2   : > { %p6551_p5 = pnand %p6549_p11, %p6546_p7 }
  0xa4   : > { %6554 = shalt.err (!%p6551_p5)
}
  0xa5   : > { %s6555_s30 = scalar_lea.vmem %s333_s28, 1024  ;;  %p6563_p2 = scmp.lt.s32.totalorder %s333_s28, %s333_s28 }
  0xa6   : > { %p6556_p10 = scmp.ne.s32.totalorder %s333_s28, %s6555_s30  ;;  %p6564_p4 = scmp.lt.s32.totalorder %s6555_s30, %s6555_s30 }
  0xa8   : > { %p6558_p13 = pnand %p6556_p10, %p6917_p8  ;;  %p6565_p9 = por %p6564_p4, %p6563_p2 }
  0xaa   : > { %p6559_p3 = pneg %p6558_p13 }
  0xac   : > { %p6566_p12 = pnand %p6565_p9, %p6559_p3 }
  0xae   : > { %6569 = shalt.err (!%p6566_p12)
}
  0xaf   : > { %5666 = dma.hbm_to_vmem [thread:$0]  (!%p9678_p6), %s9679_s6, 1024, %s333_s28, [#allocation14], %s9676_s9, %s9676_s9, %s9675_s3  }
  0xb0   : > { %s4825_s24 = sadd.s32 4294967294, %s6764_s19   ;;  %s39_s22 = sadd.s32 1, %s6756_s17 }
  0xb1   : > { %p40_p8 = scmp.ge.s32.totalorder %s39_s22, 2  ;;  %s51_s7 = sadd.s32 1, %s6744_s14 }
  0xb2   : > { %p58_p12 = scmp.ne.s32.totalorder %s6744_s14, %s6740_s13  ;;  %p64_p0 = scmp.ne.s32.totalorder %s6740_s13, %s6736_s12 }
  0xb3   : > { %s10037_s22 = smov (%p40_p8, %s39_s22), 0  ;;  %s9681_s29 = sadd.s32 1, %s6760_s18 }
  0xb4   : > { %9680 = sst [smem:[#allocation29_spill]] %s10037_s22  ;;  %s10039_s29 = smov (!%p40_p8, %s9681_s29), %s6760_s18 }
  0xb5   : > { %s47_s15 = ssub.s32 %s6756_s17, %s10037_s22  ;;  %p9682_p1 = scmp.eq.s32.totalorder %s6764_s19, 0 }
  0xb6   : > { %p44_p7 = scmp.ge.s32.totalorder %s10039_s29, 2  ;;  %p9684_p11 = scmp.eq.s32.totalorder %s6889_s20, 0 }
  0xb7   : > { %p7094_p6 = por %p9682_p1, %p58_p12  ;;  %p9686_p10 = scmp.eq.s32.totalorder %s6889_s20, 3 }
  0xb8   : > { %p7100_p5 = por %p9684_p11, %p64_p0  ;;  %p274_p3 = scmp.eq.s32.totalorder %s4825_s24, 3 }
  0xb9   : > { %p7106_p13 = por %p9686_p10, %p58_p12  ;;  %s10041_s29 = smov (%p44_p7, %s10039_s29), 0 }
  0xba   : > { %9689 = sst [smem:[#allocation31_spill]] %s10041_s29  ;;  %p7112_p2 = por %p274_p3, %p64_p0 }
  0xbb   : > { %s9687_s8 = scalar_select %p7106_p13, 1, 0 }
  0xbc   : > { %s9690_s5 = scalar_select %p7112_p2, 1, 0 }
  0xbd   : > { %9688 = sst [smem:[#allocation30_spill]] %s9687_s8  ;;  %s352_s0 = sand.u32 1, %s6744_s14  }
  0xbe   : > { %9691 = sst [smem:[#allocation32_spill]] %s9690_s5  ;;  %s46_s25 = ssub.s32 %s6760_s18, %s10041_s29 }
  0xbf   : > { %s48_s30 = sor.u32 %s47_s15, %s46_s25  ;;  %p75_p4 = scmp.eq.s32.totalorder %s46_s25, 0 }
  0xc0   : > { %p49_p9 = scmp.eq.s32.totalorder %s48_s30, 0  ;;  %s4832_s1 = sshll.u32 %s352_s0, 7 }
  0xc1   : > { %s9692_s10 = sadd.s32 1, %s6732_s11  ;;  %s4833_s24 = sshll.u32 %s6756_s17, 4 }
  0xc2   : > { %s7122_s4 = scalar_select %p75_p4, %s6732_s11, %s9692_s10  }
  0xc3   : > { %s7125_s6 = scalar_select %p49_p9, %s6744_s14, %s51_s7  }
  0xc4   : > { %s4834_s22 = sshll.u32 %s6760_s18, 5  ;;  %s356_s12 = scalar_lea.vmem [#allocation4], %s4832_s1 }
  0xc5   : > { %s365_s8 = sshll.u32 %s356_s12, 4  ;;  %s362_s20 = sadd.s32 %s4834_s22, %s4833_s24  ;;  %s7129_s8 = int_to_ptr.vmem [resolvable:$true] %s365_s8 }
  0xc6   : > { %s4835_s5 = sshll.u32 %s362_s20, 7  ;;  %p9693_p8 = scmp.lt.s32.totalorder %s6764_s19, 4 }
  0xc7   : > { %s9695_s10 = sld [smem:[#allocation130_spill]]  ;;  %s7144_s12 = scalar_lea.sflag [#allocation5], %s352_s0 }
  0xc8   : > { %p7135_p12 = pnand %p9693_p8, %p7094_p6 }
  0xca   : > { %p6572_p1 = pneg %p7135_p12 }
  0xcd   : > { %s9696_s29 = smov %s9695_s10  ;;  %s7142_s7 = scalar_lea.hbm %s9695_s10, %s4835_s5 }
  0xce   : > { %s6570_s20 = scalar_lea.hbm %s7142_s7, 2048  ;;  %s6575_s1 = scalar_lea.hbm %s9696_s29, 8192 }
  0xcf   : > { %p6571_p0 = scmp.ne.s32.totalorder %s7142_s7, %s6570_s20  ;;  %p6576_p11 = scmp.lt.u32.totalorder %s7142_s7, %s9696_s29 }
  0xd0   : > { %p6577_p10 = scmp.lt.u32.totalorder %s6575_s1, %s6570_s20  ;;  %p6579_p4 = scmp.lt.u32.totalorder %s6570_s20, %s7142_s7 }
  0xd1   : > { %p6573_p6 = pnand %p6572_p1, %p6571_p0 }
  0xd2   : > { %p6578_p3 = por %p6577_p10, %p6576_p11 }
  0xd3   : > { %p6574_p7 = pneg %p6573_p6 }
  0xd4   : > { %p6580_p9 = por %p6579_p4, %p6578_p3 }
  0xd6   : > { %p6581_p8 = pnand %p6580_p9, %p6574_p7 }
  0xd8   : > { %6584 = shalt.err (!%p6581_p8)
}
  0xd9   : > { %s6585_s0 = scalar_lea.vmem %s7129_s8, 2048  ;;  %s6773_s25 = smov [#allocation4]  }
  0xda   : > { %p6586_p0 = scmp.ne.s32.totalorder %s7129_s8, %s6585_s0  ;;  %s6590_s30 = sshll.u32 %s6773_s25, 4  ;;  %s6591_s30 = int_to_ptr.vmem [resolvable:$false] %s6590_s30 }
  0xdb   : > { %s6592_s10 = scalar_lea.vmem %s6591_s30, 4096  ;;  %p6593_p13 = scmp.lt.s32.totalorder %s7129_s8, %s6591_s30 }
  0xdc   : > { %p6588_p6 = pnand %p6586_p0, %p6572_p1  ;;  %p6594_p11 = scmp.lt.s32.totalorder %s6592_s10, %s6585_s0 }
  0xde   : > { %p6589_p2 = pneg %p6588_p6  ;;  %p6595_p10 = por %p6594_p11, %p6593_p13 }
  0xe0   : > { %p6596_p3 = pnand %p6595_p10, %p6589_p2 }
  0xe2   : > { %6599 = shalt.err (!%p6596_p3)
}
  0xe3   : > { %s6774_s20 = smov 128   ;;  %s6775_s22 = smov 8  }
  0xe4   : > { %5670 = dma.hbm_to_vmem [thread:$0]  (!%p7135_p12), %s7142_s7, 2048, %s7129_s8, %s7144_s12, %s6774_s20, %s6774_s20, %s6775_s22  }
  0xe5   : > { %s6600_s28 = scalar_lea.hbm %s7000_s27, 2048  ;;  %p9697_p7 = scmp.ne.s32.totalorder %s9674_s21, 0 }
  0xe6   : > { %p6601_p1 = scmp.ne.s32.totalorder %s7000_s27, %s6600_s28  ;;  %s6605_s24 = scalar_lea.hbm %s9507_s2, 4096 }
  0xe7   : > { %p9698_p4 = pneg %p9697_p7  ;;  %p6606_p9 = scmp.lt.u32.totalorder %s7000_s27, %s9507_s2 }
  0xe8   : > { %p6607_p8 = scmp.lt.u32.totalorder %s6605_s24, %s6600_s28  ;;  %p6609_p6 = scmp.lt.u32.totalorder %s6600_s28, %s7000_s27 }
  0xe9   : > { %p6603_p13 = pnand %p6601_p1, %p9698_p4 }
  0xea   : > { %p6608_p0 = por %p6607_p8, %p6606_p9 }
  0xeb   : > { %p6604_p2 = pneg %p6603_p13 }
  0xec   : > { %p6610_p11 = por %p6609_p6, %p6608_p0 }
  0xee   : > { %p6611_p10 = pnand %p6610_p11, %p6604_p2 }
  0xf0   : > { %6614 = shalt.err (!%p6611_p10)
}
  0xf1   : > { %s6615_s8 = scalar_lea.vmem %s7034_s26, 2048  ;;  %p9699_p3 = pmov %p9698_p4 }
  0xf2   : > { %p6616_p12 = scmp.ne.s32.totalorder %s7034_s26, %s6615_s8  ;;  %s6776_s15 = smov [#allocation9]  }
  0xf3   : > { %s6620_s7 = sshll.u32 %s6776_s15, 4  ;;  %s6621_s7 = int_to_ptr.vmem [resolvable:$false] %s6620_s7 }
  0xf4   : > { %p6618_p1 = pnand %p6616_p12, %p9699_p3  ;;  %s6622_s12 = scalar_lea.vmem %s6621_s7, 4096 }
  0xf5   : > { %p6623_p13 = scmp.lt.s32.totalorder %s7034_s26, %s6621_s7  ;;  %p6624_p9 = scmp.lt.s32.totalorder %s6622_s12, %s6615_s8 }
  0xf6   : > { %p6619_p4 = pneg %p6618_p1 }
  0xf7   : > { %p6625_p8 = por %p6624_p9, %p6623_p13 }
  0xf9   : > { %p6626_p0 = pnand %p6625_p8, %p6619_p4 }
  0xfb   : > { %6629 = shalt.err (!%p6626_p0)
}
  0xfc   : > { %5676 = dma.hbm_to_vmem [thread:$0]  (!%p9697_p7), %s7000_s27, 2048, %s7034_s26, %s7002_s23, %s9676_s9, %s9676_s9, %s9675_s3  }
  0xfd   : > { %s9700_s30 = sld [smem:[#allocation27_spill]] }
 0x103   : > { %p9701_p2 = scmp.ne.s32.totalorder %s9700_s30, 0 }
 0x105   : > { %419 = sbr.rel (%p9701_p2) target bundleno = 3196 (0xc7c), region = 56 }
 0x10c   : > { %s7202_s10 = sand.u32 1, %s6740_s13  }
 0x10d   : > { %s4843_s20 = sshll.u32 %s7202_s10, 7  ;;  %s422_s22 = scalar_lea.sflag [#allocation5], %s7202_s10 }
 0x10e   : > { %s7206_s28 = scalar_lea.vmem [#allocation4], %s4843_s20 }
 0x10f   : > { %6703 = dma.done.wait (%p7100_p5), %s422_s22, 2048  }
 0x110   : > { %6705 = vsyncadd (%p7100_p5), %s422_s22, 4294965248  ;;  %s9702_s21 = sld [smem:[#allocation26_spill]]  ;;  %s9703_s27 = sld [smem:[#allocation22_spill]] }
 0x111   : > { %s9704_s23 = sld [smem:[#allocation28_spill]] }
 0x116   : > { %s430_s3 = sand.u32 1, %s9702_s21   ;;  %s432_s9 = sand.u32 1, %s9703_s27  }
 0x117   : > { %s4844_s26 = sshll.u32 %s432_s9, 7  ;;  %s431_s1 = scalar_lea.sflag [#allocation8], %s430_s3 }
 0x118   : > { %s7214_s5 = scalar_lea.vmem [#allocation7], %s4844_s26  ;;  %p9705_p7 = scmp.ne.s32.totalorder %s9704_s23, 0 }
 0x11a   : > { %6707 = dma.done.wait (%p9705_p7), %s431_s1, 4096  }
 0x11b   : > { %6709 = vsyncadd (%p9705_p7), %s431_s1, 4294963200  ;;  %s7220_s24 = scalar_lea.vmem [#allocation9], %s4844_s26  ;;  %p9706_p6 = scmp.eq.s32.totalorder %s9702_s21, 0 }
 0x11d   : > { %6711 = dma.done.wait (%p9706_p6), [#allocation11], 2048   ;;  %p9707_p5 = pmov %p9706_p6 }
 0x11f   : > { %6713 = vsyncadd (%p9707_p5), [#allocation11], 4294965248  ;;  %p9708_p11 = pmov %p9707_p5 }
 0x120   : > { %p9709_p10 = pmov %p9707_p5 }
 0x121   : > { %6715 = dma.done.wait (%p9708_p11), [#allocation14], 2048  }
 0x122   : > { %6717 = vsyncadd (%p9709_p10), [#allocation14], 4294965248  ;;  %s7230_s16 = scalar_lea.vmem [#allocation16], %s4843_s20  ;;  %s9710_s0 = sld [smem:[#allocation24_spill]] }
 0x128   : > { %p4851_p12 = scmp.ne.s32.totalorder %s9710_s0, 0 }
 0x129   : > { %v5792_v0 = vld [vmem:[#allocation12] sm:$0xff] (!%p4851_p12)   ;;  %v5794_v2 = vld [vmem:[#allocation12 + $0x8] sm:$0xff] (!%p4851_p12)   ;;  %v5796_v4 = vld [vmem:[#allocation12 + $0x10] sm:$0xff] (!%p4851_p12)  }
 0x12a   : > { %510 = sbr.rel (%p4851_p12) target bundleno = 605 (0x25d), region = 88  ;;  %v5793_v1 = vld [vmem:[#allocation13] sm:$0xff] (!%p4851_p12)   ;;  %5422 = vmatprep.subr.bf16.mxu0 (!%p4851_p12), %v5792_v0  ;;  %v5795_v3 = vld [vmem:[#allocation13 + $0x8] sm:$0xff] (!%p4851_p12)   ;;  %v5797_v5 = vld [vmem:[#allocation13 + $0x10] sm:$0xff] (!%p4851_p12)  }
 0x12b   : > { %5470 = vmatprep.subr.bf16.mxu1 (!%p4851_p12), %v5793_v1  ;;  %5423 = vmatpush3.bf16.msra.mxu0 (!%p4851_p12), %v5792_v0  ;;  %v5798_v6 = vld [vmem:[#allocation12 + $0x18] sm:$0xff] (!%p4851_p12)   ;;  %v5800_v8 = vld [vmem:[#allocation12 + $0x20] sm:$0xff] (!%p4851_p12)   ;;  %v5802_v10 = vld [vmem:[#allocation12 + $0x28] sm:$0xff] (!%p4851_p12)  }
 0x12c   : > { %5471 = vmatpush3.bf16.msra.mxu1 (!%p4851_p12), %v5793_v1  ;;  %5424 = vmatprep.subr.bf16.mxu0 (!%p4851_p12), %v5794_v2  ;;  %v5799_v7 = vld [vmem:[#allocation13 + $0x18] sm:$0xff] (!%p4851_p12)   ;;  %v5801_v9 = vld [vmem:[#allocation13 + $0x20] sm:$0xff] (!%p4851_p12)   ;;  %v5803_v11 = vld [vmem:[#allocation13 + $0x28] sm:$0xff] (!%p4851_p12)  }
 0x12d   : > { %5472 = vmatprep.subr.bf16.mxu1 (!%p4851_p12), %v5795_v3  ;;  %v5808_v12 = vld [vmem:[%s7214_s5] sm:$0xff] (!%p4851_p12)   ;;  %v5804_v14 = vld [vmem:[#allocation12 + $0x30] sm:$0xff] (!%p4851_p12)   ;;  %v5806_v16 = vld [vmem:[#allocation12 + $0x38] sm:$0xff] (!%p4851_p12)  }
 0x12e   : > { %v5809_v13 = vld [vmem:[%s7220_s24] sm:$0xff] (!%p4851_p12)   ;;  %5438 = vmatprep.mubr.bf16.mxu0 (!%p4851_p12), %v5808_v12  ;;  %v5805_v15 = vld [vmem:[#allocation13 + $0x30] sm:$0xff] (!%p4851_p12)   ;;  %v5807_v17 = vld [vmem:[#allocation13 + $0x38] sm:$0xff] (!%p4851_p12)  }
 0x12f   : > { %5425 = vmatpush3.bf16.msra.mxu0 (!%p4851_p12), %v5794_v2  ;;  %5486 = vmatprep.mubr.bf16.mxu1 (!%p4851_p12), %v5809_v13  ;;  %v5810_v18 = vld [vmem:[%s7214_s5 + $0x8] sm:$0xff] (!%p4851_p12)   ;;  %v5812_v20 = vld [vmem:[%s7214_s5 + $0x10] sm:$0xff] (!%p4851_p12)   ;;  %v5814_v22 = vld [vmem:[%s7214_s5 + $0x18] sm:$0xff] (!%p4851_p12)  }
 0x130   : > { %5473 = vmatpush3.bf16.msra.mxu1 (!%p4851_p12), %v5795_v3  ;;  %5426 = vmatprep.subr.bf16.mxu0 (!%p4851_p12), %v5796_v4  ;;  %v5811_v19 = vld [vmem:[%s7220_s24 + $0x8] sm:$0xff] (!%p4851_p12)   ;;  %v5813_v21 = vld [vmem:[%s7220_s24 + $0x10] sm:$0xff] (!%p4851_p12)   ;;  %v5815_v23 = vld [vmem:[%s7220_s24 + $0x18] sm:$0xff] (!%p4851_p12)  }
 0x131   : > { %5474 = vmatprep.subr.bf16.mxu1 %v5797_v5  ;;  %v5816_v24 = vld [vmem:[%s7214_s5 + $0x20] sm:$0xff]   ;;  %v5818_v26 = vld [vmem:[%s7214_s5 + $0x28] sm:$0xff]   ;;  %v5820_v28 = vld [vmem:[%s7214_s5 + $0x30] sm:$0xff]  }
 0x132   : > { %v5817_v25 = vld [vmem:[%s7220_s24 + $0x20] sm:$0xff]   ;;  %v5819_v27 = vld [vmem:[%s7220_s24 + $0x28] sm:$0xff]   ;;  %v5821_v29 = vld [vmem:[%s7220_s24 + $0x30] sm:$0xff]  }
 0x133   : > { %5427 = vmatpush3.bf16.msra.mxu0 %v5796_v4  ;;  %v5822_v30 = vld [vmem:[%s7214_s5 + $0x38] sm:$0xff]   ;;  %v5824_v32 = vld [vmem:[%s7214_s5 + $0x40] sm:$0xff]   ;;  %v5826_v34 = vld [vmem:[%s7214_s5 + $0x48] sm:$0xff]  }
 0x134   : > { %5475 = vmatpush3.bf16.msra.mxu1 %v5797_v5  ;;  %5428 = vmatprep.subr.bf16.mxu0 %v5798_v6  ;;  %v5823_v31 = vld [vmem:[%s7220_s24 + $0x38] sm:$0xff]   ;;  %v5825_v33 = vld [vmem:[%s7220_s24 + $0x40] sm:$0xff]   ;;  %v5827_v35 = vld [vmem:[%s7220_s24 + $0x48] sm:$0xff]  }
 0x135   : > { %5476 = vmatprep.subr.bf16.mxu1 %v5799_v7  ;;  %v5828_v36 = vld [vmem:[%s7214_s5 + $0x50] sm:$0xff]   ;;  %v5830_v38 = vld [vmem:[%s7214_s5 + $0x58] sm:$0xff]   ;;  %v5832_v40 = vld [vmem:[%s7214_s5 + $0x60] sm:$0xff]  }
 0x136   : > { %v5829_v37 = vld [vmem:[%s7220_s24 + $0x50] sm:$0xff]   ;;  %v5831_v39 = vld [vmem:[%s7220_s24 + $0x58] sm:$0xff]   ;;  %v5833_v41 = vld [vmem:[%s7220_s24 + $0x60] sm:$0xff]  }
 0x137   : > { %5429 = vmatpush3.bf16.msra.mxu0 %v5798_v6  ;;  %v5834_v42 = vld [vmem:[%s7214_s5 + $0x68] sm:$0xff]   ;;  %v5836_v44 = vld [vmem:[%s7214_s5 + $0x70] sm:$0xff]   ;;  %v5838_v46 = vld [vmem:[%s7214_s5 + $0x78] sm:$0xff]  }
 0x138   : > { %5477 = vmatpush3.bf16.msra.mxu1 %v5799_v7  ;;  %5430 = vmatprep.subr.bf16.mxu0 %v5800_v8  ;;  %v5835_v43 = vld [vmem:[%s7220_s24 + $0x68] sm:$0xff]   ;;  %v5837_v45 = vld [vmem:[%s7220_s24 + $0x70] sm:$0xff]   ;;  %v5839_v47 = vld [vmem:[%s7220_s24 + $0x78] sm:$0xff]  }
 0x139   : > { %5478 = vmatprep.subr.bf16.mxu1 %v5801_v9 }
 0x13b   : > { %5431 = vmatpush3.bf16.msra.mxu0 %v5800_v8 }
 0x13c   : > { %5479 = vmatpush3.bf16.msra.mxu1 %v5801_v9  ;;  %5432 = vmatprep.subr.bf16.mxu0 %v5802_v10 }
 0x13d   : > { %5480 = vmatprep.subr.bf16.mxu1 %v5803_v11 }
 0x13f   : > { %5433 = vmatpush3.bf16.msra.mxu0 %v5802_v10 }
 0x140   : > { %5481 = vmatpush3.bf16.msra.mxu1 %v5803_v11  ;;  %5434 = vmatprep.subr.bf16.mxu0 %v5804_v14 }
 0x141   : > { %5482 = vmatprep.subr.bf16.mxu1 %v5805_v15 }
 0x143   : > { %5435 = vmatpush3.bf16.msra.mxu0 %v5804_v14 }
 0x144   : > { %5483 = vmatpush3.bf16.msra.mxu1 %v5805_v15  ;;  %5436 = vmatprep.subr.bf16.mxu0 %v5806_v16 }
 0x145   : > { %5484 = vmatprep.subr.bf16.mxu1 %v5807_v17 }
 0x147   : > { %5437 = vmatpush3.bf16.msra.mxu0 %v5806_v16 }
 0x148   : > { %5485 = vmatpush3.bf16.msra.mxu1 %v5807_v17 }
 0x14a   : > { %5439 = vmatmul.mubr.bf16.vlgmr.msra.gmra.mrb[0].mxu0 %v5810_v18 }
 0x14b   : > { %5487 = vmatmul.mubr.bf16.vlgmr.msra.gmra.mrb[0].mxu1 %v5811_v19  ;;  %5442 = vmatprep.mubr.bf16.mxu0 %v5812_v20 }
 0x14c   : > { %5490 = vmatprep.mubr.bf16.mxu1 %v5813_v21 }
 0x152   : > { %5443 = vmatmul.mubr.bf16.gmra.mrb[4].mxu0 %v5814_v22 }
 0x153   : > { %5491 = vmatmul.mubr.bf16.gmra.mrb[4].mxu1 %v5815_v23  ;;  %5446 = vmatprep.mubr.bf16.mxu0 %v5816_v24 }
 0x154   : > { %5494 = vmatprep.mubr.bf16.mxu1 %v5817_v25 }
 0x15a   : > { %5447 = vmatmul.mubr.bf16.gmra.mrb[8].mxu0 %v5818_v26 }
 0x15b   : > { %5495 = vmatmul.mubr.bf16.gmra.mrb[8].mxu1 %v5819_v27  ;;  %5450 = vmatprep.mubr.bf16.mxu0 %v5820_v28 }
 0x15c   : > { %5498 = vmatprep.mubr.bf16.mxu1 %v5821_v29 }
 0x162   : > { %5451 = vmatmul.mubr.bf16.gmra.mrb[12].mxu0 %v5822_v30 }
 0x163   : > { %5499 = vmatmul.mubr.bf16.gmra.mrb[12].mxu1 %v5823_v31  ;;  %5454 = vmatprep.mubr.bf16.mxu0 %v5824_v32 }
 0x164   : > { %5502 = vmatprep.mubr.bf16.mxu1 %v5825_v33 }
 0x16a   : > { %5455 = vmatmul.mubr.bf16.gmra.mrb[16].mxu0 %v5826_v34 }
 0x16b   : > { %5503 = vmatmul.mubr.bf16.gmra.mrb[16].mxu1 %v5827_v35  ;;  %5458 = vmatprep.mubr.bf16.mxu0 %v5828_v36 }
 0x16c   : > { %5506 = vmatprep.mubr.bf16.mxu1 %v5829_v37 }
 0x172   : > { %5459 = vmatmul.mubr.bf16.gmra.mrb[20].mxu0 %v5830_v38 }
 0x173   : > { %5507 = vmatmul.mubr.bf16.gmra.mrb[20].mxu1 %v5831_v39  ;;  %5462 = vmatprep.mubr.bf16.mxu0 %v5832_v40 }
 0x174   : > { %5510 = vmatprep.mubr.bf16.mxu1 %v5833_v41 }
 0x17a   : > { %5463 = vmatmul.mubr.bf16.gmra.mrb[24].mxu0 %v5834_v42 }
 0x17b   : > { %5511 = vmatmul.mubr.bf16.gmra.mrb[24].mxu1 %v5835_v43  ;;  %5466 = vmatprep.mubr.bf16.mxu0 %v5836_v44 }
 0x17c   : > { %5514 = vmatprep.mubr.bf16.mxu1 %v5837_v45 }
 0x182   : > { %5467 = vmatmul.mubr.bf16.gmra.mrb[28].mxu0 %v5838_v46 }
 0x183   : > { %5515 = vmatmul.mubr.bf16.gmra.mrb[28].mxu1 %v5839_v47 }
 0x21d   : > { %v5440_v48 = vpop.f32.mrb[0].mxu0 }
 0x21e   : > { %v5488_v49 = vpop.f32.mrb[0].mxu1  ;;  %v769_v50 = vpop.f32.mrb[1].mxu0 }
 0x21f   : > { %v1122_v51 = vpop.f32.mrb[1].mxu1  ;;  %v5441_v52 = vpop.f32.mrb[2].mxu0 }
 0x220   : > { %v897_v53 = vpack.c.bf16 %v5441_v52, %v5440_v48  ;;  %v5489_v54 = vpop.f32.mrb[2].mxu1  ;;  %v772_v55 = vpop.f32.mrb[3].mxu0 }
 0x221   : > { %v1250_v56 = vpack.c.bf16 %v5489_v54, %v5488_v49  ;;  %v896_v57 = vpack.c.bf16 %v772_v55, %v769_v50  ;;  %v1125_v58 = vpop.f32.mrb[3].mxu1 }
 0x222   : > { %913 = vst [vmem:[#allocation2 + $0x8] sm:$0xff] %v897_v53  ;;  %v1249_v59 = vpack.c.bf16 %v1125_v58, %v1122_v51 }
 0x223   : > { %1266 = vst [vmem:[#allocation3 + $0x8] sm:$0xff] %v1250_v56  ;;  %912 = vst [vmem:[#allocation2] sm:$0xff] %v896_v57 }
 0x224   : > { %1265 = vst [vmem:[#allocation3] sm:$0xff] %v1249_v59 }
 0x225   : > { %v5444_v60 = vpop.f32.mrb[4].mxu0 }
 0x226   : > { %v5492_v61 = vpop.f32.mrb[4].mxu1  ;;  %v785_v62 = vpop.f32.mrb[5].mxu0 }
 0x227   : > { %v1138_v63 = vpop.f32.mrb[5].mxu1  ;;  %v5445_v0 = vpop.f32.mrb[6].mxu0 }
 0x228   : > { %v899_v1 = vpack.c.bf16 %v5445_v0, %v5444_v60  ;;  %v5493_v2 = vpop.f32.mrb[6].mxu1  ;;  %v788_v3 = vpop.f32.mrb[7].mxu0 }
 0x229   : > { %v1252_v4 = vpack.c.bf16 %v5493_v2, %v5492_v61  ;;  %v898_v5 = vpack.c.bf16 %v788_v3, %v785_v62  ;;  %v1141_v6 = vpop.f32.mrb[7].mxu1 }
 0x22a   : > { %915 = vst [vmem:[#allocation2 + $0x18] sm:$0xff] %v899_v1  ;;  %v1251_v7 = vpack.c.bf16 %v1141_v6, %v1138_v63 }
 0x22b   : > { %1268 = vst [vmem:[#allocation3 + $0x18] sm:$0xff] %v1252_v4  ;;  %914 = vst [vmem:[#allocation2 + $0x10] sm:$0xff] %v898_v5 }
 0x22c   : > { %1267 = vst [vmem:[#allocation3 + $0x10] sm:$0xff] %v1251_v7 }
 0x22d   : > { %v5448_v8 = vpop.f32.mrb[8].mxu0 }
 0x22e   : > { %v5496_v9 = vpop.f32.mrb[8].mxu1  ;;  %v801_v10 = vpop.f32.mrb[9].mxu0 }
 0x22f   : > { %v1154_v11 = vpop.f32.mrb[9].mxu1  ;;  %v5449_v12 = vpop.f32.mrb[10].mxu0 }
 0x230   : > { %v901_v13 = vpack.c.bf16 %v5449_v12, %v5448_v8  ;;  %v5497_v14 = vpop.f32.mrb[10].mxu1  ;;  %v804_v15 = vpop.f32.mrb[11].mxu0 }
 0x231   : > { %v1254_v16 = vpack.c.bf16 %v5497_v14, %v5496_v9  ;;  %v900_v17 = vpack.c.bf16 %v804_v15, %v801_v10  ;;  %v1157_v18 = vpop.f32.mrb[11].mxu1 }
 0x232   : > { %917 = vst [vmem:[#allocation2 + $0x28] sm:$0xff] %v901_v13  ;;  %v1253_v19 = vpack.c.bf16 %v1157_v18, %v1154_v11 }
 0x233   : > { %1270 = vst [vmem:[#allocation3 + $0x28] sm:$0xff] %v1254_v16  ;;  %916 = vst [vmem:[#allocation2 + $0x20] sm:$0xff] %v900_v17 }
 0x234   : > { %1269 = vst [vmem:[#allocation3 + $0x20] sm:$0xff] %v1253_v19 }
 0x235   : > { %v5452_v20 = vpop.f32.mrb[12].mxu0 }
 0x236   : > { %v5500_v21 = vpop.f32.mrb[12].mxu1  ;;  %v817_v22 = vpop.f32.mrb[13].mxu0 }
 0x237   : > { %v1170_v23 = vpop.f32.mrb[13].mxu1  ;;  %v5453_v24 = vpop.f32.mrb[14].mxu0 }
 0x238   : > { %v903_v25 = vpack.c.bf16 %v5453_v24, %v5452_v20  ;;  %v5501_v26 = vpop.f32.mrb[14].mxu1  ;;  %v820_v27 = vpop.f32.mrb[15].mxu0 }
 0x239   : > { %v1256_v28 = vpack.c.bf16 %v5501_v26, %v5500_v21  ;;  %v902_v29 = vpack.c.bf16 %v820_v27, %v817_v22  ;;  %v1173_v30 = vpop.f32.mrb[15].mxu1 }
 0x23a   : > { %919 = vst [vmem:[#allocation2 + $0x38] sm:$0xff] %v903_v25  ;;  %v1255_v31 = vpack.c.bf16 %v1173_v30, %v1170_v23 }
 0x23b   : > { %1272 = vst [vmem:[#allocation3 + $0x38] sm:$0xff] %v1256_v28  ;;  %918 = vst [vmem:[#allocation2 + $0x30] sm:$0xff] %v902_v29 }
 0x23c   : > { %1271 = vst [vmem:[#allocation3 + $0x30] sm:$0xff] %v1255_v31 }
 0x23d   : > { %v5456_v32 = vpop.f32.mrb[16].mxu0 }
 0x23e   : > { %v5504_v33 = vpop.f32.mrb[16].mxu1  ;;  %v833_v34 = vpop.f32.mrb[17].mxu0 }
 0x23f   : > { %v1186_v35 = vpop.f32.mrb[17].mxu1  ;;  %v5457_v36 = vpop.f32.mrb[18].mxu0 }
 0x240   : > { %v905_v37 = vpack.c.bf16 %v5457_v36, %v5456_v32  ;;  %v5505_v38 = vpop.f32.mrb[18].mxu1  ;;  %v836_v39 = vpop.f32.mrb[19].mxu0 }
 0x241   : > { %v1258_v40 = vpack.c.bf16 %v5505_v38, %v5504_v33  ;;  %v904_v41 = vpack.c.bf16 %v836_v39, %v833_v34  ;;  %v1189_v42 = vpop.f32.mrb[19].mxu1 }
 0x242   : > { %921 = vst [vmem:[#allocation2 + $0x48] sm:$0xff] %v905_v37  ;;  %v1257_v43 = vpack.c.bf16 %v1189_v42, %v1186_v35 }
 0x243   : > { %1274 = vst [vmem:[#allocation3 + $0x48] sm:$0xff] %v1258_v40  ;;  %920 = vst [vmem:[#allocation2 + $0x40] sm:$0xff] %v904_v41 }
 0x244   : > { %1273 = vst [vmem:[#allocation3 + $0x40] sm:$0xff] %v1257_v43 }
 0x245   : > { %v5460_v44 = vpop.f32.mrb[20].mxu0 }
 0x246   : > { %v5508_v45 = vpop.f32.mrb[20].mxu1  ;;  %v849_v46 = vpop.f32.mrb[21].mxu0 }
 0x247   : > { %v1202_v47 = vpop.f32.mrb[21].mxu1  ;;  %v5461_v48 = vpop.f32.mrb[22].mxu0 }
 0x248   : > { %v907_v49 = vpack.c.bf16 %v5461_v48, %v5460_v44  ;;  %v5509_v50 = vpop.f32.mrb[22].mxu1  ;;  %v852_v51 = vpop.f32.mrb[23].mxu0 }
 0x249   : > { %v1260_v52 = vpack.c.bf16 %v5509_v50, %v5508_v45  ;;  %v906_v53 = vpack.c.bf16 %v852_v51, %v849_v46  ;;  %v1205_v54 = vpop.f32.mrb[23].mxu1 }
 0x24a   : > { %923 = vst [vmem:[#allocation2 + $0x58] sm:$0xff] %v907_v49  ;;  %v1259_v55 = vpack.c.bf16 %v1205_v54, %v1202_v47 }
 0x24b   : > { %1276 = vst [vmem:[#allocation3 + $0x58] sm:$0xff] %v1260_v52  ;;  %922 = vst [vmem:[#allocation2 + $0x50] sm:$0xff] %v906_v53 }
 0x24c   : > { %1275 = vst [vmem:[#allocation3 + $0x50] sm:$0xff] %v1259_v55 }
 0x24d   : > { %v5464_v56 = vpop.f32.mrb[24].mxu0 }
 0x24e   : > { %v5512_v57 = vpop.f32.mrb[24].mxu1  ;;  %v865_v58 = vpop.f32.mrb[25].mxu0 }
 0x24f   : > { %v1218_v59 = vpop.f32.mrb[25].mxu1  ;;  %v5465_v60 = vpop.f32.mrb[26].mxu0 }
 0x250   : > { %v909_v61 = vpack.c.bf16 %v5465_v60, %v5464_v56  ;;  %v5513_v62 = vpop.f32.mrb[26].mxu1  ;;  %v868_v63 = vpop.f32.mrb[27].mxu0 }
 0x251   : > { %v1262_v0 = vpack.c.bf16 %v5513_v62, %v5512_v57  ;;  %v908_v1 = vpack.c.bf16 %v868_v63, %v865_v58  ;;  %v1221_v2 = vpop.f32.mrb[27].mxu1 }
 0x252   : > { %925 = vst [vmem:[#allocation2 + $0x68] sm:$0xff] %v909_v61  ;;  %v1261_v3 = vpack.c.bf16 %v1221_v2, %v1218_v59 }
 0x253   : > { %1278 = vst [vmem:[#allocation3 + $0x68] sm:$0xff] %v1262_v0  ;;  %924 = vst [vmem:[#allocation2 + $0x60] sm:$0xff] %v908_v1 }
 0x254   : > { %1277 = vst [vmem:[#allocation3 + $0x60] sm:$0xff] %v1261_v3 }
 0x255   : > { %v5468_v4 = vpop.f32.mrb[28].mxu0 }
 0x256   : > { %v5516_v5 = vpop.f32.mrb[28].mxu1  ;;  %v881_v6 = vpop.f32.mrb[29].mxu0 }
 0x257   : > { %v1234_v7 = vpop.f32.mrb[29].mxu1  ;;  %v5469_v8 = vpop.f32.mrb[30].mxu0 }
 0x258   : > { %v911_v9 = vpack.c.bf16 %v5469_v8, %v5468_v4  ;;  %v5517_v10 = vpop.f32.mrb[30].mxu1  ;;  %v884_v11 = vpop.f32.mrb[31].mxu0 }
 0x259   : > { %v1264_v12 = vpack.c.bf16 %v5517_v10, %v5516_v5  ;;  %v910_v13 = vpack.c.bf16 %v884_v11, %v881_v6  ;;  %v1237_v14 = vpop.f32.mrb[31].mxu1 }
 0x25a   : > { %927 = vst [vmem:[#allocation2 + $0x78] sm:$0xff] %v911_v9  ;;  %v1263_v15 = vpack.c.bf16 %v1237_v14, %v1234_v7 }
 0x25b   : > { %1280 = vst [vmem:[#allocation3 + $0x78] sm:$0xff] %v1264_v12  ;;  %926 = vst [vmem:[#allocation2 + $0x70] sm:$0xff] %v910_v13 }
 0x25c   : > { %1279 = vst [vmem:[#allocation3 + $0x70] sm:$0xff] %v1263_v15 }
 0x25d PF: > { %v5960_v16 = vld [vmem:[#allocation10] sm:$0xff]   ;;  %v5961_v17 = vld [vmem:[#allocation10 + $0x8] sm:$0xff]   ;;  %v5962_v18 = vld [vmem:[#allocation10 + $0x10] sm:$0xff]   ;;  %vm1506_vm0 = vcmask 261120   ;;  %s6777_s25 = smov 96   ;;  %s6778_s8 = smov 64  }
 0x25e   : > { %5518 = vmatprep.subr.bf16.mxu0 %v5960_v16  ;;  %v5963_v19 = vld [vmem:[#allocation10 + $0x18] sm:$0xff]   ;;  %v7265_v20 = vld [vmem:[#allocation2 + $0x40] sm:$0xff]  ;;  %v7271_v22 = vld [vmem:[#allocation2 + $0x48] sm:$0xff]  ;;  %s6779_s15 = smov 32   ;;  %vm4195_vm1 = vcmask 523264   ;;  %vm4212_vm2 = vcmask 785408  }
 0x25f   : > { %5519 = vmatpush3.bf16.msra.mxu0 %v5960_v16  ;;  %5598 = vmatprep.subr.msk.bf16.mxu1 %vm1506_vm0, %v7265_v20  ;;  %v7269_v21 = vld [vmem:[#allocation2] sm:$0xff]  ;;  %v7275_v25 = vld [vmem:[#allocation2 + $0x8] sm:$0xff]  ;;  %v7281_v28 = vld [vmem:[#allocation2 + $0x50] sm:$0xff]  ;;  %s10014_s30 = sld [smem:[#allocation136_spill]]  ;;  %s10016_s21 = sld [smem:[#allocation24_spill]] }
 0x260   : > { %5520 = vmatprep.subr.bf16.mxu0 %v5961_v17  ;;  %v5964_v23 = vld [vmem:[#allocation10 + $0x20] sm:$0xff]   ;;  %v1532_v24 = vsel %vm1506_vm0, %v7269_v21, 0  ;;  %v5965_v26 = vld [vmem:[#allocation10 + $0x28] sm:$0xff]   ;;  %v1535_v27 = vsel %vm1506_vm0, %v7275_v25, 0  ;;  %v5966_v29 = vld [vmem:[#allocation10 + $0x30] sm:$0xff]   ;;  %2085 = vrot.lane.b32.xlu0 %v7269_v21, %s6777_s25  ;;  %s10017_s27 = sld [smem:[#allocation25_spill]] }
 0x261   : > { %5023 = vmatpush3.bf16.xpose.msra.mxu1 %v1532_v24  ;;  %v7285_v30 = vld [vmem:[#allocation2 + $0x10] sm:$0xff]  ;;  %v5967_v31 = vld [vmem:[#allocation10 + $0x38] sm:$0xff]   ;;  %v7301_v41 = vld [vmem:[#allocation2 + $0x60] sm:$0xff]  ;;  %2101 = vrot.lane.b32.xlu1 %v7265_v20, %s6777_s25  ;;  %s10018_s26 = sld [smem:[#allocation30_spill]]  ;;  %s4653_s1 = sshll.u32 %s7230_s16, 4  ;;  %s9434_s1 = int_to_ptr.vmem [resolvable:$true] %s4653_s1 }
 0x262   : > { %5599 = vmatprep.subr.msk.bf16.mxu1 %vm1506_vm0, %v7271_v22  ;;  %v1538_v32 = vsel %vm1506_vm0, %v7285_v30, 0  ;;  %v1283_v33 = vld [vmem:[%s7206_s28 + $0x10] sm:$0xff]  ;;  %v1284_v34 = vld [vmem:[%s7206_s28 + $0x18] sm:$0xff]  ;;  %9711 = vst [vmem:[#allocation33_spill] sm:$0xff] %v7301_v41  ;;  %v7305_v43 = vld [vmem:[#allocation2 + $0x20] sm:$0xff]  ;;  %s6630_s7 = scalar_lea.vmem %s9434_s1, 2048 }
 0x263   : > { %5521 = vmatpush3.bf16.msra.mxu0 %v5961_v17  ;;  %v7291_v35 = vld [vmem:[#allocation2 + $0x58] sm:$0xff]  ;;  %v1298_v36 = vpack.c.bf16 %v1284_v34, %v1283_v33  ;;  %v1287_v39 = vld [vmem:[%s7206_s28 + $0x30] sm:$0xff]  ;;  %v1544_v44 = vsel %vm1506_vm0, %v7305_v43, 0  ;;  %v7311_v47 = vld [vmem:[#allocation2 + $0x68] sm:$0xff]  ;;  %p6631_p3 = scmp.ne.s32.totalorder %s9434_s1, %s6630_s7  ;;  %s6780_s12 = smov [#allocation16]  }
 0x264   : > { %5522 = vmatprep.subr.bf16.mxu0 %v5962_v18  ;;  %v7295_v37 = vld [vmem:[#allocation2 + $0x18] sm:$0xff]  ;;  %v1291_v45 = vld [vmem:[%s7206_s28 + $0x50] sm:$0xff]  ;;  %v7315_v49 = vld [vmem:[#allocation2 + $0x28] sm:$0xff]  ;;  %2087 = vrot.lane.b32.xlu0 %v7275_v25, %s6777_s25 }
 0x265   : > { %v1541_v38 = vsel %vm1506_vm0, %v7295_v37, 0  ;;  %v1288_v40 = vld [vmem:[%s7206_s28 + $0x38] sm:$0xff]  ;;  %9712 = vst [vmem:[#allocation34_spill] sm:$0xff] %v7315_v49  ;;  %v1547_v50 = vsel %vm1506_vm0, %v7315_v49, 0  ;;  %v1295_v51 = vld [vmem:[%s7206_s28 + $0x70] sm:$0xff]  ;;  %2103 = vrot.lane.b32.xlu1 %v7271_v22, %s6777_s25  ;;  %v7403_v24 = vld [vmem:[#allocation3] sm:$0xff] }
 0x266   : > { %v1300_v42 = vpack.c.bf16 %v1288_v40, %v1287_v39  ;;  %v1292_v46 = vld [vmem:[%s7206_s28 + $0x58] sm:$0xff]  ;;  %v7321_v53 = vld [vmem:[#allocation2 + $0x70] sm:$0xff]  ;;  %9717 = vst [vmem:[#allocation39_spill] sm:$0xff] %v7403_v24  ;;  %v7424_v34 = vld [vmem:[#allocation3 + $0x60] sm:$0xff]  ;;  %s4951_s23 = sshll.u32 %s10016_s21, 4  ;;  %s4952_s3 = sshll.u32 %s10017_s27, 5 }
 0x267   : > { %5523 = vmatpush3.bf16.msra.mxu0 %v5962_v18  ;;  %v1302_v48 = vpack.c.bf16 %v1292_v46, %v1291_v45  ;;  %v1296_v52 = vld [vmem:[%s7206_s28 + $0x78] sm:$0xff]  ;;  %v7325_v55 = vld [vmem:[#allocation2 + $0x30] sm:$0xff]  ;;  %9724 = vst [vmem:[#allocation46_spill] sm:$0xff] %v7424_v34  ;;  %v7434_v39 = vld [vmem:[#allocation3 + $0x28] sm:$0xff]  ;;  %s4650_s9 = sadd.s32 %s4952_s3, %s4951_s23  ;;  %p10020_p1 = scmp.ne.s32.totalorder %s10018_s26, 0 }
 0x268   : > { %5524 = vmatprep.subr.bf16.mxu0 %v5963_v19  ;;  %v1304_v54 = vpack.c.bf16 %v1296_v52, %v1295_v51  ;;  %v1550_v56 = vsel %vm1506_vm0, %v7325_v55, 0  ;;  %v7329_v57 = vld [vmem:[#allocation2 + $0x78] sm:$0xff]  ;;  %2089 = vrot.lane.b32.xlu0 %v7285_v30, %s6777_s25  ;;  %9727 = vst [vmem:[#allocation49_spill] sm:$0xff] %v7434_v39  ;;  %v7436_v40 = vld [vmem:[#allocation3 + $0x70] sm:$0xff]  ;;  %s4953_s5 = sshll.u32 %s4650_s9, 7 }
 0x269   : > { %5025 = vmatpush3.bf16.xpose.msra.mxu1 %v1535_v27  ;;  %v7333_v58 = vld [vmem:[#allocation2 + $0x38] sm:$0xff]  ;;  %2105 = vrot.lane.b32.xlu1 %v7281_v28, %s6777_s25  ;;  %v7410_v27 = vld [vmem:[#allocation3 + $0x8] sm:$0xff]  ;;  %9728 = vst [vmem:[#allocation50_spill] sm:$0xff] %v7436_v40  ;;  %p6632_p4 = pnand %p6631_p3, %p10020_p1 }
 0x26a   : > { %5600 = vmatprep.subr.msk.bf16.mxu1 %vm1506_vm0, %v7281_v28  ;;  %v1553_v59 = vsel %vm1506_vm0, %v7333_v58, 0  ;;  %9719 = vst [vmem:[#allocation41_spill] sm:$0xff] %v7410_v27  ;;  %v7422_v33 = vld [vmem:[#allocation3 + $0x18] sm:$0xff] }
 0x26b   : > { %5525 = vmatpush3.bf16.msra.mxu0 %v5963_v19  ;;  %9723 = vst [vmem:[#allocation45_spill] sm:$0xff] %v7422_v33  ;;  %v7446_v45 = vld [vmem:[#allocation3 + $0x38] sm:$0xff]  ;;  %p6633_p13 = pneg %p6632_p4 }
 0x26c   : > { %5526 = vmatprep.subr.bf16.mxu0 %v5964_v23  ;;  %2091 = vrot.lane.b32.xlu0 %v7295_v37, %s6777_s25  ;;  %9731 = vst [vmem:[#allocation53_spill] sm:$0xff] %v7446_v45 }
 0x26d   : > { %2107 = vrot.lane.b32.xlu1 %v7291_v35, %s6777_s25 }
 0x26f   : > { %5527 = vmatpush3.bf16.msra.mxu0 %v5964_v23  ;;  %v7401_v23 = vld [vmem:[#allocation3 + $0x40] sm:$0xff] }
 0x270   : > { %5528 = vmatprep.subr.bf16.mxu0 %v5965_v26  ;;  %9716 = vst [vmem:[#allocation38_spill] sm:$0xff] %v7401_v23 }
 0x271   : > { %5027 = vmatpush3.bf16.xpose.msra.mxu1 %v1538_v32  ;;  %v7418_v32 = vld [vmem:[#allocation3 + $0x58] sm:$0xff] }
 0x272   : > { %5601 = vmatprep.subr.msk.bf16.mxu1 %vm1506_vm0, %v7291_v35  ;;  %9722 = vst [vmem:[#allocation44_spill] sm:$0xff] %v7418_v32 }
 0x273   : > { %5529 = vmatpush3.bf16.msra.mxu0 %v5965_v26  ;;  %v7405_v26 = vld [vmem:[#allocation3 + $0x48] sm:$0xff] }
 0x274   : > { %5530 = vmatprep.subr.bf16.mxu0 %v5966_v29  ;;  %9718 = vst [vmem:[#allocation40_spill] sm:$0xff] %v7405_v26 }
 0x277   : > { %5531 = vmatpush3.bf16.msra.mxu0 %v5966_v29  ;;  %v7412_v29 = vld [vmem:[#allocation3 + $0x50] sm:$0xff] }
 0x278   : > { %5532 = vmatprep.subr.bf16.mxu0 %v5967_v31  ;;  %9720 = vst [vmem:[#allocation42_spill] sm:$0xff] %v7412_v29 }
 0x279   : > { %5029 = vmatpush3.bf16.xpose.msra.mxu1 %v1541_v38  ;;  %v7430_v38 = vld [vmem:[#allocation3 + $0x68] sm:$0xff] }
 0x27a   : > { %5602 = vmatprep.subr.msk.bf16.mxu1 %vm1506_vm0, %v7301_v41  ;;  %9726 = vst [vmem:[#allocation48_spill] sm:$0xff] %v7430_v38 }
 0x27b   : > { %5533 = vmatpush3.bf16.msra.mxu0 %v5967_v31  ;;  %v7416_v31 = vld [vmem:[#allocation3 + $0x10] sm:$0xff] }
 0x27c   : > { %5054 = vmatprep.subr.bf16.mxu0 %v7401_v23  ;;  %9721 = vst [vmem:[#allocation43_spill] sm:$0xff] %v7416_v31 }
 0x27e   : > { %5535 = vmatmul.mubr.bf16.vlgmr.msra.gmra.mrb[0].mxu0 %v1298_v36  ;;  %v7428_v36 = vld [vmem:[#allocation3 + $0x20] sm:$0xff] }
 0x27f   : > { %5055 = vmatpush3.bf16.msra.mxu0 %v7403_v24  ;;  %9725 = vst [vmem:[#allocation47_spill] sm:$0xff] %v7428_v36 }
 0x280   : > { %5056 = vmatprep.subr.bf16.mxu0 %v7405_v26 }
 0x281   : > { %5031 = vmatpush3.bf16.xpose.msra.mxu1 %v1544_v44  ;;  %v7442_v44 = vld [vmem:[#allocation3 + $0x78] sm:$0xff] }
 0x282   : > { %5603 = vmatprep.subr.msk.bf16.mxu1 %vm1506_vm0, %v7311_v47  ;;  %9730 = vst [vmem:[#allocation52_spill] sm:$0xff] %v7442_v44 }
 0x283   : > { %5057 = vmatpush3.bf16.msra.mxu0 %v7410_v27 }
 0x284   : > { %5058 = vmatprep.subr.bf16.mxu0 %v7412_v29 }
 0x286   : > { %5539 = vmatmul.mubr.bf16.gmra.mrb[4].mxu0 %v1300_v42  ;;  %v7440_v42 = vld [vmem:[#allocation3 + $0x30] sm:$0xff] }
 0x287   : > { %5059 = vmatpush3.bf16.msra.mxu0 %v7416_v31  ;;  %9729 = vst [vmem:[#allocation51_spill] sm:$0xff] %v7440_v42 }
 0x288   : > { %5060 = vmatprep.subr.bf16.mxu0 %v7418_v32 }
 0x289   : > { %5033 = vmatpush3.bf16.xpose.msra.mxu1 %v1547_v50 }
 0x28a   : > { %5604 = vmatprep.subr.msk.bf16.mxu1 %vm1506_vm0, %v7321_v53 }
 0x28b   : > { %5061 = vmatpush3.bf16.msra.mxu0 %v7422_v33 }
 0x28c   : > { %5062 = vmatprep.subr.bf16.mxu0 %v7424_v34 }
 0x28e   : > { %5543 = vmatmul.mubr.bf16.gmra.mrb[8].mxu0 %v1302_v48 }
 0x28f   : > { %5063 = vmatpush3.bf16.msra.mxu0 %v7428_v36 }
 0x290   : > { %5064 = vmatprep.subr.bf16.mxu0 %v7430_v38 }
 0x291   : > { %5035 = vmatpush3.bf16.xpose.msra.mxu1 %v1550_v56 }
 0x292   : > { %5605 = vmatprep.subr.msk.bf16.mxu1 %vm1506_vm0, %v7329_v57 }
 0x293   : > { %5065 = vmatpush3.bf16.msra.mxu0 %v7434_v39 }
 0x294   : > { %5066 = vmatprep.subr.bf16.mxu0 %v7436_v40 }
 0x296   : > { %5547 = vmatmul.mubr.bf16.gmra.mrb[12].mxu0 %v1304_v54 }
 0x297   : > { %5067 = vmatpush3.bf16.msra.mxu0 %v7440_v42 }
 0x298   : > { %5068 = vmatprep.subr.bf16.mxu0 %v7442_v44 }
 0x299   : > { %5037 = vmatpush3.bf16.xpose.msra.mxu1 %v1553_v59 }
 0x29b   : > { %5069 = vmatpush3.bf16.msra.mxu0 %v7446_v45 }
 0x2d3   : > { %v2102_v46 = vpop.permute.xlu1 %2101 }
 0x2d4   : > { %5606 = vmatprep.subr.msk.bf16.mxu0 %vm1506_vm0, %v2102_v46 }
 0x2d7   : > { %v7560_v31 = vpop.permute.xlu1 %2103 }
 0x2d8   : > { %9735 = vst [vmem:[#allocation57_spill] sm:$0xff] %v7560_v31 }
 0x2db   : > { %v7564_v27 = vpop.permute.xlu1 %2105 }
 0x2dc   : > { %9737 = vst [vmem:[#allocation59_spill] sm:$0xff] %v7564_v27 }
 0x351   : > { %v5536_v60 = vpop.f32.mrb[0].mxu0 }
 0x352   : > { %v1403_v61 = vpop.f32.mrb[1].mxu0 }
 0x353   : > { %v5537_v62 = vpop.f32.mrb[2].mxu0 }
 0x354   : > { %v7353_v63 = vpack.c.bf16 %v5537_v62, %v5536_v60  ;;  %v1406_v0 = vpop.f32.mrb[3].mxu0 }
 0x355   : > { %v7355_v1 = vpack.c.bf16 %v1406_v0, %v1403_v61 }
 0x357   : > { %5038 = vmatprep.mubr.msk.bf16.mxu1 %vm1506_vm0, %v7355_v1 }
 0x358   : > { %5039 = vmatmul.mubr.msk.bf16.vlgmr.msra.gmra.mrb[0].mxu1 %vm1506_vm0, %v7355_v1 }
 0x359   : > { %5040 = vmatprep.mubr.msk.bf16.mxu1 %vm1506_vm0, %v7353_v63  ;;  %v5540_v2 = vpop.f32.mrb[4].mxu0 }
 0x35a   : > { %v1419_v3 = vpop.f32.mrb[5].mxu0 }
 0x35b   : > { %v5541_v4 = vpop.f32.mrb[6].mxu0 }
 0x35c   : > { %v7363_v5 = vpack.c.bf16 %v5541_v4, %v5540_v2  ;;  %v1422_v6 = vpop.f32.mrb[7].mxu0 }
 0x35d   : > { %v7365_v7 = vpack.c.bf16 %v1422_v6, %v1419_v3 }
 0x360   : > { %5041 = vmatmul.mubr.msk.bf16.gmra.mrb[4].mxu1 %vm1506_vm0, %v7353_v63 }
 0x361   : > { %5042 = vmatprep.mubr.msk.bf16.mxu1 %vm1506_vm0, %v7365_v7  ;;  %v5544_v8 = vpop.f32.mrb[8].mxu0 }
 0x362   : > { %v1435_v9 = vpop.f32.mrb[9].mxu0 }
 0x363   : > { %v5545_v10 = vpop.f32.mrb[10].mxu0 }
 0x364   : > { %v7371_v11 = vpack.c.bf16 %v5545_v10, %v5544_v8  ;;  %v1438_v12 = vpop.f32.mrb[11].mxu0 }
 0x365   : > { %v7373_v13 = vpack.c.bf16 %v1438_v12, %v1435_v9 }
 0x367   : > { %9713 = vst [vmem:[#allocation35_spill] sm:$0xff] %v7373_v13 }
 0x368   : > { %5043 = vmatmul.mubr.msk.bf16.gmra.mrb[8].mxu1 %vm1506_vm0, %v7365_v7 }
 0x369   : > { %5044 = vmatprep.mubr.msk.bf16.mxu1 %vm1506_vm0, %v7363_v5  ;;  %v5548_v14 = vpop.f32.mrb[12].mxu0 }
 0x36a   : > { %v1451_v15 = vpop.f32.mrb[13].mxu0 }
 0x36b   : > { %v5549_v16 = vpop.f32.mrb[14].mxu0 }
 0x36c   : > { %v7379_v17 = vpack.c.bf16 %v5549_v16, %v5548_v14  ;;  %v1454_v18 = vpop.f32.mrb[15].mxu0 }
 0x36d   : > { %v7381_v19 = vpack.c.bf16 %v1454_v18, %v1451_v15 }
 0x36e   : > { %9714 = vst [vmem:[#allocation36_spill] sm:$0xff] %v7379_v17 }
 0x36f   : > { %9715 = vst [vmem:[#allocation37_spill] sm:$0xff] %v7381_v19 }
 0x370   : > { %5045 = vmatmul.mubr.msk.bf16.gmra.mrb[12].mxu1 %vm1506_vm0, %v7363_v5 }
 0x371   : > { %5046 = vmatprep.mubr.msk.bf16.mxu1 %vm1506_vm0, %v7373_v13 }
 0x378   : > { %5047 = vmatmul.mubr.msk.bf16.gmra.mrb[16].mxu1 %vm1506_vm0, %v7373_v13 }
 0x379   : > { %5048 = vmatprep.mubr.msk.bf16.mxu1 %vm1506_vm0, %v7371_v11 }
 0x380   : > { %5049 = vmatmul.mubr.msk.bf16.gmra.mrb[20].mxu1 %vm1506_vm0, %v7371_v11 }
 0x381   : > { %5050 = vmatprep.mubr.msk.bf16.mxu1 %vm1506_vm0, %v7381_v19 }
 0x388   : > { %5051 = vmatmul.mubr.msk.bf16.gmra.mrb[24].mxu1 %vm1506_vm0, %v7381_v19 }
 0x389   : > { %5052 = vmatprep.mubr.msk.bf16.mxu1 %vm1506_vm0, %v7379_v17 }
 0x390   : > { %5053 = vmatmul.mubr.msk.bf16.gmra.mrb[28].mxu1 %vm1506_vm0, %v7379_v17 }
 0x42b   : > { %v7450_v48 = vpop.f32.mrb[0].mxu1 }
 0x42c   : > { %v7452_v50 = vpop.f32.mrb[1].mxu1 }
 0x42d   : > { %v7454_v51 = vpop.f32.mrb[2].mxu1  ;;  %v1692_v52 = vmax.f32 %v7450_v48, %v7452_v50 }
 0x42e   : > { %v7458_v54 = vpop.f32.mrb[3].mxu1 }
 0x42f   : > { %1693 = vmax.xlane.f32.xlu0 %v1692_v52  ;;  %v1695_v56 = vmax.f32 %v7454_v51, %v7458_v54 }
 0x433   : > { %1696 = vmax.xlane.f32.xlu0 %v1695_v56  ;;  %v7462_v59 = vpop.f32.mrb[4].mxu1 }
 0x434   : > { %v7464_v60 = vpop.f32.mrb[5].mxu1 }
 0x435   : > { %v7466_v61 = vpop.f32.mrb[6].mxu1  ;;  %v1698_v62 = vmax.f32 %v7462_v59, %v7464_v60 }
 0x436   : > { %v7470_v0 = vpop.f32.mrb[7].mxu1 }
 0x437   : > { %1699 = vmax.xlane.f32.xlu1 %v1698_v62  ;;  %v1701_v2 = vmax.f32 %v7466_v61, %v7470_v0 }
 0x43b   : > { %1702 = vmax.xlane.f32.xlu1 %v1701_v2  ;;  %v7474_v3 = vpop.f32.mrb[8].mxu1 }
 0x43c   : > { %v7476_v4 = vpop.f32.mrb[9].mxu1 }
 0x43d   : > { %v7478_v6 = vpop.f32.mrb[10].mxu1  ;;  %v1704_v8 = vmax.f32 %v7474_v3, %v7476_v4 }
 0x43e   : > { %v7482_v9 = vpop.f32.mrb[11].mxu1 }
 0x43f   : > { %1705 = vmax.xlane.f32.xlu0 %v1704_v8  ;;  %v1707_v10 = vmax.f32 %v7478_v6, %v7482_v9 }
 0x441   : > { %1708 = vmax.xlane.f32.xlu1 %v1707_v10 }
 0x443   : > { %v7486_v12 = vpop.f32.mrb[12].mxu1 }
 0x444   : > { %v7488_v14 = vpop.f32.mrb[13].mxu1 }
 0x445   : > { %v7490_v15 = vpop.f32.mrb[14].mxu1  ;;  %v1710_v16 = vmax.f32 %v7486_v12, %v7488_v14 }
 0x446   : > { %v7494_v18 = vpop.f32.mrb[15].mxu1 }
 0x447   : > { %1711 = vmax.xlane.f32.xlu0 %v1710_v16  ;;  %v1713_v46 = vmax.f32 %v7490_v15, %v7494_v18 }
 0x449   : > { %1714 = vmax.xlane.f32.xlu1 %v1713_v46 }
 0x44b   : > { %v7498_v52 = vpop.f32.mrb[16].mxu1 }
 0x44c   : > { %v7500_v56 = vpop.f32.mrb[17].mxu1 }
 0x44d   : > { %v7502_v62 = vpop.f32.mrb[18].mxu1  ;;  %v1716_v2 = vmax.f32 %v7498_v52, %v7500_v56 }
 0x44e   : > { %v7506_v8 = vpop.f32.mrb[19].mxu1 }
 0x44f   : > { %1717 = vmax.xlane.f32.xlu0 %v1716_v2  ;;  %v1719_v10 = vmax.f32 %v7502_v62, %v7506_v8 }
 0x451   : > { %1720 = vmax.xlane.f32.xlu1 %v1719_v10 }
 0x453   : > { %v7510_v16 = vpop.f32.mrb[20].mxu1 }
 0x454   : > { %v7512_v45 = vpop.f32.mrb[21].mxu1 }
 0x455   : > { %v7514_v46 = vpop.f32.mrb[22].mxu1  ;;  %v1722_v42 = vmax.f32 %v7510_v16, %v7512_v45 }
 0x456   : > { %v7518_v40 = vpop.f32.mrb[23].mxu1 }
 0x457   : > { %1723 = vmax.xlane.f32.xlu0 %v1722_v42  ;;  %v1725_v44 = vmax.f32 %v7514_v46, %v7518_v40 }
 0x459   : > { %1726 = vmax.xlane.f32.xlu1 %v1725_v44 }
 0x45b   : > { %v7522_v2 = vpop.f32.mrb[24].mxu1 }
 0x45c   : > { %v7524_v39 = vpop.f32.mrb[25].mxu1 }
 0x45d   : > { %v7526_v10 = vpop.f32.mrb[26].mxu1  ;;  %v1728_v38 = vmax.f32 %v7522_v2, %v7524_v39 }
 0x45e   : > { %v7530_v36 = vpop.f32.mrb[27].mxu1 }
 0x45f   : > { %1729 = vmax.xlane.f32.xlu0 %v1728_v38  ;;  %v1731_v32 = vmax.f32 %v7526_v10, %v7530_v36 }
 0x461   : > { %1732 = vmax.xlane.f32.xlu1 %v1731_v32  ;;  %v7554_v32 = vpop.permute.xlu0 %2085 }
 0x462   : > { %9732 = vst [vmem:[#allocation54_spill] sm:$0xff] %v7554_v32 }
 0x463   : > { %v7534_v42 = vpop.f32.mrb[28].mxu1 }
 0x464   : > { %v7536_v34 = vpop.f32.mrb[29].mxu1 }
 0x465   : > { %v7538_v44 = vpop.f32.mrb[30].mxu1  ;;  %v1734_v26 = vmax.f32 %v7534_v42, %v7536_v34  ;;  %v7556_v38 = vpop.permute.xlu0 %2087 }
 0x466   : > { %v7542_v33 = vpop.f32.mrb[31].mxu1  ;;  %9733 = vst [vmem:[#allocation55_spill] sm:$0xff] %v7556_v38 }
 0x467   : > { %1735 = vmax.xlane.f32.xlu0 %v1734_v26  ;;  %v1737_v23 = vmax.f32 %v7538_v44, %v7542_v33 }
 0x469   : > { %v7558_v26 = vpop.permute.xlu0 %2089 }
 0x46a   : > { %9734 = vst [vmem:[#allocation56_spill] sm:$0xff] %v7558_v26 }
 0x46d   : > { %v7562_v29 = vpop.permute.xlu0 %2091 }
 0x46e   : > { %9736 = vst [vmem:[#allocation58_spill] sm:$0xff] %v7562_v29 }
 0x472   : > { %2109 = vrot.lane.b32.xlu1 %v7301_v41, %s6777_s25 }
 0x476   : > { %2095 = vrot.lane.b32.xlu1 %v7315_v49, %s6777_s25 }
 0x47a   : > { %2111 = vrot.lane.b32.xlu1 %v7311_v47, %s6777_s25 }
 0x47d   : > { %2093 = vrot.lane.b32.xlu0 %v7305_v43, %s6777_s25 }
 0x49e   : > { %1738 = vmax.xlane.f32.xlu1 %v1737_v23  ;;  %v7568_v23 = vpop.permute.xlu1 %2107 }
 0x4bc   : > { %v1694_v24 = vpop.xlane.xlu0 %1693 }
 0x4bd   : > { %v1740_v19 = vsub.f32 %v7450_v48, %v1694_v24  ;;  %v1741_v49 = vsub.f32 %v7452_v50, %v1694_v24 }
 0x4bf   : > { %v1772_v41 = vmul.f32 1.442695, %v1740_v19  ;;  %v1774_v17 = vmul.f32 1.442695, %v1741_v49 }
 0x4c0   : > { %v1697_v32 = vpop.xlane.xlu0 %1696 }
 0x4c1   : > { %5976 = vpow2.f32 %v1772_v41  ;;  %v1742_v38 = vsub.f32 %v7454_v51, %v1697_v32  ;;  %v1743_v26 = vsub.f32 %v7458_v54, %v1697_v32 }
 0x4c2   : > { %5978 = vpow2.f32 %v1774_v17 }
 0x4c3   : > { %v1776_v31 = vmul.f32 1.442695, %v1742_v38  ;;  %v1778_v29 = vmul.f32 1.442695, %v1743_v26 }
 0x4c4   : > { %v1700_v13 = vpop.xlane.xlu1 %1699 }
 0x4c5   : > { %5980 = vpow2.f32 %v1776_v31  ;;  %v1744_v27 = vsub.f32 %v7462_v59, %v1700_v13  ;;  %v1745_v48 = vsub.f32 %v7464_v60, %v1700_v13 }
 0x4c6   : > { %5982 = vpow2.f32 %v1778_v29 }
 0x4c7   : > { %v1780_v19 = vmul.f32 1.442695, %v1744_v27  ;;  %v1782_v49 = vmul.f32 1.442695, %v1745_v48 }
 0x4c8   : > { %v1703_v24 = vpop.xlane.xlu1 %1702 }
 0x4c9   : > { %5984 = vpow2.f32 %v1780_v19  ;;  %v1746_v41 = vsub.f32 %v7466_v61, %v1703_v24  ;;  %v1747_v50 = vsub.f32 %v7470_v0, %v1703_v24 }
 0x4ca   : > { %5986 = vpow2.f32 %v1782_v49 }
 0x4cb   : > { %v7576_v51 = vpop.eup %5976  ;;  %v1784_v17 = vmul.f32 1.442695, %v1746_v41  ;;  %v1786_v54 = vmul.f32 1.442695, %v1747_v50 }
 0x4cc   : > { %v7578_v32 = vpop.eup %5978  ;;  %v1706_v31 = vpop.xlane.xlu0 %1705 }
 0x4cd   : > { %5988 = vpow2.f32 %v1784_v17  ;;  %v1748_v13 = vsub.f32 %v7474_v3, %v1706_v31  ;;  %v1749_v27 = vsub.f32 %v7476_v4, %v1706_v31  ;;  %v1836_v29 = vadd.f32 %v7578_v32, %v7576_v51 }
 0x4ce   : > { %5990 = vpow2.f32 %v1786_v54  ;;  %v1709_v59 = vpop.xlane.xlu1 %1708 }
 0x4cf   : > { %v7584_v60 = vpop.eup %5980  ;;  %v1788_v61 = vmul.f32 1.442695, %v1748_v13  ;;  %v1790_v0 = vmul.f32 1.442695, %v1749_v27  ;;  %v1750_v38 = vsub.f32 %v7478_v6, %v1709_v59  ;;  %v1751_v26 = vsub.f32 %v7482_v9, %v1709_v59  ;;  %1837 = vadd.xlane.f32.xlu0 %v1836_v29 }
 0x4d0   : > { %v7588_v48 = vpop.eup %5982 }
 0x4d1   : > { %5992 = vpow2.f32 %v1788_v61  ;;  %v1792_v3 = vmul.f32 1.442695, %v1750_v38  ;;  %v1794_v19 = vmul.f32 1.442695, %v1751_v26  ;;  %v1839_v4 = vadd.f32 %v7588_v48, %v7584_v60 }
 0x4d2   : > { %5994 = vpow2.f32 %v1790_v0 }
 0x4d3   : > { %v7592_v49 = vpop.eup %5984  ;;  %5996 = vpow2.f32 %v1792_v3  ;;  %1840 = vadd.xlane.f32.xlu1 %v1839_v4 }
 0x4d4   : > { %v7594_v24 = vpop.eup %5986  ;;  %5998 = vpow2.f32 %v1794_v19  ;;  %v1712_v6 = vpop.xlane.xlu0 %1711 }
 0x4d5   : > { %v1752_v9 = vsub.f32 %v7486_v12, %v1712_v6  ;;  %v1753_v41 = vsub.f32 %v7488_v14, %v1712_v6  ;;  %v1842_v50 = vadd.f32 %v7594_v24, %v7592_v49 }
 0x4d6   : > { %v1715_v17 = vpop.xlane.xlu1 %1714 }
 0x4d7   : > { %v7600_v54 = vpop.eup %5988  ;;  %v1796_v31 = vmul.f32 1.442695, %v1752_v9  ;;  %v1798_v13 = vmul.f32 1.442695, %v1753_v41  ;;  %v1754_v27 = vsub.f32 %v7490_v15, %v1715_v17  ;;  %v1755_v29 = vsub.f32 %v7494_v18, %v1715_v17  ;;  %1843 = vadd.xlane.f32.xlu0 %v1842_v50 }
 0x4d8   : > { %v7604_v59 = vpop.eup %5990 }
 0x4d9   : > { %6000 = vpow2.f32 %v1796_v31  ;;  %v1800_v61 = vmul.f32 1.442695, %v1754_v27  ;;  %v1802_v12 = vmul.f32 1.442695, %v1755_v29  ;;  %v1845_v14 = vadd.f32 %v7604_v59, %v7600_v54 }
 0x4da   : > { %6002 = vpow2.f32 %v1798_v13 }
 0x4db   : > { %v7608_v0 = vpop.eup %5992  ;;  %6004 = vpow2.f32 %v1800_v61  ;;  %1846 = vadd.xlane.f32.xlu1 %v1845_v14 }
 0x4dc   : > { %v7610_v38 = vpop.eup %5994  ;;  %6006 = vpow2.f32 %v1802_v12  ;;  %v1718_v15 = vpop.xlane.xlu0 %1717 }
 0x4dd   : > { %v7612_v26 = vpop.eup %5996  ;;  %v1756_v18 = vsub.f32 %v7498_v52, %v1718_v15  ;;  %v1757_v3 = vsub.f32 %v7500_v56, %v1718_v15  ;;  %v1848_v19 = vadd.f32 %v7610_v38, %v7608_v0 }
 0x4de   : > { %v7618_v4 = vpop.eup %5998  ;;  %v1721_v6 = vpop.xlane.xlu1 %1720 }
 0x4df   : > { %v1804_v9 = vmul.f32 1.442695, %v1756_v18  ;;  %v1806_v41 = vmul.f32 1.442695, %v1757_v3  ;;  %v1758_v50 = vsub.f32 %v7502_v62, %v1721_v6  ;;  %v1759_v17 = vsub.f32 %v7506_v8, %v1721_v6  ;;  %1849 = vadd.xlane.f32.xlu0 %v1848_v19 }
 0x4e0   : > { %v1851_v31 = vadd.f32 %v7618_v4, %v7612_v26 }
 0x4e1   : > { %6008 = vpow2.f32 %v1804_v9  ;;  %v1808_v52 = vmul.f32 1.442695, %v1758_v50  ;;  %v1810_v13 = vmul.f32 1.442695, %v1759_v17 }
 0x4e2   : > { %6010 = vpow2.f32 %v1806_v41  ;;  %1852 = vadd.xlane.f32.xlu1 %v1851_v31 }
 0x4e3   : > { %v7624_v56 = vpop.eup %6000  ;;  %6012 = vpow2.f32 %v1808_v52 }
 0x4e4   : > { %v7626_v27 = vpop.eup %6002  ;;  %6014 = vpow2.f32 %v1810_v13  ;;  %v1724_v29 = vpop.xlane.xlu0 %1723 }
 0x4e5   : > { %v7628_v61 = vpop.eup %6004  ;;  %v1760_v62 = vsub.f32 %v7510_v16, %v1724_v29  ;;  %v1761_v8 = vsub.f32 %v7512_v45, %v1724_v29  ;;  %v1854_v12 = vadd.f32 %v7626_v27, %v7624_v56 }
 0x4e6   : > { %v7634_v14 = vpop.eup %6006  ;;  %v1727_v15 = vpop.xlane.xlu1 %1726 }
 0x4e7   : > { %v1812_v18 = vmul.f32 1.442695, %v1760_v62  ;;  %v1814_v3 = vmul.f32 1.442695, %v1761_v8  ;;  %v1762_v19 = vsub.f32 %v7514_v46, %v1727_v15  ;;  %v1763_v6 = vsub.f32 %v7518_v40, %v1727_v15  ;;  %1855 = vadd.xlane.f32.xlu0 %v1854_v12 }
 0x4e8   : > { %v1857_v9 = vadd.f32 %v7634_v14, %v7628_v61 }
 0x4e9   : > { %6016 = vpow2.f32 %v1812_v18  ;;  %v1816_v16 = vmul.f32 1.442695, %v1762_v19  ;;  %v1818_v41 = vmul.f32 1.442695, %v1763_v6 }
 0x4ea   : > { %6018 = vpow2.f32 %v1814_v3  ;;  %1858 = vadd.xlane.f32.xlu1 %v1857_v9 }
 0x4eb   : > { %v7640_v45 = vpop.eup %6008  ;;  %6020 = vpow2.f32 %v1816_v16 }
 0x4ec   : > { %v7642_v50 = vpop.eup %6010  ;;  %6022 = vpow2.f32 %v1818_v41  ;;  %v1730_v17 = vpop.xlane.xlu0 %1729 }
 0x4ed   : > { %v7644_v31 = vpop.eup %6012  ;;  %v1764_v40 = vsub.f32 %v7522_v2, %v1730_v17  ;;  %v1765_v46 = vsub.f32 %v7524_v39, %v1730_v17  ;;  %v1860_v52 = vadd.f32 %v7642_v50, %v7640_v45 }
 0x4ee   : > { %v7650_v13 = vpop.eup %6014  ;;  %v1733_v29 = vpop.xlane.xlu1 %1732 }
 0x4ef   : > { %v1820_v62 = vmul.f32 1.442695, %v1764_v40  ;;  %v1822_v8 = vmul.f32 1.442695, %v1765_v46  ;;  %v1766_v12 = vsub.f32 %v7526_v10, %v1733_v29  ;;  %v1767_v15 = vsub.f32 %v7530_v36, %v1733_v29  ;;  %1861 = vadd.xlane.f32.xlu1 %v1860_v52 }
 0x4f0   : > { %v1863_v18 = vadd.f32 %v7650_v13, %v7644_v31 }
 0x4f1   : > { %6024 = vpow2.f32 %v1820_v62  ;;  %v1824_v2 = vmul.f32 1.442695, %v1766_v12  ;;  %v1826_v3 = vmul.f32 1.442695, %v1767_v15 }
 0x4f2   : > { %6026 = vpow2.f32 %v1822_v8  ;;  %1864 = vadd.xlane.f32.xlu0 %v1863_v18  ;;  %v7684_v62 = vpop.permute.xlu1 %2109 }
 0x4f3   : > { %v7656_v39 = vpop.eup %6016  ;;  %6028 = vpow2.f32 %v1824_v2 }
 0x4f4   : > { %v7658_v19 = vpop.eup %6018  ;;  %6030 = vpow2.f32 %v1826_v3  ;;  %v1736_v29 = vpop.xlane.xlu0 %1735 }
 0x4f5   : > { %v7660_v6 = vpop.eup %6020  ;;  %v1866_v36 = vadd.f32 %v7658_v19, %v7656_v39  ;;  %v1768_v8 = vsub.f32 %v7534_v42, %v1736_v29  ;;  %v1769_v12 = vsub.f32 %v7536_v34, %v1736_v29 }
 0x4f6   : > { %v7664_v10 = vpop.eup %6022  ;;  %v7688_v2 = vpop.permute.xlu1 %2095 }
 0x4f7   : > { %1867 = vadd.xlane.f32.xlu1 %v1866_v36  ;;  %v1869_v9 = vadd.f32 %v7664_v10, %v7660_v6  ;;  %v1828_v15 = vmul.f32 1.442695, %v1768_v8  ;;  %v1830_v18 = vmul.f32 1.442695, %v1769_v12 }
 0x4f9   : > { %1870 = vadd.xlane.f32.xlu0 %v1869_v9  ;;  %6032 = vpow2.f32 %v1828_v15 }
 0x4fa   : > { %6034 = vpow2.f32 %v1830_v18  ;;  %v7690_v3 = vpop.permute.xlu1 %2111 }
 0x4fb   : > { %v7668_v16 = vpop.eup %6024 }
 0x4fc   : > { %9738 = vst [vmem:[#allocation60_spill] sm:$0xff] %v7668_v16  ;;  %v7670_v41 = vpop.eup %6026 }
 0x4fd   : > { %v7672_v17 = vpop.eup %6028  ;;  %v1872_v40 = vadd.f32 %v7670_v41, %v7668_v16 }
 0x4fe   : > { %9739 = vst [vmem:[#allocation61_spill] sm:$0xff] %v7672_v17  ;;  %v7676_v46 = vpop.eup %6030 }
 0x4ff   : > { %1873 = vadd.xlane.f32.xlu1 %v1872_v40  ;;  %v1875_v52 = vadd.f32 %v7676_v46, %v7672_v17 }
 0x501   : > { %1876 = vadd.xlane.f32.xlu0 %v1875_v52 }
 0x503   : > { %v7694_v52 = vpop.eup %6032 }
 0x504   : > { %v7696_v42 = vpop.eup %6034 }
 0x505   : > { %v1878_v34 = vadd.f32 %v7696_v42, %v7694_v52 }
 0x510   : > { %2113 = vrot.lane.b32.xlu1 %v7321_v53, %s6777_s25 }
 0x517   : > { %2097 = vrot.lane.b32.xlu0 %v7325_v55, %s6777_s25 }
 0x52b   : > { %v1739_v36 = vpop.xlane.xlu1 %1738 }
 0x52c   : > { %v1770_v9 = vsub.f32 %v7538_v44, %v1739_v36  ;;  %v1771_v40 = vsub.f32 %v7542_v33, %v1739_v36  ;;  %v7718_v33 = vpop.permute.xlu0 %2093 }
 0x52e   : > { %v1832_v16 = vmul.f32 1.442695, %v1770_v9  ;;  %v1834_v17 = vmul.f32 1.442695, %v1771_v40 }
 0x530   : > { %6036 = vpow2.f32 %v1832_v16 }
 0x531   : > { %6038 = vpow2.f32 %v1834_v17 }
 0x534   : > { %1879 = vadd.xlane.f32.xlu1 %v1878_v34 }
 0x53a   : > { %v7700_v29 = vpop.eup %6036 }
 0x53b   : > { %v7702_v8 = vpop.eup %6038 }
 0x53c   : > { %v1881_v44 = vadd.f32 %v7702_v8, %v7700_v29 }
 0x53e   : > { %1882 = vadd.xlane.f32.xlu0 %v1881_v44 }
 0x545   : > { %2115 = vrot.lane.b32.xlu1 %v7329_v57, %s6777_s25 }
 0x549   : > { %2735 = vrot.lane.b32.xlu1 %v7269_v21, %s6778_s8 }
 0x54d   : > { %2055 = vrot.lane.b32.xlu1 %v7353_v63, %s6777_s25 }
 0x551   : > { %2753 = vrot.lane.b32.xlu1 %v7271_v22, %s6778_s8 }
 0x554   : > { %2099 = vrot.lane.b32.xlu0 %v7333_v58, %s6777_s25 }
 0x555   : > { %2739 = vrot.lane.b32.xlu1 %v7285_v30, %s6778_s8 }
 0x558   : > { %2053 = vrot.lane.b32.xlu0 %v7355_v1, %s6777_s25 }
 0x559   : > { %2059 = vrot.lane.b32.xlu1 %v7363_v5, %s6777_s25 }
 0x55c   : > { %v1838_v16 = vpop.xlane.xlu0 %1837  ;;  %2751 = vrot.lane.b32.xlu0 %v7265_v20, %s6778_s8 }
 0x55d   : > { %2757 = vrot.lane.b32.xlu1 %v7291_v35, %s6778_s8  ;;  %6040 = vrcp.f32 %v1838_v16 }
 0x560   : > { %2737 = vrot.lane.b32.xlu0 %v7275_v25, %s6778_s8  ;;  %v1841_v17 = vpop.xlane.xlu1 %1840 }
 0x561   : > { %6042 = vrcp.f32 %v1841_v17  ;;  %2743 = vrot.lane.b32.xlu1 %v7305_v43, %s6778_s8  ;;  %v9742_v17 = vld [vmem:[#allocation36_spill] sm:$0xff] }
 0x564   : > { %v1844_v12 = vpop.xlane.xlu0 %1843  ;;  %2057 = vrot.lane.b32.xlu0 %v7365_v7, %s6777_s25 }
 0x565   : > { %2063 = vrot.lane.b32.xlu1 %v7371_v11, %s6777_s25  ;;  %6044 = vrcp.f32 %v1844_v12  ;;  %v9743_v12 = vld [vmem:[#allocation57_spill] sm:$0xff] }
 0x567   : > { %v6041_v15 = vpop.eup %6040 }
 0x568   : > { %2755 = vrot.lane.b32.xlu0 %v7281_v28, %s6778_s8  ;;  %v1847_v20 = vpop.xlane.xlu1 %1846  ;;  %v1900_v18 = vmul.f32 %v6041_v15, %v7576_v51  ;;  %v1901_v36 = vmul.f32 %v6041_v15, %v7578_v32  ;;  %v9740_v51 = vld [vmem:[#allocation35_spill] sm:$0xff]  ;;  %v9744_v15 = vld [vmem:[#allocation33_spill] sm:$0xff] }
 0x569   : > { %6046 = vrcp.f32 %v1847_v20  ;;  %2761 = vrot.lane.b32.xlu1 %v7311_v47, %s6778_s8 }
 0x56b   : > { %v6043_v25 = vpop.eup %6042 }
 0x56c   : > { %v1902_v9 = vmul.f32 %v6043_v25, %v7584_v60  ;;  %v1903_v40 = vmul.f32 %v6043_v25, %v7588_v48  ;;  %v1850_v34 = vpop.xlane.xlu0 %1849  ;;  %2741 = vrot.lane.b32.xlu0 %v7295_v37, %s6778_s8  ;;  %v9741_v60 = vld [vmem:[#allocation54_spill] sm:$0xff] }
 0x56d   : > { %2747 = vrot.lane.b32.xlu1 %v7325_v55, %s6778_s8  ;;  %6048 = vrcp.f32 %v1850_v34  ;;  %v2142_v48 = vsel %vm1506_vm0, %v9741_v60, 0 }
 0x56e   : > { %v1933_v28 = vpack.c.bf16 %v1903_v40, %v1901_v36  ;;  %v1932_v44 = vpack.c.bf16 %v1902_v9, %v1900_v18 }
 0x56f   : > { %v1853_v16 = vpop.xlane.xlu1 %1852  ;;  %v6045_v32 = vpop.eup %6044 }
 0x570   : > { %6050 = vrcp.f32 %v1853_v16  ;;  %2061 = vrot.lane.b32.xlu0 %v9740_v51, %s6777_s25  ;;  %1980 = vmatprep.mubr.bf16.mxu0 %v1933_v28  ;;  %v1905_v25 = vmul.f32 %v6045_v32, %v7594_v24  ;;  %v1904_v36 = vmul.f32 %v6045_v32, %v7592_v49  ;;  %v9745_v16 = vld [vmem:[#allocation34_spill] sm:$0xff]  ;;  %v9746_v24 = vld [vmem:[#allocation55_spill] sm:$0xff] }
 0x571   : > { %2067 = vrot.lane.b32.xlu1 %v9742_v17, %s6777_s25  ;;  %1981 = vmatmul.mubr.bf16.vlgmr.msra.gmra.mrb[16].mxu0 %v1932_v44 }
 0x572   : > { %5119 = vmatpush3.bf16.xpose.msra.mxu0 %v2142_v48  ;;  %v9748_v48 = vld [vmem:[#allocation37_spill] sm:$0xff] }
 0x573   : > { %v6047_v37 = vpop.eup %6046  ;;  %5607 = vmatprep.subr.msk.bf16.mxu0 %vm1506_vm0, %v9743_v12 }
 0x574   : > { %v1856_v20 = vpop.xlane.xlu0 %1855  ;;  %2759 = vrot.lane.b32.xlu0 %v9744_v15, %s6778_s8  ;;  %v1907_v18 = vmul.f32 %v6047_v37, %v7604_v59  ;;  %v1906_v9 = vmul.f32 %v6047_v37, %v7600_v54  ;;  %v2145_v59 = vsel %vm1506_vm0, %v9746_v24, 0 }
 0x575   : > { %2765 = vrot.lane.b32.xlu1 %v7329_v57, %s6778_s8  ;;  %6052 = vrcp.f32 %v1856_v20  ;;  %v9747_v57 = vld [vmem:[#allocation59_spill] sm:$0xff] }
 0x576   : > { %v1935_v40 = vpack.c.bf16 %v1907_v18, %v1905_v25  ;;  %v1934_v34 = vpack.c.bf16 %v1906_v9, %v1904_v36 }
 0x577   : > { %v1859_v28 = vpop.xlane.xlu1 %1858  ;;  %v6049_v44 = vpop.eup %6048 }
 0x578   : > { %6054 = vrcp.f32 %v1859_v28  ;;  %2745 = vrot.lane.b32.xlu0 %v9745_v16, %s6778_s8  ;;  %1988 = vmatprep.mubr.bf16.mxu0 %v1935_v40  ;;  %v1909_v54 = vmul.f32 %v6049_v44, %v7610_v38  ;;  %v1908_v12 = vmul.f32 %v6049_v44, %v7608_v0  ;;  %v9749_v38 = vld [vmem:[#allocation56_spill] sm:$0xff]  ;;  %v6392_v28 = vld [vmem:[#allocation2 + $0x40] sm:$0xff] }
 0x579   : > { %3369 = vrot.lane.b32.xlu1 %v7269_v21, %s6779_s15  ;;  %1989 = vmatmul.mubr.bf16.gmra.mrb[20].mxu0 %v1934_v34 }
 0x57a   : > { %v6051_v49 = vpop.eup %6050  ;;  %5121 = vmatpush3.bf16.xpose.msra.mxu0 %v2145_v59 }
 0x57b   : > { %5608 = vmatprep.subr.msk.bf16.mxu0 %vm1506_vm0, %v9747_v57  ;;  %v1911_v32 = vmul.f32 %v6051_v49, %v7618_v4  ;;  %v1910_v60 = vmul.f32 %v6051_v49, %v7612_v26  ;;  %v2148_v26 = vsel %vm1506_vm0, %v9749_v38, 0  ;;  %v6397_v38 = vld [vmem:[#allocation2 + $0x78] sm:$0xff] }
 0x57c   : > { %2065 = vrot.lane.b32.xlu0 %v9748_v48, %s6777_s25  ;;  %v1862_v37 = vpop.xlane.xlu1 %1861 }
 0x57d   : > { %2721 = vrot.lane.b32.xlu1 %v7353_v63, %s6778_s8  ;;  %v1937_v21 = vpack.c.bf16 %v1911_v32, %v1909_v54  ;;  %6056 = vrcp.f32 %v1862_v37  ;;  %v1936_v15 = vpack.c.bf16 %v1910_v60, %v1908_v12  ;;  %v9751_v37 = vld [vmem:[#allocation61_spill] sm:$0xff]  ;;  %v6395_v12 = vld [vmem:[#allocation2 + $0x18] sm:$0xff] }
 0x57f   : > { %v1865_v20 = vpop.xlane.xlu0 %1864  ;;  %1996 = vmatprep.mubr.bf16.mxu0 %v1937_v21  ;;  %v6053_v25 = vpop.eup %6052 }
 0x580   : > { %6058 = vrcp.f32 %v1865_v20  ;;  %2763 = vrot.lane.b32.xlu0 %v7321_v53, %s6778_s8  ;;  %v1913_v0 = vmul.f32 %v6053_v25, %v7626_v27  ;;  %v1912_v9 = vmul.f32 %v6053_v25, %v7624_v56 }
 0x581   : > { %3387 = vrot.lane.b32.xlu1 %v7271_v22, %s6779_s15  ;;  %1997 = vmatmul.mubr.bf16.gmra.mrb[24].mxu0 %v1936_v15 }
 0x582   : > { %v6055_v4 = vpop.eup %6054  ;;  %5123 = vmatpush3.bf16.xpose.msra.mxu0 %v2148_v26  ;;  %v6399_v26 = vld [vmem:[#allocation2 + $0x70] sm:$0xff] }
 0x583   : > { %5609 = vmatprep.subr.msk.bf16.mxu0 %vm1506_vm0, %v7568_v23  ;;  %v1915_v18 = vmul.f32 %v6055_v4, %v7634_v14  ;;  %v1914_v36 = vmul.f32 %v6055_v4, %v7628_v61  ;;  %v9750_v61 = vld [vmem:[#allocation58_spill] sm:$0xff]  ;;  %v6400_v4 = vld [vmem:[#allocation2 + $0x38] sm:$0xff] }
 0x584   : > { %2749 = vrot.lane.b32.xlu0 %v7333_v58, %s6778_s8  ;;  %v1868_v53 = vpop.xlane.xlu1 %1867  ;;  %v2151_v14 = vsel %vm1506_vm0, %v9750_v61, 0  ;;  %v9762_v61 = vld [vmem:[#allocation47_spill] sm:$0xff] }
 0x585   : > { %6060 = vrcp.f32 %v1868_v53  ;;  %3373 = vrot.lane.b32.xlu1 %v7285_v30, %s6779_s15  ;;  %v1939_v22 = vpack.c.bf16 %v1915_v18, %v1913_v0  ;;  %v1938_v23 = vpack.c.bf16 %v1914_v36, %v1912_v9  ;;  %v9755_v0 = vld [vmem:[#allocation42_spill] sm:$0xff]  ;;  %v9758_v36 = vld [vmem:[#allocation45_spill] sm:$0xff]  ;;  %v9759_v53 = vld [vmem:[#allocation40_spill] sm:$0xff] }
 0x586   : > { %v1871_v40 = vpop.xlane.xlu0 %1870 }
 0x587   : > { %6062 = vrcp.f32 %v1871_v40  ;;  %2004 = vmatprep.mubr.bf16.mxu0 %v1939_v22  ;;  %v6057_v27 = vpop.eup %6056  ;;  %v9760_v22 = vld [vmem:[#allocation46_spill] sm:$0xff] }
 0x588   : > { %2719 = vrot.lane.b32.xlu0 %v7355_v1, %s6778_s8  ;;  %v1917_v30 = vmul.f32 %v6057_v27, %v7642_v50  ;;  %v1916_v24 = vmul.f32 %v6057_v27, %v7640_v45 }
 0x589   : > { %2725 = vrot.lane.b32.xlu1 %v7363_v5, %s6778_s8  ;;  %2005 = vmatmul.mubr.bf16.gmra.mrb[28].mxu0 %v1938_v23  ;;  %v9761_v23 = vld [vmem:[#allocation44_spill] sm:$0xff] }
 0x58a   : > { %v6059_v58 = vpop.eup %6058  ;;  %5125 = vmatpush3.bf16.xpose.msra.mxu0 %v2151_v14 }
 0x58b   : > { %5610 = vmatprep.subr.msk.bf16.mxu0 %vm1506_vm0, %v7684_v62  ;;  %v1919_v56 = vmul.f32 %v6059_v58, %v7650_v13  ;;  %v1918_v34 = vmul.f32 %v6059_v58, %v7644_v31  ;;  %v6393_v62 = vld [vmem:[#allocation2 + $0x8] sm:$0xff]  ;;  %v2154_v13 = vsel %vm1506_vm0, %v7718_v33, 0 }
 0x58c   : > { %3385 = vrot.lane.b32.xlu0 %v6392_v28, %s6779_s15  ;;  %v1874_v44 = vpop.xlane.xlu1 %1873 }
 0x58d   : > { %6064 = vrcp.f32 %v1874_v44  ;;  %3391 = vrot.lane.b32.xlu1 %v7291_v35, %s6779_s15  ;;  %v1941_v16 = vpack.c.bf16 %v1919_v56, %v1917_v30  ;;  %v1940_v50 = vpack.c.bf16 %v1918_v34, %v1916_v24  ;;  %v9763_v30 = vld [vmem:[#allocation48_spill] sm:$0xff]  ;;  %v9764_v34 = vld [vmem:[#allocation49_spill] sm:$0xff] }
 0x58e   : > { %v1877_v59 = vpop.xlane.xlu0 %1876 }
 0x58f   : > { %v6061_v49 = vpop.eup %6060  ;;  %6066 = vrcp.f32 %v1877_v59  ;;  %2012 = vmatprep.mubr.bf16.mxu0 %v1941_v16 }
 0x590   : > { %3371 = vrot.lane.b32.xlu0 %v6393_v62, %s6779_s15  ;;  %v1921_v35 = vmul.f32 %v6061_v49, %v7658_v19  ;;  %v6394_v19 = vld [vmem:[#allocation2 + $0x50] sm:$0xff] }
 0x591   : > { %v6063_v31 = vpop.eup %6062  ;;  %3377 = vrot.lane.b32.xlu1 %v7305_v43, %s6779_s15  ;;  %2013 = vmatmul.mubr.bf16.gmra.mrb[32].mxu0 %v1940_v50  ;;  %v1920_v43 = vmul.f32 %v6061_v49, %v7656_v39  ;;  %v9765_v50 = vld [vmem:[#allocation52_spill] sm:$0xff] }
 0x592   : > { %5127 = vmatpush3.bf16.xpose.msra.mxu0 %v2154_v13  ;;  %v1923_v45 = vmul.f32 %v6063_v31, %v7664_v10  ;;  %v1922_v57 = vmul.f32 %v6063_v31, %v7660_v6  ;;  %v2114_v6 = vpop.permute.xlu1 %2113  ;;  %v2098_v15 = vpop.permute.xlu0 %2097 }
 0x593   : > { %5611 = vmatprep.subr.msk.bf16.mxu0 %vm1506_vm0, %v7690_v3  ;;  %v2157_v3 = vsel %vm1506_vm0, %v7688_v2, 0  ;;  %v9752_v2 = vld [vmem:[#allocation60_spill] sm:$0xff] }
 0x594   : > { %2723 = vrot.lane.b32.xlu0 %v7365_v7, %s6778_s8  ;;  %v1943_v54 = vpack.c.bf16 %v1923_v45, %v1921_v35  ;;  %v1942_v32 = vpack.c.bf16 %v1922_v57, %v1920_v43  ;;  %v9766_v35 = vld [vmem:[#allocation50_spill] sm:$0xff]  ;;  %v9768_v43 = vld [vmem:[#allocation53_spill] sm:$0xff] }
 0x595   : > { %2729 = vrot.lane.b32.xlu1 %v7371_v11, %s6778_s8  ;;  %v6402_v57 = vld [vmem:[#allocation3 + $0x48] sm:$0xff] }
 0x596   : > { %2020 = vmatprep.mubr.bf16.mxu0 %v1943_v54 }
 0x597   : > { %v6065_v33 = vpop.eup %6064 }
 0x598   : > { %3389 = vrot.lane.b32.xlu0 %v6394_v19, %s6779_s15  ;;  %v1925_v60 = vmul.f32 %v6065_v33, %v7670_v41  ;;  %v2160_v41 = vsel %vm1506_vm0, %v2098_v15, 0  ;;  %v6403_v19 = vld [vmem:[#allocation3 + $0x58] sm:$0xff] }
 0x599   : > { %v6067_v10 = vpop.eup %6066  ;;  %3395 = vrot.lane.b32.xlu1 %v7311_v47, %s6779_s15  ;;  %2021 = vmatmul.mubr.bf16.gmra.mrb[36].mxu0 %v1942_v32  ;;  %v1924_v47 = vmul.f32 %v6065_v33, %v9752_v2  ;;  %v7935_v2 = vld [vmem:[#allocation3 + $0x50] sm:$0xff] }
 0x59a   : > { %5129 = vmatpush3.bf16.xpose.msra.mxu0 %v2157_v3  ;;  %v1927_v39 = vmul.f32 %v6067_v10, %v7676_v46  ;;  %v1926_v21 = vmul.f32 %v6067_v10, %v9751_v37  ;;  %v6396_v46 = vld [vmem:[#allocation2 + $0x60] sm:$0xff] }
 0x59b   : > { %5612 = vmatprep.subr.msk.bf16.mxu0 %vm1506_vm0, %v2114_v6  ;;  %v7918_v3 = vld [vmem:[#allocation3] sm:$0xff] }
 0x59c   : > { %3375 = vrot.lane.b32.xlu0 %v6395_v12, %s6779_s15  ;;  %v1945_v20 = vpack.c.bf16 %v1927_v39, %v1925_v60  ;;  %v1944_v25 = vpack.c.bf16 %v1926_v21, %v1924_v47  ;;  %v6405_v60 = vld [vmem:[#allocation3 + $0x68] sm:$0xff] }
 0x59d   : > { %3381 = vrot.lane.b32.xlu1 %v7325_v55, %s6779_s15  ;;  %v6398_v55 = vld [vmem:[#allocation2 + $0x28] sm:$0xff] }
 0x59e   : > { %2028 = vmatprep.mubr.bf16.mxu0 %v1945_v20  ;;  %v7924_v21 = vld [vmem:[#allocation3 + $0x8] sm:$0xff] }
 0x5a0   : > { %2727 = vrot.lane.b32.xlu0 %v9740_v51, %s6778_s8 }
 0x5a1   : > { %2733 = vrot.lane.b32.xlu1 %v9742_v17, %s6778_s8  ;;  %2029 = vmatmul.mubr.bf16.gmra.mrb[40].mxu0 %v1944_v25 }
 0x5a2   : > { %5131 = vmatpush3.bf16.xpose.msra.mxu0 %v2160_v41  ;;  %v7943_v41 = vld [vmem:[#allocation3 + $0x10] sm:$0xff] }
 0x5a4   : > { %3393 = vrot.lane.b32.xlu0 %v6396_v46, %s6779_s15 }
 0x5a5   : > { %3399 = vrot.lane.b32.xlu1 %v6397_v38, %s6779_s15 }
 0x5a8   : > { %3379 = vrot.lane.b32.xlu0 %v6398_v55, %s6779_s15  ;;  %v7952_v55 = vld [vmem:[#allocation3 + $0x18] sm:$0xff] }
 0x5a9   : > { %3355 = vrot.lane.b32.xlu1 %v7353_v63, %s6779_s15  ;;  %v9753_v63 = vld [vmem:[#allocation39_spill] sm:$0xff] }
 0x5ac   : > { %2731 = vrot.lane.b32.xlu0 %v9748_v48, %s6778_s8 }
 0x5ad   : > { %3359 = vrot.lane.b32.xlu1 %v7363_v5, %s6779_s15  ;;  %v9754_v5 = vld [vmem:[#allocation41_spill] sm:$0xff] }
 0x5b0   : > { %3397 = vrot.lane.b32.xlu0 %v6399_v26, %s6779_s15 }
 0x5b1   : > { %3363 = vrot.lane.b32.xlu1 %v7371_v11, %s6779_s15 }
 0x5b4   : > { %3383 = vrot.lane.b32.xlu0 %v6400_v4, %s6779_s15 }
 0x5b5   : > { %3367 = vrot.lane.b32.xlu1 %v9742_v17, %s6779_s15  ;;  %v9756_v17 = vld [vmem:[#allocation43_spill] sm:$0xff] }
 0x5b8   : > { %3353 = vrot.lane.b32.xlu0 %v7355_v1, %s6779_s15 }
 0x5b9   : > { %2574 = vrot.lane.b32.xlu1 %v9753_v63, %s6777_s25 }
 0x5bc   : > { %3357 = vrot.lane.b32.xlu0 %v7365_v7, %s6779_s15  ;;  %v9757_v7 = vld [vmem:[#allocation38_spill] sm:$0xff] }
 0x5bd   : > { %2576 = vrot.lane.b32.xlu1 %v9754_v5, %s6777_s25  ;;  %v6410_v5 = vld [vmem:[#allocation3 + $0x60] sm:$0xff] }
 0x5c0   : > { %3361 = vrot.lane.b32.xlu0 %v9740_v51, %s6779_s15 }
 0x5c1   : > { %v1880_v11 = vpop.xlane.xlu1 %1879  ;;  %2594 = vrot.lane.b32.xlu1 %v9755_v0, %s6777_s25 }
 0x5c2   : > { %6068 = vrcp.f32 %v1880_v11 }
 0x5c4   : > { %3365 = vrot.lane.b32.xlu0 %v9748_v48, %s6779_s15 }
 0x5c5   : > { %v2116_v1 = vpop.permute.xlu1 %2115  ;;  %2578 = vrot.lane.b32.xlu1 %v9756_v17, %s6777_s25 }
 0x5c6   : > { %5613 = vmatprep.subr.msk.bf16.mxu0 %vm1506_vm0, %v2116_v1  ;;  %v6411_v1 = vld [vmem:[#allocation3 + $0x20] sm:$0xff] }
 0x5c8   : > { %2590 = vrot.lane.b32.xlu0 %v9757_v7, %s6777_s25 }
 0x5c9   : > { %v2736_v18 = vpop.permute.xlu1 %2735  ;;  %2580 = vrot.lane.b32.xlu1 %v9758_v36, %s6777_s25  ;;  %v7971_v36 = vld [vmem:[#allocation3 + $0x28] sm:$0xff] }
 0x5ca   : > { %v2792_v33 = vsel %vm1506_vm0, %v2736_v18, 0 }
 0x5cb   : > { %v1883_v51 = vpop.xlane.xlu0 %1882 }
 0x5cc   : > { %6070 = vrcp.f32 %v1883_v51  ;;  %2592 = vrot.lane.b32.xlu0 %v9759_v53, %s6777_s25  ;;  %v6069_v58 = vpop.eup %6068 }
 0x5cd   : > { %v2056_v48 = vpop.permute.xlu1 %2055  ;;  %2598 = vrot.lane.b32.xlu1 %v9760_v22, %s6777_s25  ;;  %v1929_v16 = vmul.f32 %v6069_v58, %v7696_v42  ;;  %v1928_v59 = vmul.f32 %v6069_v58, %v7694_v52  ;;  %v6401_v42 = vld [vmem:[#allocation3 + $0x40] sm:$0xff] }
 0x5cf   : > { %v2100_v9 = vpop.permute.xlu0 %2099 }
 0x5d0   : > { %v2163_v40 = vsel %vm1506_vm0, %v2100_v9, 0  ;;  %2596 = vrot.lane.b32.xlu0 %v9761_v23, %s6777_s25  ;;  %v6414_v23 = vld [vmem:[#allocation3 + $0x30] sm:$0xff] }
 0x5d1   : > { %v2754_v27 = vpop.permute.xlu1 %2753  ;;  %5133 = vmatpush3.bf16.xpose.msra.mxu0 %v2163_v40  ;;  %2582 = vrot.lane.b32.xlu1 %v9762_v61, %s6777_s25 }
 0x5d3   : > { %v2054_v14 = vpop.permute.xlu0 %2053 }
 0x5d4   : > { %2600 = vrot.lane.b32.xlu0 %v9763_v30, %s6777_s25 }
 0x5d5   : > { %v2740_v56 = vpop.permute.xlu1 %2739  ;;  %2584 = vrot.lane.b32.xlu1 %v9764_v34, %s6777_s25 }
 0x5d6   : > { %v6071_v28 = vpop.eup %6070  ;;  %v2798_v25 = vsel %vm1506_vm0, %v2740_v56, 0 }
 0x5d7   : > { %v2752_v44 = vpop.permute.xlu0 %2751  ;;  %v1931_v24 = vmul.f32 %v6071_v28, %v7702_v8  ;;  %v1930_v49 = vmul.f32 %v6071_v28, %v7700_v29  ;;  %v9767_v29 = vld [vmem:[#allocation51_spill] sm:$0xff] }
 0x5d8   : > { %5614 = vmatprep.subr.msk.bf16.mxu0 %vm1506_vm0, %v2752_v44  ;;  %2604 = vrot.lane.b32.xlu0 %v9765_v50, %s6777_s25 }
 0x5d9   : > { %v7900_v62 = vpop.permute.xlu1 %2059  ;;  %v1947_v31 = vpack.c.bf16 %v1931_v24, %v1929_v16  ;;  %v1946_v13 = vpack.c.bf16 %v1930_v49, %v1928_v59  ;;  %2602 = vrot.lane.b32.xlu1 %v9766_v35, %s6777_s25 }
 0x5db   : > { %v2738_v45 = vpop.permute.xlu0 %2737  ;;  %2036 = vmatprep.mubr.bf16.mxu0 %v1947_v31 }
 0x5dc   : > { %2037 = vmatmul.mubr.bf16.gmra.mrb[44].mxu0 %v1946_v13  ;;  %3224 = vrot.lane.b32.xlu0 %v6401_v42, %s6778_s8  ;;  %v2795_v37 = vsel %vm1506_vm0, %v2738_v45, 0 }
 0x5dd   : > { %5134 = vmatprep.mubr.msk.bf16.mxu0 %vm1506_vm0, %v2054_v14  ;;  %v2758_v52 = vpop.permute.xlu1 %2757  ;;  %2586 = vrot.lane.b32.xlu1 %v9767_v29, %s6777_s25 }
 0x5df   : > { %v2058_v8 = vpop.permute.xlu0 %2057 }
 0x5e0   : > { %3226 = vrot.lane.b32.xlu0 %v6402_v57, %s6778_s8 }
 0x5e1   : > { %v2744_v54 = vpop.permute.xlu1 %2743  ;;  %2588 = vrot.lane.b32.xlu1 %v9768_v43, %s6777_s25 }
 0x5e2   : > { %v2804_v18 = vsel %vm1506_vm0, %v2744_v54, 0 }
 0x5e3   : > { %v2756_v32 = vpop.permute.xlu0 %2755 }
 0x5e4   : > { %5135 = vmatmul.mubr.msk.bf16.vlgmr.msra.gmra.mrb[48].mxu0 %vm1506_vm0, %v2054_v14  ;;  %3230 = vrot.lane.b32.xlu0 %v6403_v19, %s6778_s8  ;;  %v6415_v14 = vld [vmem:[#allocation3 + $0x38] sm:$0xff] }
 0x5e5   : > { %5136 = vmatprep.mubr.msk.bf16.mxu0 %vm1506_vm0, %v2056_v48  ;;  %5215 = vmatpush3.bf16.xpose.msra.mxu0 %v2792_v33  ;;  %v7915_v10 = vpop.permute.xlu1 %2063 }
 0x5e6   : > { %5615 = vmatprep.subr.msk.bf16.mxu0 %vm1506_vm0, %v2754_v27  ;;  %3208 = vrot.lane.b32.xlu1 %v7918_v3, %s6778_s8 }
 0x5e7   : > { %v2742_v6 = vpop.permute.xlu0 %2741 }
 0x5e8   : > { %3234 = vrot.lane.b32.xlu0 %v6405_v60, %s6778_s8  ;;  %v2801_v63 = vsel %vm1506_vm0, %v2742_v6, 0 }
 0x5e9   : > { %v2762_v39 = vpop.permute.xlu1 %2761 }
 0x5ea   : > { %3210 = vrot.lane.b32.xlu1 %v7924_v21, %s6778_s8 }
 0x5eb   : > { %v2062_v12 = vpop.permute.xlu0 %2061 }
 0x5ec   : > { %5137 = vmatmul.mubr.msk.bf16.gmra.mrb[52].mxu0 %vm1506_vm0, %v2056_v48  ;;  %3238 = vrot.lane.b32.xlu0 %v9765_v50, %s6778_s8  ;;  %v6413_v48 = vld [vmem:[#allocation3 + $0x70] sm:$0xff] }
 0x5ed   : > { %5138 = vmatprep.mubr.msk.bf16.mxu0 %vm1506_vm0, %v2058_v8  ;;  %5217 = vmatpush3.bf16.xpose.msra.mxu0 %v2795_v37  ;;  %v7932_v20 = vpop.permute.xlu1 %2747 }
 0x5ee   : > { %5616 = vmatprep.subr.msk.bf16.mxu0 %vm1506_vm0, %v2756_v32  ;;  %3228 = vrot.lane.b32.xlu1 %v7935_v2, %s6778_s8  ;;  %v2810_v56 = vsel %vm1506_vm0, %v7932_v20, 0 }
 0x5ef   : > { %v2760_v47 = vpop.permute.xlu0 %2759 }
 0x5f0   : > { %3858 = vrot.lane.b32.xlu0 %v6401_v42, %s6779_s15 }
 0x5f1   : > { %v7940_v15 = vpop.permute.xlu1 %2067 }
 0x5f2   : > { %3212 = vrot.lane.b32.xlu1 %v7943_v41, %s6778_s8 }
 0x5f3   : > { %v2746_v46 = vpop.permute.xlu0 %2745 }
 0x5f4   : > { %5139 = vmatmul.mubr.msk.bf16.gmra.mrb[56].mxu0 %vm1506_vm0, %v2058_v8  ;;  %3860 = vrot.lane.b32.xlu0 %v6402_v57, %s6779_s15  ;;  %v2807_v40 = vsel %vm1506_vm0, %v2746_v46, 0 }
 0x5f5   : > { %5140 = vmatprep.mubr.msk.bf16.mxu0 %vm1506_vm0, %v7900_v62  ;;  %5219 = vmatpush3.bf16.xpose.msra.mxu0 %v2798_v25  ;;  %v2766_v38 = vpop.permute.xlu1 %2765 }
 0x5f6   : > { %5617 = vmatprep.subr.msk.bf16.mxu0 %vm1506_vm0, %v2758_v52  ;;  %3214 = vrot.lane.b32.xlu1 %v7952_v55, %s6778_s8 }
 0x5f7   : > { %v2066_v26 = vpop.permute.xlu0 %2065 }
 0x5f8   : > { %3864 = vrot.lane.b32.xlu0 %v6403_v19, %s6779_s15 }
 0x5f9   : > { %v7957_v4 = vpop.permute.xlu1 %3369 }
 0x5fa   : > { %3232 = vrot.lane.b32.xlu1 %v6410_v5, %s6778_s8  ;;  %v3426_v31 = vsel %vm1506_vm0, %v7957_v4, 0 }
 0x5fb   : > { %v2764_v11 = vpop.permute.xlu0 %2763 }
 0x5fc   : > { %5141 = vmatmul.mubr.msk.bf16.gmra.mrb[60].mxu0 %vm1506_vm0, %v7900_v62  ;;  %3866 = vrot.lane.b32.xlu0 %v6410_v5, %s6779_s15 }
 0x5fd   : > { %5142 = vmatprep.mubr.msk.bf16.mxu0 %vm1506_vm0, %v2062_v12  ;;  %5221 = vmatpush3.bf16.xpose.msra.mxu0 %v2801_v63  ;;  %v7965_v0 = vpop.permute.xlu1 %2721 }
 0x5fe   : > { %5618 = vmatprep.subr.msk.bf16.mxu0 %vm1506_vm0, %v2760_v47  ;;  %3216 = vrot.lane.b32.xlu1 %v6411_v1, %s6778_s8 }
 0x5ff   : > { %v2750_v17 = vpop.permute.xlu0 %2749 }
 0x600   : > { %3868 = vrot.lane.b32.xlu0 %v6405_v60, %s6779_s15  ;;  %v2813_v24 = vsel %vm1506_vm0, %v2750_v17, 0 }
 0x601   : > { %v3388_v7 = vpop.permute.xlu1 %3387 }
 0x602   : > { %3218 = vrot.lane.b32.xlu1 %v7971_v36, %s6778_s8 }
 0x603   : > { %v2720_v51 = vpop.permute.xlu0 %2719 }
 0x604   : > { %5143 = vmatmul.mubr.msk.bf16.gmra.mrb[64].mxu0 %vm1506_vm0, %v2062_v12 }
 0x605   : > { %5144 = vmatprep.mubr.msk.bf16.mxu0 %vm1506_vm0, %v7915_v10  ;;  %5223 = vmatpush3.bf16.xpose.msra.mxu0 %v2804_v18  ;;  %v3374_v53 = vpop.permute.xlu1 %3373 }
 0x606   : > { %5619 = vmatprep.subr.msk.bf16.mxu0 %vm1506_vm0, %v2762_v39  ;;  %3236 = vrot.lane.b32.xlu1 %v6413_v48, %s6778_s8  ;;  %v3432_v43 = vsel %vm1506_vm0, %v3374_v53, 0 }
 0x607   : > { %v3386_v22 = vpop.permute.xlu0 %3385 }
 0x609   : > { %v7980_v9 = vpop.permute.xlu1 %2725 }
 0x60a   : > { %3220 = vrot.lane.b32.xlu1 %v6414_v23, %s6778_s8 }
 0x60b   : > { %v3372_v27 = vpop.permute.xlu0 %3371 }
 0x60c   : > { %5145 = vmatmul.mubr.msk.bf16.gmra.mrb[68].mxu0 %vm1506_vm0, %v7915_v10  ;;  %v3429_v52 = vsel %vm1506_vm0, %v3372_v27, 0 }
 0x60d   : > { %5146 = vmatprep.mubr.msk.bf16.mxu0 %vm1506_vm0, %v2066_v26  ;;  %5225 = vmatpush3.bf16.xpose.msra.mxu0 %v2807_v40  ;;  %v3392_v61 = vpop.permute.xlu1 %3391 }
 0x60e   : > { %5620 = vmatprep.subr.msk.bf16.mxu0 %vm1506_vm0, %v2764_v11  ;;  %3222 = vrot.lane.b32.xlu1 %v6415_v14, %s6778_s8 }
 0x60f   : > { %v2724_v58 = vpop.permute.xlu0 %2723 }
 0x611   : > { %v3378_v30 = vpop.permute.xlu1 %3377 }
 0x612   : > { %3842 = vrot.lane.b32.xlu1 %v7918_v3, %s6779_s15 }
 0x613   : > { %v3390_v34 = vpop.permute.xlu0 %3389 }
 0x614   : > { %5147 = vmatmul.mubr.msk.bf16.gmra.mrb[72].mxu0 %vm1506_vm0, %v2066_v26 }
 0x615   : > { %5148 = vmatprep.mubr.msk.bf16.mxu0 %vm1506_vm0, %v7940_v15  ;;  %5227 = vmatpush3.bf16.xpose.msra.mxu0 %v2810_v56  ;;  %v7996_v28 = vpop.permute.xlu1 %2729 }
 0x616   : > { %5621 = vmatprep.subr.msk.bf16.mxu0 %vm1506_vm0, %v2766_v38  ;;  %3844 = vrot.lane.b32.xlu1 %v7924_v21, %s6779_s15  ;;  %v3438_v21 = vsel %vm1506_vm0, %v3378_v30, 0 }
 0x617   : > { %v3376_v44 = vpop.permute.xlu0 %3375 }
 0x618   : > { %v3435_v3 = vsel %vm1506_vm0, %v3376_v44, 0 }
 0x619   : > { %v3396_v16 = vpop.permute.xlu1 %3395 }
 0x61a   : > { %3862 = vrot.lane.b32.xlu1 %v7935_v2, %s6779_s15 }
 0x61b   : > { %v2728_v59 = vpop.permute.xlu0 %2727 }
 0x61c   : > { %5149 = vmatmul.mubr.msk.bf16.gmra.mrb[76].mxu0 %vm1506_vm0, %v7940_v15 }
 0x61d   : > { %5229 = vmatpush3.bf16.xpose.msra.mxu0 %v2813_v24  ;;  %5230 = vmatprep.mubr.msk.bf16.mxu0 %vm1506_vm0, %v2720_v51  ;;  %v8007_v49 = vpop.permute.xlu1 %3381 }
 0x61e   : > { %5622 = vmatprep.subr.msk.bf16.mxu0 %vm1506_vm0, %v3386_v22  ;;  %3846 = vrot.lane.b32.xlu1 %v7943_v41, %s6779_s15 }
 0x61f   : > { %v3394_v50 = vpop.permute.xlu0 %3393 }
 0x621   : > { %v8012_v62 = vpop.permute.xlu1 %2733 }
 0x622   : > { %3848 = vrot.lane.b32.xlu1 %v7952_v55, %s6779_s15 }
 0x623   : > { %v3380_v13 = vpop.permute.xlu0 %3379 }
 0x624   : > { %5231 = vmatmul.mubr.msk.bf16.vlgmr.msra.gmra.mrb[80].mxu0 %vm1506_vm0, %v2720_v51  ;;  %v3441_v26 = vsel %vm1506_vm0, %v3380_v13, 0  ;;  %v3444_v51 = vsel %vm1506_vm0, %v8007_v49, 0 }
 0x625   : > { %5232 = vmatprep.mubr.msk.bf16.mxu0 %vm1506_vm0, %v7965_v0  ;;  %5311 = vmatpush3.bf16.xpose.msra.mxu0 %v3426_v31  ;;  %v8021_v35 = vpop.permute.xlu1 %3399 }
 0x626   : > { %5623 = vmatprep.subr.msk.bf16.mxu0 %vm1506_vm0, %v3388_v7  ;;  %3850 = vrot.lane.b32.xlu1 %v6411_v1, %s6779_s15 }
 0x627   : > { %v8025_v45 = vpop.permute.xlu0 %2731 }
 0x629   : > { %v8027_v42 = vpop.permute.xlu1 %3355 }
 0x62b   : > { %v3398_v29 = vpop.permute.xlu0 %3397 }
 0x62c   : > { %5233 = vmatmul.mubr.msk.bf16.gmra.mrb[84].mxu0 %vm1506_vm0, %v7965_v0 }
 0x62d   : > { %5234 = vmatprep.mubr.msk.bf16.mxu0 %vm1506_vm0, %v2724_v58  ;;  %5313 = vmatpush3.bf16.xpose.msra.mxu0 %v3429_v52  ;;  %v8033_v8 = vpop.permute.xlu1 %3359 }
 0x62e   : > { %5624 = vmatprep.subr.msk.bf16.mxu0 %vm1506_vm0, %v3390_v34 }
 0x62f   : > { %v8036_v57 = vpop.permute.xlu0 %3383 }
 0x631   : > { %v8038_v54 = vpop.permute.xlu1 %3363 }
 0x633   : > { %v8041_v33 = vpop.permute.xlu0 %3353 }
 0x634   : > { %5235 = vmatmul.mubr.msk.bf16.gmra.mrb[88].mxu0 %vm1506_vm0, %v2724_v58  ;;  %v3447_v58 = vsel %vm1506_vm0, %v8036_v57, 0 }
 0x635   : > { %5236 = vmatprep.mubr.msk.bf16.mxu0 %vm1506_vm0, %v7980_v9  ;;  %5315 = vmatpush3.bf16.xpose.msra.mxu0 %v3432_v43  ;;  %v8046_v32 = vpop.permute.xlu1 %3367 }
 0x636   : > { %5625 = vmatprep.subr.msk.bf16.mxu0 %vm1506_vm0, %v3392_v61 }
 0x637   : > { %v8049_v19 = vpop.permute.xlu0 %3357 }
 0x639   : > { %v2575_v10 = vpop.permute.xlu1 %2574 }
 0x63b   : > { %v8052_v6 = vpop.permute.xlu0 %3361 }
 0x63c   : > { %5237 = vmatmul.mubr.msk.bf16.gmra.mrb[92].mxu0 %vm1506_vm0, %v7980_v9 }
 0x63d   : > { %5238 = vmatprep.mubr.msk.bf16.mxu0 %vm1506_vm0, %v2728_v59  ;;  %5317 = vmatpush3.bf16.xpose.msra.mxu0 %v3435_v3  ;;  %v2577_v60 = vpop.permute.xlu1 %2576 }
 0x63e   : > { %5626 = vmatprep.subr.msk.bf16.mxu0 %vm1506_vm0, %v3394_v50 }
 0x63f   : > { %v8058_v39 = vpop.permute.xlu0 %3365 }
 0x641   : > { %v2595_v37 = vpop.permute.xlu1 %2594 }
 0x643   : > { %v2591_v12 = vpop.permute.xlu0 %2590 }
 0x644   : > { %v5070_v20 = vpop.f32.mrb[16].mxu0  ;;  %5239 = vmatmul.mubr.msk.bf16.gmra.mrb[96].mxu0 %vm1506_vm0, %v2728_v59  ;;  %5150 = vmatprep.subr.bf16.mxu1 %v2591_v12 }
 0x645   : > { %v5071_v2 = vpop.f32.mrb[17].mxu0  ;;  %5240 = vmatprep.mubr.msk.bf16.mxu0 %vm1506_vm0, %v7996_v28  ;;  %5319 = vmatpush3.bf16.xpose.msra.mxu0 %v3438_v21  ;;  %v2579_v47 = vpop.permute.xlu1 %2578 }
 0x646   : > { %v8064_v15 = vadd.f32 %v5071_v2, %v5070_v20  ;;  %v5073_v25 = vpop.f32.mrb[18].mxu0  ;;  %5627 = vmatprep.subr.msk.bf16.mxu0 %vm1506_vm0, %v3396_v16  ;;  %5151 = vmatpush3.bf16.msra.mxu1 %v2575_v10 }
 0x647   : > { %v5074_v41 = vpop.f32.mrb[19].mxu0  ;;  %v2593_v46 = vpop.permute.xlu0 %2592 }
 0x648   : > { %9769 = vst [vmem:[#allocation35_spill] sm:$0xff] %v8064_v15  ;;  %v8067_v38 = vadd.f32 %v5074_v41, %v5073_v25  ;;  %5152 = vmatprep.subr.bf16.mxu1 %v2593_v46 }
 0x649   : > { %v2581_v55 = vpop.permute.xlu1 %2580 }
 0x64a   : > { %9770 = vst [vmem:[#allocation54_spill] sm:$0xff] %v8067_v38  ;;  %5153 = vmatpush3.bf16.msra.mxu1 %v2577_v60 }
 0x64b   : > { %5154 = vmatprep.subr.bf16.mxu1 %v2595_v37  ;;  %v2597_v63 = vpop.permute.xlu0 %2596 }
 0x64c   : > { %v5076_v4 = vpop.f32.mrb[20].mxu0  ;;  %5241 = vmatmul.mubr.msk.bf16.gmra.mrb[100].mxu0 %vm1506_vm0, %v7996_v28 }
 0x64d   : > { %v5077_v5 = vpop.f32.mrb[21].mxu0  ;;  %5242 = vmatprep.mubr.msk.bf16.mxu0 %vm1506_vm0, %v8025_v45  ;;  %5321 = vmatpush3.bf16.xpose.msra.mxu0 %v3441_v26  ;;  %v2599_v11 = vpop.permute.xlu1 %2598 }
 0x64e   : > { %v8074_v0 = vadd.f32 %v5077_v5, %v5076_v4  ;;  %v5079_v1 = vpop.f32.mrb[22].mxu0  ;;  %5628 = vmatprep.subr.msk.bf16.mxu0 %vm1506_vm0, %v3398_v29  ;;  %5155 = vmatpush3.bf16.msra.mxu1 %v2579_v47 }
 0x64f   : > { %v5080_v17 = vpop.f32.mrb[23].mxu0  ;;  %5156 = vmatprep.subr.bf16.mxu1 %v2597_v63  ;;  %v2601_v48 = vpop.permute.xlu0 %2600 }
 0x650   : > { %9771 = vst [vmem:[#allocation36_spill] sm:$0xff] %v8074_v0  ;;  %v8077_v7 = vadd.f32 %v5080_v17, %v5079_v1 }
 0x651   : > { %v2583_v18 = vpop.permute.xlu1 %2582 }
 0x652   : > { %9772 = vst [vmem:[#allocation57_spill] sm:$0xff] %v8077_v7  ;;  %5157 = vmatpush3.bf16.msra.mxu1 %v2581_v55 }
 0x653   : > { %5158 = vmatprep.subr.bf16.mxu1 %v2599_v11  ;;  %v2605_v56 = vpop.permute.xlu0 %2604 }
 0x654   : > { %v5082_v53 = vpop.f32.mrb[24].mxu0  ;;  %5243 = vmatmul.mubr.msk.bf16.gmra.mrb[104].mxu0 %vm1506_vm0, %v8025_v45 }
 0x655   : > { %v5083_v22 = vpop.f32.mrb[25].mxu0  ;;  %5244 = vmatprep.mubr.msk.bf16.mxu0 %vm1506_vm0, %v8012_v62  ;;  %5323 = vmatpush3.bf16.xpose.msra.mxu0 %v3444_v51  ;;  %v2585_v9 = vpop.permute.xlu1 %2584 }
 0x656   : > { %v8085_v40 = vadd.f32 %v5083_v22, %v5082_v53  ;;  %v5085_v23 = vpop.f32.mrb[26].mxu0  ;;  %5629 = vmatprep.subr.msk.bf16.mxu0 %vm1506_vm0, %v8021_v35  ;;  %5159 = vmatpush3.bf16.msra.mxu1 %v2583_v18 }
 0x657   : > { %v5086_v27 = vpop.f32.mrb[27].mxu0  ;;  %5160 = vmatprep.subr.bf16.mxu1 %v2601_v48  ;;  %v3225_v20 = vpop.permute.xlu0 %3224 }
 0x658   : > { %9773 = vst [vmem:[#allocation33_spill] sm:$0xff] %v8085_v40  ;;  %v8089_v61 = vadd.f32 %v5086_v27, %v5085_v23 }
 0x659   : > { %v2603_v14 = vpop.permute.xlu1 %2602 }
 0x65a   : > { %9774 = vst [vmem:[#allocation34_spill] sm:$0xff] %v8089_v61  ;;  %5161 = vmatpush3.bf16.msra.mxu1 %v2585_v9 }
 0x65b   : > { %5162 = vmatprep.subr.bf16.mxu1 %v2603_v14  ;;  %v8309_v7 = vpop.permute.xlu0 %3226 }
 0x65c   : > { %v5088_v30 = vpop.f32.mrb[28].mxu0  ;;  %5245 = vmatmul.mubr.msk.bf16.gmra.mrb[108].mxu0 %vm1506_vm0, %v8012_v62  ;;  %9798 = vst [vmem:[#allocation62_spill] sm:$0xff] %v8309_v7 }
 0x65d   : > { %v5089_v34 = vpop.f32.mrb[29].mxu0  ;;  %5325 = vmatpush3.bf16.xpose.msra.mxu0 %v3447_v58  ;;  %5326 = vmatprep.mubr.msk.bf16.mxu0 %vm1506_vm0, %v8041_v33  ;;  %v2587_v28 = vpop.permute.xlu1 %2586 }
 0x65e   : > { %v8097_v44 = vadd.f32 %v5089_v34, %v5088_v30  ;;  %v5091_v16 = vpop.f32.mrb[30].mxu0  ;;  %5163 = vmatpush3.bf16.msra.mxu1 %v2587_v28 }
 0x65f   : > { %v5092_v24 = vpop.f32.mrb[31].mxu0  ;;  %5164 = vmatprep.subr.bf16.mxu1 %v2605_v56 }
 0x660   : > { %9775 = vst [vmem:[#allocation55_spill] sm:$0xff] %v8097_v44  ;;  %v8099_v59 = vadd.f32 %v5092_v24, %v5091_v16 }
 0x661   : > { %v2589_v49 = vpop.permute.xlu1 %2588 }
 0x662   : > { %9776 = vst [vmem:[#allocation59_spill] sm:$0xff] %v8099_v59  ;;  %5165 = vmatpush3.bf16.msra.mxu1 %v2589_v49 }
 0x663   : > { %5246 = vmatprep.subr.bf16.mxu1 %v3225_v20 }
 0x664   : > { %v5094_v50 = vpop.f32.mrb[32].mxu0  ;;  %5327 = vmatmul.mubr.msk.bf16.vlgmr.msra.gmra.mrb[112].mxu0 %vm1506_vm0, %v8041_v33 }
 0x665   : > { %v5095_v62 = vpop.f32.mrb[33].mxu0  ;;  %5328 = vmatprep.mubr.msk.bf16.mxu0 %vm1506_vm0, %v8027_v42 }
 0x666   : > { %v8105_v31 = vadd.f32 %v5095_v62, %v5094_v50  ;;  %v5097_v13 = vpop.f32.mrb[34].mxu0 }
 0x667   : > { %v5098_v35 = vpop.f32.mrb[35].mxu0 }
 0x668   : > { %9777 = vst [vmem:[#allocation37_spill] sm:$0xff] %v8105_v31  ;;  %v8107_v45 = vadd.f32 %v5098_v35, %v5097_v13 }
 0x66a   : > { %9778 = vst [vmem:[#allocation56_spill] sm:$0xff] %v8107_v45 }
 0x66c   : > { %v5100_v52 = vpop.f32.mrb[36].mxu0  ;;  %5329 = vmatmul.mubr.msk.bf16.gmra.mrb[116].mxu0 %vm1506_vm0, %v8027_v42 }
 0x66d   : > { %v5101_v29 = vpop.f32.mrb[37].mxu0  ;;  %5330 = vmatprep.mubr.msk.bf16.mxu0 %vm1506_vm0, %v8049_v19 }
 0x66e   : > { %v8113_v57 = vadd.f32 %v5101_v29, %v5100_v52  ;;  %v5103_v43 = vpop.f32.mrb[38].mxu0  ;;  %v8221_v29 = vpop.permute.xlu1 %3208 }
 0x66f   : > { %v5104_v33 = vpop.f32.mrb[39].mxu0  ;;  %9785 = vst [vmem:[#allocation43_spill] sm:$0xff] %v8221_v29 }
 0x670   : > { %9779 = vst [vmem:[#allocation58_spill] sm:$0xff] %v8113_v57  ;;  %v8115_v10 = vadd.f32 %v5104_v33, %v5103_v43 }
 0x672   : > { %9780 = vst [vmem:[#allocation61_spill] sm:$0xff] %v8115_v10  ;;  %v8235_v20 = vpop.permute.xlu1 %3210 }
 0x673   : > { %9786 = vst [vmem:[#allocation38_spill] sm:$0xff] %v8235_v20 }
 0x674   : > { %v5106_v3 = vpop.f32.mrb[40].mxu0  ;;  %5331 = vmatmul.mubr.msk.bf16.gmra.mrb[120].mxu0 %vm1506_vm0, %v8049_v19 }
 0x675   : > { %v5107_v60 = vpop.f32.mrb[41].mxu0  ;;  %5332 = vmatprep.mubr.msk.bf16.mxu0 %vm1506_vm0, %v8033_v8 }
 0x676   : > { %v8121_v37 = vadd.f32 %v5107_v60, %v5106_v3  ;;  %v5109_v42 = vpop.f32.mrb[42].mxu0 }
 0x677   : > { %v5110_v21 = vpop.f32.mrb[43].mxu0 }
 0x678   : > { %9781 = vst [vmem:[#allocation60_spill] sm:$0xff] %v8121_v37  ;;  %v8123_v12 = vadd.f32 %v5110_v21, %v5109_v42 }
 0x67a   : > { %9782 = vst [vmem:[#allocation39_spill] sm:$0xff] %v8123_v12 }
 0x67c   : > { %5333 = vmatmul.mubr.msk.bf16.gmra.mrb[124].mxu0 %vm1506_vm0, %v8033_v8 }
 0x67d   : > { %5334 = vmatprep.mubr.msk.bf16.mxu0 %vm1506_vm0, %v8052_v6 }
 0x684   : > { %5335 = vmatmul.mubr.msk.bf16.gmra.mrb[128].mxu0 %vm1506_vm0, %v8052_v6 }
 0x685   : > { %5336 = vmatprep.mubr.msk.bf16.mxu0 %vm1506_vm0, %v8038_v54 }
 0x68c   : > { %5337 = vmatmul.mubr.msk.bf16.gmra.mrb[132].mxu0 %vm1506_vm0, %v8038_v54 }
 0x68d   : > { %5338 = vmatprep.mubr.msk.bf16.mxu0 %vm1506_vm0, %v8058_v39 }
 0x694   : > { %5339 = vmatmul.mubr.msk.bf16.gmra.mrb[136].mxu0 %vm1506_vm0, %v8058_v39 }
 0x695   : > { %5340 = vmatprep.mubr.msk.bf16.mxu0 %vm1506_vm0, %v8046_v32 }
 0x69c   : > { %5341 = vmatmul.mubr.msk.bf16.gmra.mrb[140].mxu0 %vm1506_vm0, %v8046_v32 }
 0x6af   : > { %v5112_v8 = vpop.f32.mrb[44].mxu0 }
 0x6b0   : > { %v5113_v19 = vpop.f32.mrb[45].mxu0 }
 0x6b1   : > { %v8143_v6 = vadd.f32 %v5113_v19, %v5112_v8  ;;  %v5115_v2 = vpop.f32.mrb[46].mxu0 }
 0x6b2   : > { %v5116_v47 = vpop.f32.mrb[47].mxu0 }
 0x6b3   : > { %9783 = vst [vmem:[#allocation41_spill] sm:$0xff] %v8143_v6  ;;  %v8145_v25 = vadd.f32 %v5116_v47, %v5115_v2 }
 0x6b5   : > { %9784 = vst [vmem:[#allocation42_spill] sm:$0xff] %v8145_v25 }
 0x6b7   : > { %v8147_v54 = vpop.f32.mrb[48].mxu0 }
 0x6b8   : > { %v8149_v41 = vpop.f32.mrb[49].mxu0 }
 0x6b9   : > { %v2302_v39 = vmax.f32 %v8147_v54, %v8149_v41  ;;  %v8153_v46 = vpop.f32.mrb[50].mxu0 }
 0x6ba   : > { %v8155_v55 = vpop.f32.mrb[51].mxu0 }
 0x6bb   : > { %v2305_v32 = vmax.f32 %v8153_v46, %v8155_v55  ;;  %2303 = vmax.xlane.f32.xlu0 %v2302_v39  ;;  %v8245_v39 = vpop.permute.xlu1 %3228 }
 0x6bc   : > { %9787 = vst [vmem:[#allocation45_spill] sm:$0xff] %v8245_v39 }
 0x6bd   : > { %2306 = vmax.xlane.f32.xlu1 %v2305_v32 }
 0x6bf   : > { %v8159_v26 = vpop.f32.mrb[52].mxu0 }
 0x6c0   : > { %v8161_v4 = vpop.f32.mrb[53].mxu0 }
 0x6c1   : > { %v2308_v63 = vmax.f32 %v8159_v26, %v8161_v4  ;;  %v8165_v5 = vpop.f32.mrb[54].mxu0 }
 0x6c2   : > { %v8167_v11 = vpop.f32.mrb[55].mxu0 }
 0x6c3   : > { %v2311_v1 = vmax.f32 %v8165_v5, %v8167_v11  ;;  %2309 = vmax.xlane.f32.xlu0 %v2308_v63 }
 0x6c7   : > { %2312 = vmax.xlane.f32.xlu0 %v2311_v1  ;;  %v8171_v17 = vpop.f32.mrb[56].mxu0 }
 0x6c8   : > { %v8173_v18 = vpop.f32.mrb[57].mxu0 }
 0x6c9   : > { %v2314_v51 = vmax.f32 %v8171_v17, %v8173_v18  ;;  %v8177_v53 = vpop.f32.mrb[58].mxu0 }
 0x6ca   : > { %v8179_v48 = vpop.f32.mrb[59].mxu0 }
 0x6cb   : > { %v2317_v22 = vmax.f32 %v8177_v53, %v8179_v48  ;;  %2315 = vmax.xlane.f32.xlu0 %v2314_v51  ;;  %v8253_v51 = vpop.permute.xlu1 %3212 }
 0x6cc   : > { %9788 = vst [vmem:[#allocation40_spill] sm:$0xff] %v8253_v51 }
 0x6ce   : > { %3852 = vrot.lane.b32.xlu1 %v7971_v36, %s6779_s15 }
 0x6cf   : > { %v8185_v9 = vpop.f32.mrb[60].mxu0 }
 0x6d0   : > { %v8187_v23 = vpop.f32.mrb[61].mxu0 }
 0x6d1   : > { %v2320_v27 = vmax.f32 %v8185_v9, %v8187_v23  ;;  %v8191_v14 = vpop.f32.mrb[62].mxu0 }
 0x6d2   : > { %v8193_v58 = vpop.f32.mrb[63].mxu0 }
 0x6d3   : > { %v2323_v30 = vmax.f32 %v8191_v14, %v8193_v58  ;;  %2321 = vmax.xlane.f32.xlu0 %v2320_v27 }
 0x6d7   : > { %v8197_v56 = vpop.f32.mrb[64].mxu0 }
 0x6d8   : > { %v8199_v34 = vpop.f32.mrb[65].mxu0 }
 0x6d9   : > { %v2326_v36 = vmax.f32 %v8197_v56, %v8199_v34  ;;  %v8203_v28 = vpop.f32.mrb[66].mxu0 }
 0x6da   : > { %v8205_v16 = vpop.f32.mrb[67].mxu0 }
 0x6db   : > { %v2329_v24 = vmax.f32 %v8203_v28, %v8205_v16  ;;  %2327 = vmax.xlane.f32.xlu0 %v2326_v36 }
 0x6df   : > { %v8209_v49 = vpop.f32.mrb[68].mxu0 }
 0x6e0   : > { %v8211_v50 = vpop.f32.mrb[69].mxu0 }
 0x6e1   : > { %v2332_v62 = vmax.f32 %v8209_v49, %v8211_v50  ;;  %v8215_v13 = vpop.f32.mrb[70].mxu0 }
 0x6e2   : > { %v8217_v35 = vpop.f32.mrb[71].mxu0 }
 0x6e3   : > { %v2335_v52 = vmax.f32 %v8215_v13, %v8217_v35  ;;  %2333 = vmax.xlane.f32.xlu0 %v2332_v62 }
 0x6e7   : > { %v8223_v43 = vpop.f32.mrb[72].mxu0 }
 0x6e8   : > { %v8225_v33 = vpop.f32.mrb[73].mxu0 }
 0x6e9   : > { %v2338_v3 = vmax.f32 %v8223_v43, %v8225_v33  ;;  %v8229_v60 = vpop.f32.mrb[74].mxu0 }
 0x6ea   : > { %v8231_v42 = vpop.f32.mrb[75].mxu0 }
 0x6eb   : > { %v2341_v21 = vmax.f32 %v8229_v60, %v8231_v42  ;;  %2339 = vmax.xlane.f32.xlu0 %v2338_v3 }
 0x6ef   : > { %v8237_v8 = vpop.f32.mrb[76].mxu0 }
 0x6f0   : > { %v8239_v19 = vpop.f32.mrb[77].mxu0 }
 0x6f1   : > { %v2344_v2 = vmax.f32 %v8237_v8, %v8239_v19  ;;  %v8243_v47 = vpop.f32.mrb[78].mxu0 }
 0x6f2   : > { %2318 = vmax.xlane.f32.xlu1 %v2317_v22  ;;  %v8247_v32 = vpop.f32.mrb[79].mxu0 }
 0x6f3   : > { %v2347_v63 = vmax.f32 %v8243_v47, %v8247_v32  ;;  %2345 = vmax.xlane.f32.xlu0 %v2344_v2  ;;  %v8265_v2 = vpop.permute.xlu1 %3214 }
 0x6f4   : > { %9789 = vst [vmem:[#allocation46_spill] sm:$0xff] %v8265_v2 }
 0x6f6   : > { %2324 = vmax.xlane.f32.xlu1 %v2323_v30 }
 0x6f7   : > { %v8251_v1 = vpop.f32.mrb[80].mxu0 }
 0x6f8   : > { %v8255_v27 = vpop.f32.mrb[81].mxu0 }
 0x6f9   : > { %v2952_v36 = vmax.f32 %v8251_v1, %v8255_v27  ;;  %v8259_v62 = vpop.f32.mrb[82].mxu0 }
 0x6fa   : > { %v8261_v3 = vpop.f32.mrb[83].mxu0  ;;  %2330 = vmax.xlane.f32.xlu1 %v2329_v24 }
 0x6fb   : > { %v2955_v22 = vmax.f32 %v8259_v62, %v8261_v3  ;;  %2953 = vmax.xlane.f32.xlu0 %v2952_v36  ;;  %v8279_v36 = vpop.permute.xlu1 %3232 }
 0x6fc   : > { %9790 = vst [vmem:[#allocation44_spill] sm:$0xff] %v8279_v36 }
 0x6fe   : > { %2336 = vmax.xlane.f32.xlu1 %v2335_v52 }
 0x6ff   : > { %v8267_v30 = vpop.f32.mrb[84].mxu0  ;;  %v8289_v45 = vpop.permute.xlu1 %3216 }
 0x700   : > { %v8269_v6 = vpop.f32.mrb[85].mxu0  ;;  %9791 = vst [vmem:[#allocation47_spill] sm:$0xff] %v8289_v45  ;;  %v8321_v45 = vpop.permute.xlu0 %3230 }
 0x701   : > { %v2958_v25 = vmax.f32 %v8267_v30, %v8269_v6  ;;  %v8273_v37 = vpop.f32.mrb[86].mxu0  ;;  %9802 = vst [vmem:[#allocation66_spill] sm:$0xff] %v8321_v45 }
 0x702   : > { %v8275_v12 = vpop.f32.mrb[87].mxu0  ;;  %2342 = vmax.xlane.f32.xlu1 %v2341_v21 }
 0x703   : > { %v2961_v24 = vmax.f32 %v8273_v37, %v8275_v12  ;;  %2959 = vmax.xlane.f32.xlu0 %v2958_v25 }
 0x706   : > { %2348 = vmax.xlane.f32.xlu1 %v2347_v63  ;;  %v8297_v63 = vpop.permute.xlu1 %3218 }
 0x707   : > { %v8281_v52 = vpop.f32.mrb[88].mxu0  ;;  %9794 = vst [vmem:[#allocation52_spill] sm:$0xff] %v8297_v63 }
 0x708   : > { %v8283_v57 = vpop.f32.mrb[89].mxu0 }
 0x709   : > { %v2964_v10 = vmax.f32 %v8281_v52, %v8283_v57  ;;  %v8287_v31 = vpop.f32.mrb[90].mxu0 }
 0x70a   : > { %v8291_v44 = vpop.f32.mrb[91].mxu0  ;;  %2956 = vmax.xlane.f32.xlu1 %v2955_v22 }
 0x70b   : > { %9792 = vst [vmem:[#allocation48_spill] sm:$0xff] %v8291_v44  ;;  %v2967_v25 = vmax.f32 %v8287_v31, %v8291_v44  ;;  %2965 = vmax.xlane.f32.xlu0 %v2964_v10  ;;  %v8311_v10 = vpop.permute.xlu1 %3236 }
 0x70c   : > { %9799 = vst [vmem:[#allocation63_spill] sm:$0xff] %v8311_v10  ;;  %v8331_v10 = vpop.permute.xlu0 %3234 }
 0x70d   : > { %9805 = vst [vmem:[#allocation69_spill] sm:$0xff] %v8331_v10 }
 0x70e   : > { %2962 = vmax.xlane.f32.xlu1 %v2961_v24 }
 0x70f   : > { %v8295_v21 = vpop.f32.mrb[92].mxu0 }
 0x710   : > { %9793 = vst [vmem:[#allocation49_spill] sm:$0xff] %v8295_v21  ;;  %v8299_v59 = vpop.f32.mrb[93].mxu0 }
 0x711   : > { %9795 = vst [vmem:[#allocation50_spill] sm:$0xff] %v8299_v59  ;;  %v2970_v40 = vmax.f32 %v8295_v21, %v8299_v59  ;;  %v8303_v61 = vpop.f32.mrb[94].mxu0 }
 0x712   : > { %9796 = vst [vmem:[#allocation51_spill] sm:$0xff] %v8303_v61  ;;  %v8305_v0 = vpop.f32.mrb[95].mxu0  ;;  %2968 = vmax.xlane.f32.xlu1 %v2967_v25 }
 0x713   : > { %9797 = vst [vmem:[#allocation53_spill] sm:$0xff] %v8305_v0  ;;  %v2973_v22 = vmax.f32 %v8303_v61, %v8305_v0 }
 0x715   : > { %2974 = vmax.xlane.f32.xlu0 %v2973_v22  ;;  %v8327_v22 = vpop.permute.xlu1 %3220 }
 0x716   : > { %2971 = vmax.xlane.f32.xlu1 %v2970_v40  ;;  %9803 = vst [vmem:[#allocation67_spill] sm:$0xff] %v8327_v22 }
 0x717   : > { %v8313_v24 = vpop.f32.mrb[96].mxu0 }
 0x718   : > { %9800 = vst [vmem:[#allocation64_spill] sm:$0xff] %v8313_v24  ;;  %v8315_v15 = vpop.f32.mrb[97].mxu0 }
 0x719   : > { %9801 = vst [vmem:[#allocation65_spill] sm:$0xff] %v8315_v15  ;;  %v2976_v38 = vmax.f32 %v8313_v24, %v8315_v15  ;;  %v8319_v63 = vpop.f32.mrb[98].mxu0  ;;  %v8339_v45 = vpop.permute.xlu1 %3222 }
 0x71a   : > { %v8323_v25 = vpop.f32.mrb[99].mxu0  ;;  %9807 = vst [vmem:[#allocation71_spill] sm:$0xff] %v8339_v45 }
 0x71b   : > { %v2979_v36 = vmax.f32 %v8319_v63, %v8323_v25  ;;  %2977 = vmax.xlane.f32.xlu0 %v2976_v38 }
 0x71d   : > { %2980 = vmax.xlane.f32.xlu1 %v2979_v36  ;;  %v8345_v36 = vpop.permute.xlu0 %3238  ;;  %v8349_v10 = vpop.permute.xlu1 %3842 }
 0x71e   : > { %9808 = vst [vmem:[#allocation72_spill] sm:$0xff] %v8345_v36  ;;  %9810 = vst [vmem:[#allocation74_spill] sm:$0xff] %v8349_v10 }
 0x71f   : > { %v8329_v40 = vpop.f32.mrb[100].mxu0 }
 0x720   : > { %9804 = vst [vmem:[#allocation68_spill] sm:$0xff] %v8329_v40  ;;  %v8333_v2 = vpop.f32.mrb[101].mxu0 }
 0x721   : > { %9806 = vst [vmem:[#allocation70_spill] sm:$0xff] %v8333_v2  ;;  %v2982_v51 = vmax.f32 %v8329_v40, %v8333_v2  ;;  %v8337_v39 = vpop.f32.mrb[102].mxu0 }
 0x722   : > { %v8341_v20 = vpop.f32.mrb[103].mxu0 }
 0x723   : > { %v2985_v38 = vmax.f32 %v8337_v39, %v8341_v20  ;;  %2983 = vmax.xlane.f32.xlu0 %v2982_v51  ;;  %v8361_v51 = vpop.permute.xlu0 %3858 }
 0x724   : > { %9812 = vst [vmem:[#allocation76_spill] sm:$0xff] %v8361_v51 }
 0x725   : > { %2986 = vmax.xlane.f32.xlu1 %v2985_v38  ;;  %v8363_v38 = vpop.permute.xlu1 %3844 }
 0x726   : > { %9813 = vst [vmem:[#allocation77_spill] sm:$0xff] %v8363_v38 }
 0x727   : > { %v8347_v22 = vpop.f32.mrb[104].mxu0  ;;  %v8373_v15 = vpop.permute.xlu0 %3860 }
 0x728   : > { %9809 = vst [vmem:[#allocation73_spill] sm:$0xff] %v8347_v22  ;;  %v8351_v7 = vpop.f32.mrb[105].mxu0  ;;  %9816 = vst [vmem:[#allocation80_spill] sm:$0xff] %v8373_v15 }
 0x729   : > { %9811 = vst [vmem:[#allocation75_spill] sm:$0xff] %v8351_v7  ;;  %v2988_v29 = vmax.f32 %v8347_v22, %v8351_v7  ;;  %v8355_v2 = vpop.f32.mrb[106].mxu0 }
 0x72a   : > { %v8357_v45 = vpop.f32.mrb[107].mxu0 }
 0x72b   : > { %v2991_v40 = vmax.f32 %v8355_v2, %v8357_v45  ;;  %2989 = vmax.xlane.f32.xlu0 %v2988_v29  ;;  %v8383_v51 = vpop.permute.xlu0 %3864 }
 0x72c   : > { %9819 = vst [vmem:[#allocation83_spill] sm:$0xff] %v8383_v51 }
 0x72d   : > { %2992 = vmax.xlane.f32.xlu1 %v2991_v40  ;;  %v8379_v40 = vpop.permute.xlu1 %3862 }
 0x72e   : > { %9817 = vst [vmem:[#allocation81_spill] sm:$0xff] %v8379_v40 }
 0x72f   : > { %v8365_v36 = vpop.f32.mrb[108].mxu0 }
 0x730   : > { %9814 = vst [vmem:[#allocation78_spill] sm:$0xff] %v8365_v36  ;;  %v8367_v10 = vpop.f32.mrb[109].mxu0 }
 0x731   : > { %9815 = vst [vmem:[#allocation79_spill] sm:$0xff] %v8367_v10  ;;  %v2994_v7 = vmax.f32 %v8365_v36, %v8367_v10  ;;  %v8371_v22 = vpop.f32.mrb[110].mxu0  ;;  %v8391_v15 = vpop.permute.xlu1 %3846 }
 0x732   : > { %v8375_v24 = vpop.f32.mrb[111].mxu0  ;;  %9822 = vst [vmem:[#allocation86_spill] sm:$0xff] %v8391_v15 }
 0x733   : > { %v2997_v29 = vmax.f32 %v8371_v22, %v8375_v24  ;;  %2995 = vmax.xlane.f32.xlu1 %v2994_v7 }
 0x735   : > { %2998 = vmax.xlane.f32.xlu0 %v2997_v29  ;;  %v8397_v29 = vpop.permute.xlu0 %3866  ;;  %v8401_v51 = vpop.permute.xlu1 %3848 }
 0x736   : > { %9824 = vst [vmem:[#allocation88_spill] sm:$0xff] %v8397_v29  ;;  %9826 = vst [vmem:[#allocation90_spill] sm:$0xff] %v8401_v51 }
 0x737   : > { %v8381_v38 = vpop.f32.mrb[112].mxu0 }
 0x738   : > { %9818 = vst [vmem:[#allocation82_spill] sm:$0xff] %v8381_v38  ;;  %v8385_v0 = vpop.f32.mrb[113].mxu0 }
 0x739   : > { %9820 = vst [vmem:[#allocation84_spill] sm:$0xff] %v8385_v0  ;;  %v3586_v10 = vmax.f32 %v8381_v38, %v8385_v0  ;;  %v8389_v36 = vpop.f32.mrb[114].mxu0 }
 0x73a   : > { %9821 = vst [vmem:[#allocation85_spill] sm:$0xff] %v8389_v36  ;;  %v8393_v59 = vpop.f32.mrb[115].mxu0 }
 0x73b   : > { %9823 = vst [vmem:[#allocation87_spill] sm:$0xff] %v8393_v59  ;;  %v3589_v7 = vmax.f32 %v8389_v36, %v8393_v59  ;;  %3587 = vmax.xlane.f32.xlu0 %v3586_v10  ;;  %v8413_v10 = vpop.permute.xlu0 %3868 }
 0x73c   : > { %9830 = vst [vmem:[#allocation94_spill] sm:$0xff] %v8413_v10 }
 0x73d   : > { %3590 = vmax.xlane.f32.xlu1 %v3589_v7  ;;  %v8415_v7 = vpop.permute.xlu1 %3850 }
 0x73e   : > { %9831 = vst [vmem:[#allocation95_spill] sm:$0xff] %v8415_v7 }
 0x73f   : > { %v8399_v40 = vpop.f32.mrb[116].mxu0 }
 0x740   : > { %9825 = vst [vmem:[#allocation89_spill] sm:$0xff] %v8399_v40  ;;  %v8403_v21 = vpop.f32.mrb[117].mxu0 }
 0x741   : > { %9827 = vst [vmem:[#allocation91_spill] sm:$0xff] %v8403_v21  ;;  %v3592_v61 = vmax.f32 %v8399_v40, %v8403_v21  ;;  %v8407_v44 = vpop.f32.mrb[118].mxu0 }
 0x742   : > { %9828 = vst [vmem:[#allocation92_spill] sm:$0xff] %v8407_v44  ;;  %v8409_v15 = vpop.f32.mrb[119].mxu0 }
 0x743   : > { %9829 = vst [vmem:[#allocation93_spill] sm:$0xff] %v8409_v15  ;;  %v3595_v59 = vmax.f32 %v8407_v44, %v8409_v15  ;;  %3593 = vmax.xlane.f32.xlu0 %v3592_v61 }
 0x745   : > { %3596 = vmax.xlane.f32.xlu1 %v3595_v59 }
 0x747   : > { %v8417_v29 = vpop.f32.mrb[120].mxu0 }
 0x748   : > { %9832 = vst [vmem:[#allocation96_spill] sm:$0xff] %v8417_v29  ;;  %v2304_v51 = vpop.xlane.xlu0 %2303  ;;  %v8419_v36 = vpop.f32.mrb[121].mxu0 }
 0x749   : > { %9833 = vst [vmem:[#allocation97_spill] sm:$0xff] %v8419_v36  ;;  %v2350_v21 = vsub.f32 %v8147_v54, %v2304_v51  ;;  %v2351_v40 = vsub.f32 %v8149_v41, %v2304_v51  ;;  %v3598_v0 = vmax.f32 %v8417_v29, %v8419_v36  ;;  %v8425_v38 = vpop.f32.mrb[122].mxu0 }
 0x74a   : > { %v8427_v61 = vpop.f32.mrb[123].mxu0  ;;  %v2307_v10 = vpop.xlane.xlu1 %2306 }
 0x74b   : > { %9834 = vst [vmem:[#allocation98_spill] sm:$0xff] %v8427_v61  ;;  %v2382_v59 = vmul.f32 1.442695, %v2350_v21  ;;  %v2384_v15 = vmul.f32 1.442695, %v2351_v40  ;;  %v3601_v7 = vmax.f32 %v8425_v38, %v8427_v61  ;;  %v2352_v44 = vsub.f32 %v8153_v46, %v2307_v10  ;;  %3599 = vmax.xlane.f32.xlu0 %v3598_v0 }
 0x74c   : > { %v2353_v54 = vsub.f32 %v8155_v55, %v2307_v10 }
 0x74d   : > { %6072 = vpow2.f32 %v2382_v59  ;;  %v2386_v41 = vmul.f32 1.442695, %v2352_v44  ;;  %3602 = vmax.xlane.f32.xlu1 %v3601_v7 }
 0x74e   : > { %6074 = vpow2.f32 %v2384_v15  ;;  %v2388_v51 = vmul.f32 1.442695, %v2353_v54 }
 0x74f   : > { %6076 = vpow2.f32 %v2386_v41  ;;  %v8433_v36 = vpop.f32.mrb[124].mxu0 }
 0x750   : > { %9835 = vst [vmem:[#allocation99_spill] sm:$0xff] %v8433_v36  ;;  %6078 = vpow2.f32 %v2388_v51  ;;  %v2310_v29 = vpop.xlane.xlu0 %2309  ;;  %v8435_v21 = vpop.f32.mrb[125].mxu0 }
 0x751   : > { %9836 = vst [vmem:[#allocation100_spill] sm:$0xff] %v8435_v21  ;;  %v2354_v40 = vsub.f32 %v8159_v26, %v2310_v29  ;;  %v2355_v61 = vsub.f32 %v8161_v4, %v2310_v29  ;;  %v3604_v0 = vmax.f32 %v8433_v36, %v8435_v21  ;;  %v8441_v46 = vpop.f32.mrb[126].mxu0 }
 0x752   : > { %v8443_v44 = vpop.f32.mrb[127].mxu0 }
 0x753   : > { %v2390_v15 = vmul.f32 1.442695, %v2354_v40  ;;  %v2392_v55 = vmul.f32 1.442695, %v2355_v61  ;;  %v3607_v10 = vmax.f32 %v8441_v46, %v8443_v44  ;;  %3605 = vmax.xlane.f32.xlu1 %v3604_v0 }
 0x754   : > { %v2313_v7 = vpop.xlane.xlu0 %2312 }
 0x755   : > { %6080 = vpow2.f32 %v2390_v15  ;;  %v2356_v59 = vsub.f32 %v8165_v5, %v2313_v7  ;;  %v2357_v26 = vsub.f32 %v8167_v11, %v2313_v7  ;;  %3608 = vmax.xlane.f32.xlu0 %v3607_v10 }
 0x756   : > { %6082 = vpow2.f32 %v2392_v55 }
 0x757   : > { %v8449_v4 = vpop.eup %6072  ;;  %v8451_v29 = vpop.f32.mrb[128].mxu0  ;;  %v2394_v41 = vmul.f32 1.442695, %v2356_v59  ;;  %v2396_v0 = vmul.f32 1.442695, %v2357_v26 }
 0x758   : > { %9837 = vst [vmem:[#allocation101_spill] sm:$0xff] %v8451_v29  ;;  %v8453_v54 = vpop.eup %6074  ;;  %v2316_v61 = vpop.xlane.xlu0 %2315 }
 0x759   : > { %v8455_v51 = vpop.f32.mrb[129].mxu0  ;;  %v8457_v40 = vpop.eup %6076  ;;  %v2358_v15 = vsub.f32 %v8171_v17, %v2316_v61  ;;  %v2359_v5 = vsub.f32 %v8173_v18, %v2316_v61  ;;  %v2446_v7 = vadd.f32 %v8453_v54, %v8449_v4  ;;  %6084 = vpow2.f32 %v2394_v41 }
 0x75a   : > { %9838 = vst [vmem:[#allocation102_spill] sm:$0xff] %v8455_v51  ;;  %v3610_v11 = vmax.f32 %v8451_v29, %v8455_v51  ;;  %v8463_v55 = vpop.f32.mrb[130].mxu0  ;;  %v8465_v10 = vpop.eup %6078  ;;  %6086 = vpow2.f32 %v2396_v0 }
 0x75b   : > { %9839 = vst [vmem:[#allocation103_spill] sm:$0xff] %v8463_v55  ;;  %9840 = vst [vmem:[#allocation104_spill] sm:$0xff] %v8465_v10  ;;  %v8469_v59 = vpop.f32.mrb[131].mxu0  ;;  %v2449_v17 = vadd.f32 %v8465_v10, %v8457_v40  ;;  %v2398_v18 = vmul.f32 1.442695, %v2358_v15  ;;  %2447 = vadd.xlane.f32.xlu0 %v2446_v7 }
 0x75c   : > { %9841 = vst [vmem:[#allocation105_spill] sm:$0xff] %v8469_v59  ;;  %v3613_v21 = vmax.f32 %v8463_v55, %v8469_v59  ;;  %v2400_v26 = vmul.f32 1.442695, %v2359_v5 }
 0x75d   : > { %2450 = vadd.xlane.f32.xlu1 %v2449_v17  ;;  %6088 = vpow2.f32 %v2398_v18 }
 0x75e   : > { %6090 = vpow2.f32 %v2400_v26 }
 0x75f   : > { %v8475_v61 = vpop.eup %6080  ;;  %v8477_v51 = vpop.f32.mrb[132].mxu0  ;;  %3611 = vmax.xlane.f32.xlu0 %v3610_v11 }
 0x760   : > { %9842 = vst [vmem:[#allocation106_spill] sm:$0xff] %v8475_v61  ;;  %9843 = vst [vmem:[#allocation107_spill] sm:$0xff] %v8477_v51  ;;  %v8479_v29 = vpop.eup %6082  ;;  %v8481_v36 = vpop.f32.mrb[133].mxu0 }
 0x761   : > { %9844 = vst [vmem:[#allocation108_spill] sm:$0xff] %v8479_v29  ;;  %9845 = vst [vmem:[#allocation109_spill] sm:$0xff] %v8481_v36  ;;  %v3616_v59 = vmax.f32 %v8477_v51, %v8481_v36  ;;  %3614 = vmax.xlane.f32.xlu1 %v3613_v21  ;;  %v8485_v41 = vpop.f32.mrb[134].mxu0  ;;  %v2452_v0 = vadd.f32 %v8479_v29, %v8475_v61 }
 0x762   : > { %9846 = vst [vmem:[#allocation110_spill] sm:$0xff] %v8485_v41  ;;  %v8489_v15 = vpop.f32.mrb[135].mxu0 }
 0x763   : > { %9847 = vst [vmem:[#allocation111_spill] sm:$0xff] %v8489_v15  ;;  %v3619_v5 = vmax.f32 %v8485_v41, %v8489_v15  ;;  %2453 = vadd.xlane.f32.xlu0 %v2452_v0  ;;  %v8493_v11 = vpop.eup %6084 }
 0x764   : > { %9848 = vst [vmem:[#allocation112_spill] sm:$0xff] %v8493_v11  ;;  %v8495_v7 = vpop.eup %6086 }
 0x765   : > { %3620 = vmax.xlane.f32.xlu1 %v3619_v5  ;;  %9849 = vst [vmem:[#allocation113_spill] sm:$0xff] %v8495_v7  ;;  %v2455_v0 = vadd.f32 %v8495_v7, %v8493_v11 }
 0x767   : > { %v8497_v17 = vpop.f32.mrb[136].mxu0  ;;  %3617 = vmax.xlane.f32.xlu0 %v3616_v59  ;;  %v8505_v36 = vpop.eup %6088 }
 0x768   : > { %9850 = vst [vmem:[#allocation114_spill] sm:$0xff] %v8497_v17  ;;  %v8499_v21 = vpop.f32.mrb[137].mxu0  ;;  %9853 = vst [vmem:[#allocation117_spill] sm:$0xff] %v8505_v36  ;;  %v8511_v15 = vpop.eup %6090 }
 0x769   : > { %9851 = vst [vmem:[#allocation115_spill] sm:$0xff] %v8499_v21  ;;  %v3622_v18 = vmax.f32 %v8497_v17, %v8499_v21  ;;  %v8503_v26 = vpop.f32.mrb[138].mxu0  ;;  %9855 = vst [vmem:[#allocation119_spill] sm:$0xff] %v8511_v15  ;;  %v2458_v59 = vadd.f32 %v8511_v15, %v8505_v36 }
 0x76a   : > { %9852 = vst [vmem:[#allocation116_spill] sm:$0xff] %v8503_v26  ;;  %v8509_v5 = vpop.f32.mrb[139].mxu0 }
 0x76b   : > { %9854 = vst [vmem:[#allocation118_spill] sm:$0xff] %v8509_v5  ;;  %v3625_v41 = vmax.f32 %v8503_v26, %v8509_v5  ;;  %2456 = vadd.xlane.f32.xlu0 %v2455_v0  ;;  %v2322_v0 = vpop.xlane.xlu0 %2321 }
 0x76c   : > { %v2362_v36 = vsub.f32 %v8185_v9, %v2322_v0 }
 0x76d   : > { %3626 = vmax.xlane.f32.xlu1 %v3625_v41  ;;  %v8529_v41 = vpop.permute.xlu1 %3852 }
 0x76e   : > { %9858 = vst [vmem:[#allocation122_spill] sm:$0xff] %v8529_v41 }
 0x76f   : > { %v8517_v21 = vpop.f32.mrb[140].mxu0  ;;  %2459 = vadd.xlane.f32.xlu0 %v2458_v59  ;;  %v2363_v59 = vsub.f32 %v8187_v23, %v2322_v0  ;;  %v2328_v23 = vpop.xlane.xlu0 %2327 }
 0x770   : > { %9856 = vst [vmem:[#allocation120_spill] sm:$0xff] %v8517_v21  ;;  %v8519_v17 = vpop.f32.mrb[141].mxu0 }
 0x771   : > { %9857 = vst [vmem:[#allocation121_spill] sm:$0xff] %v8519_v17  ;;  %v3628_v51 = vmax.f32 %v8517_v21, %v8519_v17  ;;  %v8523_v55 = vpop.f32.mrb[142].mxu0  ;;  %v2406_v21 = vmul.f32 1.442695, %v2362_v36  ;;  %v2408_v29 = vmul.f32 1.442695, %v2363_v59  ;;  %v2366_v36 = vsub.f32 %v8197_v56, %v2328_v23 }
 0x772   : > { %v8525_v11 = vpop.f32.mrb[143].mxu0 }
 0x773   : > { %3629 = vmax.xlane.f32.xlu1 %v3628_v51  ;;  %3623 = vmax.xlane.f32.xlu0 %v3622_v18 }
 0x77f   : > { %v2319_v15 = vpop.xlane.xlu1 %2318 }
 0x780   : > { %v2360_v26 = vsub.f32 %v8177_v53, %v2319_v15  ;;  %v2361_v17 = vsub.f32 %v8179_v48, %v2319_v15 }
 0x782   : > { %v2402_v61 = vmul.f32 1.442695, %v2360_v26  ;;  %v2404_v7 = vmul.f32 1.442695, %v2361_v17 }
 0x783   : > { %v2325_v10 = vpop.xlane.xlu1 %2324 }
 0x784   : > { %6092 = vpow2.f32 %v2402_v61  ;;  %v2364_v51 = vsub.f32 %v8191_v14, %v2325_v10  ;;  %v2365_v18 = vsub.f32 %v8193_v58, %v2325_v10  ;;  %v2367_v14 = vsub.f32 %v8199_v34, %v2328_v23 }
 0x785   : > { %6094 = vpow2.f32 %v2404_v7 }
 0x786   : > { %6096 = vpow2.f32 %v2406_v21  ;;  %v2410_v9 = vmul.f32 1.442695, %v2364_v51  ;;  %v2412_v5 = vmul.f32 1.442695, %v2365_v18  ;;  %v2416_v56 = vmul.f32 1.442695, %v2367_v14 }
 0x787   : > { %6098 = vpow2.f32 %v2408_v29  ;;  %v2331_v0 = vpop.xlane.xlu1 %2330 }
 0x788   : > { %v2368_v53 = vsub.f32 %v8203_v28, %v2331_v0  ;;  %v2369_v48 = vsub.f32 %v8205_v16, %v2331_v0  ;;  %6100 = vpow2.f32 %v2410_v9  ;;  %v2414_v28 = vmul.f32 1.442695, %v2366_v36 }
 0x789   : > { %6102 = vpow2.f32 %v2412_v5 }
 0x78a   : > { %v2418_v61 = vmul.f32 1.442695, %v2368_v53  ;;  %v2420_v15 = vmul.f32 1.442695, %v2369_v48 }
 0x78b   : > { %v2337_v58 = vpop.xlane.xlu1 %2336 }
 0x78c   : > { %6104 = vpow2.f32 %v2418_v61  ;;  %v2372_v10 = vsub.f32 %v8215_v13, %v2337_v58  ;;  %v2373_v29 = vsub.f32 %v8217_v35, %v2337_v58 }
 0x78d   : > { %6106 = vpow2.f32 %v2420_v15 }
 0x78e   : > { %v8543_v7 = vpop.eup %6092  ;;  %v2426_v17 = vmul.f32 1.442695, %v2372_v10  ;;  %v2428_v16 = vmul.f32 1.442695, %v2373_v29 }
 0x78f   : > { %v8545_v21 = vpop.eup %6094  ;;  %v2343_v26 = vpop.xlane.xlu1 %2342 }
 0x790   : > { %v8547_v5 = vpop.eup %6096  ;;  %6108 = vpow2.f32 %v2426_v17  ;;  %v2376_v34 = vsub.f32 %v8229_v60, %v2343_v26  ;;  %v2377_v59 = vsub.f32 %v8231_v42, %v2343_v26  ;;  %v2461_v13 = vadd.f32 %v8545_v21, %v8543_v7 }
 0x791   : > { %v8553_v35 = vpop.eup %6098  ;;  %6110 = vpow2.f32 %v2428_v16 }
 0x792   : > { %6112 = vpow2.f32 %v2414_v28  ;;  %v2434_v51 = vmul.f32 1.442695, %v2376_v34  ;;  %v2436_v18 = vmul.f32 1.442695, %v2377_v59  ;;  %2462 = vadd.xlane.f32.xlu0 %v2461_v13  ;;  %v8555_v9 = vpop.eup %6100  ;;  %v2464_v53 = vadd.f32 %v8553_v35, %v8547_v5 }
 0x793   : > { %6114 = vpow2.f32 %v2416_v56  ;;  %v2349_v23 = vpop.xlane.xlu1 %2348  ;;  %v8557_v0 = vpop.eup %6102  ;;  %v9861_v34 = vmax.f32 %v8523_v55, %v8525_v11 }
 0x794   : > { %6116 = vpow2.f32 %v2434_v51  ;;  %v2380_v60 = vsub.f32 %v8243_v47, %v2349_v23  ;;  %v2381_v42 = vsub.f32 %v8247_v32, %v2349_v23  ;;  %v2467_v58 = vadd.f32 %v8557_v0, %v8555_v9 }
 0x795   : > { %6118 = vpow2.f32 %v2436_v18 }
 0x796   : > { %v8563_v48 = vpop.eup %6104  ;;  %v2442_v36 = vmul.f32 1.442695, %v2380_v60  ;;  %v2444_v61 = vmul.f32 1.442695, %v2381_v42  ;;  %2465 = vadd.xlane.f32.xlu0 %v2464_v53 }
 0x797   : > { %v8565_v15 = vpop.eup %6106  ;;  %v2957_v14 = vpop.xlane.xlu1 %2956 }
 0x798   : > { %6120 = vpow2.f32 %v2442_v36  ;;  %v3002_v47 = vsub.f32 %v8259_v62, %v2957_v14  ;;  %v3003_v32 = vsub.f32 %v8261_v3, %v2957_v14  ;;  %v2473_v10 = vadd.f32 %v8565_v15, %v8563_v48  ;;  %v2334_v36 = vpop.xlane.xlu0 %2333 }
 0x799   : > { %6122 = vpow2.f32 %v2444_v61 }
 0x79a   : > { %v8573_v29 = vpop.eup %6108  ;;  %v3036_v28 = vmul.f32 1.442695, %v3002_v47  ;;  %v3038_v17 = vmul.f32 1.442695, %v3003_v32  ;;  %2468 = vadd.xlane.f32.xlu0 %v2467_v58  ;;  %2474 = vadd.xlane.f32.xlu1 %v2473_v10 }
 0x79b   : > { %9859 = vst [vmem:[#allocation123_spill] sm:$0xff] %v8573_v29  ;;  %v8575_v16 = vpop.eup %6110  ;;  %v8606_v32 = vpop.xlane.xlu1 %2962 }
 0x79c   : > { %v8577_v56 = vpop.eup %6112  ;;  %6124 = vpow2.f32 %v3036_v28  ;;  %v2479_v62 = vadd.f32 %v8575_v16, %v8573_v29  ;;  %v2340_v14 = vpop.xlane.xlu0 %2339  ;;  %v6416_v28 = vld [vmem:[#allocation3 + $0x70] sm:$0xff] }
 0x79d   : > { %v8581_v26 = vpop.eup %6114  ;;  %6126 = vpow2.f32 %v3038_v17  ;;  %v2374_v41 = vsub.f32 %v8223_v43, %v2340_v14 }
 0x79e   : > { %v8583_v3 = vpop.eup %6116  ;;  %3632 = vmax.xlane.f32.xlu0 %v9861_v34  ;;  %2480 = vadd.xlane.f32.xlu1 %v2479_v62  ;;  %v2470_v13 = vadd.f32 %v8581_v26, %v8577_v56  ;;  %v6417_v62 = vld [vmem:[#allocation3 + $0x30] sm:$0xff] }
 0x79f   : > { %9860 = vst [vmem:[#allocation124_spill] sm:$0xff] %v8583_v3  ;;  %v8588_v59 = vpop.eup %6118  ;;  %v8609_v17 = vpop.xlane.xlu1 %2968 }
 0x7a0   : > { %9862 = vst [vmem:[#allocation125_spill] sm:$0xff] %v8588_v59  ;;  %v2485_v51 = vadd.f32 %v8588_v59, %v8583_v3  ;;  %v2346_v58 = vpop.xlane.xlu0 %2345 }
 0x7a1   : > { %v2379_v3 = vsub.f32 %v8239_v19, %v2346_v58 }
 0x7a2   : > { %v8594_v18 = vpop.eup %6120  ;;  %2471 = vadd.xlane.f32.xlu0 %v2470_v13  ;;  %2486 = vadd.xlane.f32.xlu1 %v2485_v51  ;;  %v2370_v13 = vsub.f32 %v8209_v49, %v2334_v36  ;;  %v2371_v51 = vsub.f32 %v8211_v50, %v2334_v36  ;;  %v2430_v49 = vmul.f32 1.442695, %v2374_v41 }
 0x7a3   : > { %9863 = vst [vmem:[#allocation126_spill] sm:$0xff] %v8594_v18  ;;  %v8596_v23 = vpop.eup %6122 }
 0x7a4   : > { %9864 = vst [vmem:[#allocation127_spill] sm:$0xff] %v8596_v23  ;;  %v2491_v60 = vadd.f32 %v8596_v23, %v8594_v18  ;;  %v2954_v47 = vpop.xlane.xlu0 %2953  ;;  %v2378_v18 = vsub.f32 %v8237_v8, %v2346_v58  ;;  %v2440_v8 = vmul.f32 1.442695, %v2379_v3 }
 0x7a5   : > { %v3000_v50 = vsub.f32 %v8251_v1, %v2954_v47 }
 0x7a6   : > { %v8600_v42 = vpop.eup %6124  ;;  %2492 = vadd.xlane.f32.xlu1 %v2491_v60  ;;  %v2438_v43 = vmul.f32 1.442695, %v2378_v18 }
 0x7a7   : > { %9865 = vst [vmem:[#allocation128_spill] sm:$0xff] %v8600_v42  ;;  %v8602_v53 = vpop.eup %6126  ;;  %v3032_v29 = vmul.f32 1.442695, %v3000_v50 }
 0x7a8   : > { %9866 = vst [vmem:[#allocation129_spill] sm:$0xff] %v8602_v53  ;;  %v3099_v61 = vadd.f32 %v8602_v53, %v8600_v42  ;;  %v2960_v10 = vpop.xlane.xlu0 %2959  ;;  %v2422_v42 = vmul.f32 1.442695, %v2370_v13  ;;  %v2424_v53 = vmul.f32 1.442695, %v2371_v51  ;;  %v3001_v51 = vsub.f32 %v8255_v27, %v2954_v47 }
 0x7a9   : > { %v3004_v19 = vsub.f32 %v8267_v30, %v2960_v10  ;;  %v3005_v3 = vsub.f32 %v8269_v6, %v2960_v10 }
 0x7aa   : > { %3100 = vadd.xlane.f32.xlu1 %v3099_v61  ;;  %v8618_v61 = vpop.xlane.xlu1 %2971  ;;  %6128 = vpow2.f32 %v2422_v42 }
 0x7ab   : > { %6130 = vpow2.f32 %v2424_v53  ;;  %v3034_v53 = vmul.f32 1.442695, %v3001_v51  ;;  %v3040_v27 = vmul.f32 1.442695, %v3004_v19  ;;  %v3042_v6 = vmul.f32 1.442695, %v3005_v3 }
 0x7ac   : > { %v8612_v34 = vpop.xlane.xlu0 %2965  ;;  %6132 = vpow2.f32 %v2430_v49 }
 0x7ad   : > { %v3008_v30 = vsub.f32 %v8281_v52, %v8612_v34 }
 0x7af   : > { %v3048_v52 = vmul.f32 1.442695, %v3008_v30 }
 0x7b0   : > { %v8616_v60 = vpop.xlane.xlu0 %2974 }
 0x7b4   : > { %v8623_v23 = vpop.xlane.xlu0 %2977 }
 0x7b8   : > { %3870 = vrot.lane.b32.xlu0 %v6416_v28, %s6779_s15  ;;  %v2375_v28 = vsub.f32 %v8225_v33, %v2340_v14  ;;  %v8629_v33 = vpop.xlane.xlu0 %2983 }
 0x7ba   : > { %v2432_v36 = vmul.f32 1.442695, %v2375_v28 }
 0x7bb   : > { %3854 = vrot.lane.b32.xlu1 %v6417_v62, %s6779_s15  ;;  %v2981_v62 = vpop.xlane.xlu1 %2980 }
 0x7bc   : > { %v3018_v59 = vsub.f32 %v8319_v63, %v2981_v62  ;;  %v3019_v13 = vsub.f32 %v8323_v25, %v2981_v62  ;;  %6134 = vpow2.f32 %v2432_v36  ;;  %v8635_v42 = vpop.xlane.xlu0 %2989  ;;  %v8644_v62 = vpop.eup %6128 }
 0x7bd   : > { %6136 = vpow2.f32 %v2438_v43  ;;  %v8648_v10 = vpop.eup %6130 }
 0x7be   : > { %v3068_v1 = vmul.f32 1.442695, %v3018_v59  ;;  %v3070_v63 = vmul.f32 1.442695, %v3019_v13  ;;  %6138 = vpow2.f32 %v2440_v8  ;;  %v8653_v50 = vpop.eup %6132  ;;  %v3009_v8 = vsub.f32 %v8283_v57, %v8612_v34  ;;  %v9868_v34 = vld [vmem:[#allocation84_spill] sm:$0xff] }
 0x7bf   : > { %v2987_v14 = vpop.xlane.xlu1 %2986  ;;  %6140 = vpow2.f32 %v3032_v29  ;;  %v3006_v29 = vsub.f32 %v8273_v37, %v8606_v32 }
 0x7c0   : > { %v3022_v41 = vsub.f32 %v8337_v39, %v2987_v14  ;;  %v3023_v18 = vsub.f32 %v8341_v20, %v2987_v14  ;;  %6142 = vpow2.f32 %v3068_v1 }
 0x7c1   : > { %6144 = vpow2.f32 %v3070_v63 }
 0x7c2   : > { %v3076_v59 = vmul.f32 1.442695, %v3022_v41  ;;  %v3078_v58 = vmul.f32 1.442695, %v3023_v18  ;;  %v2999_v28 = vpop.xlane.xlu0 %2998  ;;  %6146 = vpow2.f32 %v3034_v53  ;;  %v9867_v41 = vld [vmem:[#allocation82_spill] sm:$0xff] }
 0x7c3   : > { %v2993_v25 = vpop.xlane.xlu1 %2992  ;;  %6148 = vpow2.f32 %v3040_v27  ;;  %v3031_v43 = vsub.f32 %v8375_v24, %v2999_v28  ;;  %v3010_v24 = vsub.f32 %v8287_v31, %v8609_v17  ;;  %v3050_v27 = vmul.f32 1.442695, %v3009_v8  ;;  %v9870_v31 = vld [vmem:[#allocation48_spill] sm:$0xff] }
 0x7c4   : > { %v3026_v39 = vsub.f32 %v8355_v2, %v2993_v25  ;;  %v3027_v20 = vsub.f32 %v8357_v45, %v2993_v25  ;;  %v3007_v2 = vsub.f32 %v8275_v12, %v8606_v32  ;;  %6150 = vpow2.f32 %v3076_v59 }
 0x7c5   : > { %v3030_v45 = vsub.f32 %v8371_v22, %v2999_v28  ;;  %6152 = vpow2.f32 %v3078_v58  ;;  %v3044_v12 = vmul.f32 1.442695, %v3006_v29  ;;  %v2476_v32 = vadd.f32 %v8648_v10, %v8644_v62 }
 0x7c6   : > { %v3084_v49 = vmul.f32 1.442695, %v3026_v39  ;;  %v3086_v36 = vmul.f32 1.442695, %v3027_v20  ;;  %v8658_v37 = vpop.eup %6134  ;;  %6154 = vpow2.f32 %v3042_v6  ;;  %v3046_v51 = vmul.f32 1.442695, %v3007_v2 }
 0x7c7   : > { %v8642_v47 = vpop.xlane.xlu1 %2995  ;;  %v8664_v22 = vpop.eup %6136  ;;  %6156 = vpow2.f32 %v3048_v52  ;;  %v3092_v1 = vmul.f32 1.442695, %v3030_v45  ;;  %v3094_v57 = vmul.f32 1.442695, %v3031_v43  ;;  %v3011_v30 = vsub.f32 %v9870_v31, %v8609_v17  ;;  %v9872_v20 = vld [vmem:[#allocation51_spill] sm:$0xff]  ;;  %v9873_v2 = vld [vmem:[#allocation92_spill] sm:$0xff] }
 0x7c8   : > { %v3588_v13 = vpop.xlane.xlu0 %3587  ;;  %v8668_v19 = vpop.eup %6138  ;;  %6158 = vpow2.f32 %v3084_v49  ;;  %v2482_v59 = vadd.f32 %v8658_v37, %v8653_v50  ;;  %v3052_v58 = vmul.f32 1.442695, %v3010_v24  ;;  %v3014_v28 = vsub.f32 %v9872_v20, %v8616_v60  ;;  %v9879_v20 = vld [vmem:[#allocation98_spill] sm:$0xff] }
 0x7c9   : > { %v3634_v63 = vsub.f32 %v9867_v41, %v3588_v13  ;;  %v8671_v18 = vpop.eup %6140  ;;  %6160 = vpow2.f32 %v3086_v36  ;;  %v3635_v25 = vsub.f32 %v9868_v34, %v3588_v13  ;;  %v9874_v36 = vld [vmem:[#allocation93_spill] sm:$0xff]  ;;  %v2488_v8 = vadd.f32 %v8668_v19, %v8664_v22 }
 0x7ca   : > { %v8674_v3 = vpop.eup %6142  ;;  %6162 = vpow2.f32 %v3044_v12 }
 0x7cb   : > { %v8656_v14 = vpop.xlane.xlu1 %3590  ;;  %9869 = vst [vmem:[#allocation82_spill] sm:$0xff] %v8674_v3  ;;  %v8680_v39 = vpop.eup %6144  ;;  %6164 = vpow2.f32 %v3046_v51  ;;  %v3666_v52 = vmul.f32 1.442695, %v3634_v63  ;;  %v3668_v45 = vmul.f32 1.442695, %v3635_v25  ;;  %v9876_v51 = vld [vmem:[#allocation49_spill] sm:$0xff] }
 0x7cc   : > { %9871 = vst [vmem:[#allocation84_spill] sm:$0xff] %v8680_v39  ;;  %v8686_v29 = vpop.eup %6146  ;;  %6166 = vpow2.f32 %v3092_v1  ;;  %v3012_v24 = vsub.f32 %v9876_v51, %v8618_v61  ;;  %v3123_v1 = vadd.f32 %v8680_v39, %v8674_v3  ;;  %v3060_v63 = vmul.f32 1.442695, %v3014_v28 }
 0x7cd   : > { %v8689_v17 = vpop.eup %6148  ;;  %6168 = vpow2.f32 %v3094_v57  ;;  %v9878_v57 = vld [vmem:[#allocation50_spill] sm:$0xff]  ;;  %v3096_v28 = vadd.f32 %v8686_v29, %v8671_v18 }
 0x7ce   : > { %v8694_v12 = vpop.eup %6150  ;;  %6170 = vpow2.f32 %v3050_v27  ;;  %v3013_v34 = vsub.f32 %v9878_v57, %v8618_v61 }
 0x7cf   : > { %9875 = vst [vmem:[#allocation48_spill] sm:$0xff] %v8694_v12  ;;  %v8700_v41 = vpop.eup %6152  ;;  %6172 = vpow2.f32 %v3052_v58 }
 0x7d0   : > { %v8684_v6 = vpop.xlane.xlu0 %3593  ;;  %9877 = vst [vmem:[#allocation51_spill] sm:$0xff] %v8700_v41  ;;  %6174 = vpow2.f32 %v3666_v52 }
 0x7d1   : > { %6176 = vpow2.f32 %v3668_v45  ;;  %v3058_v45 = vmul.f32 1.442695, %v3013_v34 }
 0x7d2   : > { %v3597_v53 = vpop.xlane.xlu1 %3596 }
 0x7d3   : > { %v3640_v49 = vsub.f32 %v9873_v2, %v3597_v53  ;;  %v3641_v43 = vsub.f32 %v9874_v36, %v3597_v53  ;;  %v8706_v53 = vpop.eup %6154  ;;  %v9881_v2 = vld [vmem:[#allocation53_spill] sm:$0xff] }
 0x7d4   : > { %v3015_v52 = vsub.f32 %v9881_v2, %v8616_v60 }
 0x7d5   : > { %v3678_v27 = vmul.f32 1.442695, %v3640_v49  ;;  %v3056_v49 = vmul.f32 1.442695, %v3012_v24  ;;  %v3102_v24 = vadd.f32 %v8706_v53, %v8689_v17 }
 0x7d7   : > { %2477 = vadd.xlane.f32.xlu0 %v2476_v32  ;;  %v3054_v32 = vmul.f32 1.442695, %v3011_v30  ;;  %v8709_v30 = vpop.eup %6156 }
 0x7d8   : > { %v8704_v25 = vpop.xlane.xlu0 %3599  ;;  %v8714_v61 = vpop.eup %6158 }
 0x7d9   : > { %9880 = vst [vmem:[#allocation92_spill] sm:$0xff] %v8714_v61  ;;  %6178 = vpow2.f32 %v3054_v32  ;;  %v8720_v36 = vpop.eup %6160 }
 0x7da   : > { %v3603_v13 = vpop.xlane.xlu1 %3602  ;;  %9882 = vst [vmem:[#allocation93_spill] sm:$0xff] %v8720_v36  ;;  %6180 = vpow2.f32 %v3060_v63  ;;  %v3062_v63 = vmul.f32 1.442695, %v3015_v52  ;;  %v3135_v34 = vadd.f32 %v8720_v36, %v8714_v61 }
 0x7db   : > { %2483 = vadd.xlane.f32.xlu0 %v2482_v59  ;;  %v3644_v31 = vsub.f32 %v8425_v38, %v3603_v13  ;;  %v3680_v59 = vmul.f32 1.442695, %v3641_v43  ;;  %v3645_v58 = vsub.f32 %v9879_v20, %v3603_v13  ;;  %v3129_v38 = vadd.f32 %v8700_v41, %v8694_v12 }
 0x7dc   : > { %6182 = vpow2.f32 %v3678_v27 }
 0x7dd   : > { %v3686_v13 = vmul.f32 1.442695, %v3644_v31  ;;  %6184 = vpow2.f32 %v3680_v59  ;;  %v3688_v32 = vmul.f32 1.442695, %v3645_v58 }
 0x7de   : > { %6186 = vpow2.f32 %v3056_v49 }
 0x7df   : > { %2489 = vadd.xlane.f32.xlu0 %v2488_v8  ;;  %3124 = vadd.xlane.f32.xlu1 %v3123_v1  ;;  %v8722_v8 = vpop.eup %6162  ;;  %6188 = vpow2.f32 %v3058_v45 }
 0x7e0   : > { %v8724_v51 = vpop.eup %6164  ;;  %v8736_v31 = vpop.xlane.xlu1 %3605  ;;  %6190 = vpow2.f32 %v3686_v13 }
 0x7e1   : > { %v8729_v1 = vpop.eup %6166  ;;  %6192 = vpow2.f32 %v3688_v32  ;;  %v3105_v45 = vadd.f32 %v8724_v51, %v8722_v8  ;;  %v9889_v32 = vld [vmem:[#allocation68_spill] sm:$0xff] }
 0x7e2   : > { %v3609_v43 = vpop.xlane.xlu0 %3608  ;;  %9883 = vst [vmem:[#allocation49_spill] sm:$0xff] %v8729_v1  ;;  %v8734_v27 = vpop.eup %6168  ;;  %6194 = vpow2.f32 %v3062_v63 }
 0x7e3   : > { %3097 = vadd.xlane.f32.xlu0 %v3096_v28  ;;  %3130 = vadd.xlane.f32.xlu1 %v3129_v38  ;;  %v3648_v60 = vsub.f32 %v8441_v46, %v3609_v43  ;;  %v3649_v57 = vsub.f32 %v8443_v44, %v3609_v43  ;;  %9884 = vst [vmem:[#allocation50_spill] sm:$0xff] %v8734_v27  ;;  %v8738_v59 = vpop.eup %6170  ;;  %v9885_v46 = vld [vmem:[#allocation64_spill] sm:$0xff]  ;;  %v9886_v44 = vld [vmem:[#allocation65_spill] sm:$0xff] }
 0x7e4   : > { %v3016_v20 = vsub.f32 %v9885_v46, %v8623_v23  ;;  %v8742_v58 = vpop.eup %6172  ;;  %v3017_v28 = vsub.f32 %v9886_v44, %v8623_v23  ;;  %v3141_v43 = vadd.f32 %v8734_v27, %v8729_v1  ;;  %v9890_v46 = vld [vmem:[#allocation70_spill] sm:$0xff] }
 0x7e5   : > { %v3694_v2 = vmul.f32 1.442695, %v3648_v60  ;;  %v8746_v52 = vpop.eup %6174  ;;  %v3696_v49 = vmul.f32 1.442695, %v3649_v57  ;;  %v3020_v60 = vsub.f32 %v9889_v32, %v8629_v33  ;;  %v3021_v44 = vsub.f32 %v9890_v46, %v8629_v33  ;;  %v9894_v46 = vld [vmem:[#allocation75_spill] sm:$0xff] }
 0x7e6   : > { %9887 = vst [vmem:[#allocation98_spill] sm:$0xff] %v8746_v52  ;;  %v8752_v13 = vpop.eup %6176  ;;  %v3064_v23 = vmul.f32 1.442695, %v3016_v20  ;;  %v3066_v57 = vmul.f32 1.442695, %v3017_v28  ;;  %v3108_v20 = vadd.f32 %v8738_v59, %v8709_v30  ;;  %v3025_v27 = vsub.f32 %v9894_v46, %v8635_v42 }
 0x7e7   : > { %3103 = vadd.xlane.f32.xlu0 %v3102_v24  ;;  %3136 = vadd.xlane.f32.xlu1 %v3135_v34  ;;  %9888 = vst [vmem:[#allocation53_spill] sm:$0xff] %v8752_v13  ;;  %v8754_v34 = vpop.eup %6178  ;;  %v3072_v33 = vmul.f32 1.442695, %v3020_v60 }
 0x7e8   : > { %v2448_v38 = vpop.xlane.xlu0 %2447  ;;  %v8758_v63 = vpop.eup %6180 }
 0x7e9   : > { %6196 = vrcp.f32 %v2448_v38  ;;  %v8762_v1 = vpop.eup %6182 }
 0x7ea   : > { %v2451_v24 = vpop.xlane.xlu1 %2450  ;;  %9891 = vst [vmem:[#allocation64_spill] sm:$0xff] %v8762_v1 }
 0x7eb   : > { %6198 = vrcp.f32 %v2451_v24  ;;  %3106 = vadd.xlane.f32.xlu0 %v3105_v45  ;;  %3142 = vadd.xlane.f32.xlu1 %v3141_v43  ;;  %v3730_v24 = vadd.f32 %v8752_v13, %v8746_v52  ;;  %v8770_v45 = vpop.eup %6184  ;;  %v9893_v43 = vld [vmem:[#allocation73_spill] sm:$0xff]  ;;  %v9896_v52 = vld [vmem:[#allocation78_spill] sm:$0xff] }
 0x7ec   : > { %6200 = vpow2.f32 %v3694_v2  ;;  %v8764_v38 = vpop.xlane.xlu0 %3611  ;;  %9892 = vst [vmem:[#allocation65_spill] sm:$0xff] %v8770_v45  ;;  %v3024_v28 = vsub.f32 %v9893_v43, %v8635_v42  ;;  %v8774_v32 = vpop.eup %6186  ;;  %v3028_v13 = vsub.f32 %v9896_v52, %v8642_v47  ;;  %v3111_v43 = vadd.f32 %v8754_v34, %v8742_v58  ;;  %v9898_v42 = vld [vmem:[#allocation79_spill] sm:$0xff] }
 0x7ed   : > { %6202 = vpow2.f32 %v3696_v49  ;;  %v8776_v2 = vpop.eup %6188  ;;  %v3074_v49 = vmul.f32 1.442695, %v3021_v44  ;;  %v3029_v44 = vsub.f32 %v9898_v42, %v8642_v47  ;;  %v3082_v52 = vmul.f32 1.442695, %v3025_v27  ;;  %v9902_v42 = vld [vmem:[#allocation104_spill] sm:$0xff] }
 0x7ee   : > { %6204 = vpow2.f32 %v3064_v23  ;;  %v8780_v61 = vpop.eup %6190  ;;  %v3739_v23 = vadd.f32 %v8770_v45, %v8762_v1  ;;  %v3088_v12 = vmul.f32 1.442695, %v3028_v13  ;;  %v3114_v1 = vadd.f32 %v8776_v2, %v8774_v32  ;;  %v9901_v13 = vld [vmem:[#allocation85_spill] sm:$0xff] }
 0x7ef   : > { %3109 = vadd.xlane.f32.xlu0 %v3108_v20  ;;  %3731 = vadd.xlane.f32.xlu1 %v3730_v24  ;;  %6206 = vpow2.f32 %v3066_v57  ;;  %9895 = vst [vmem:[#allocation68_spill] sm:$0xff] %v8780_v61  ;;  %v8788_v60 = vpop.eup %6192  ;;  %v3080_v20 = vmul.f32 1.442695, %v3024_v28  ;;  %v3090_v27 = vmul.f32 1.442695, %v3029_v44 }
 0x7f0   : > { %v2454_v36 = vpop.xlane.xlu0 %2453  ;;  %9897 = vst [vmem:[#allocation70_spill] sm:$0xff] %v8788_v60  ;;  %v8790_v57 = vpop.eup %6194  ;;  %6208 = vpow2.f32 %v3072_v33  ;;  %v3745_v28 = vadd.f32 %v8788_v60, %v8780_v61  ;;  %v9903_v61 = vld [vmem:[#allocation87_spill] sm:$0xff] }
 0x7f1   : > { %6210 = vpow2.f32 %v3074_v49  ;;  %v3636_v49 = vsub.f32 %v9901_v13, %v8656_v14  ;;  %v3117_v44 = vadd.f32 %v8790_v57, %v8758_v63 }
 0x7f2   : > { %6212 = vpow2.f32 %v3080_v20  ;;  %v3637_v20 = vsub.f32 %v9903_v61, %v8656_v14 }
 0x7f3   : > { %3112 = vadd.xlane.f32.xlu0 %v3111_v43  ;;  %3740 = vadd.xlane.f32.xlu1 %v3739_v23  ;;  %v6197_v24 = vpop.eup %6196  ;;  %6214 = vpow2.f32 %v3082_v52 }
 0x7f4   : > { %v8794_v41 = vpop.xlane.xlu0 %3617  ;;  %v2510_v47 = vmul.f32 %v6197_v24, %v8449_v4  ;;  %v2511_v23 = vmul.f32 %v6197_v24, %v8453_v54  ;;  %6216 = vpow2.f32 %v3088_v12  ;;  %v9904_v24 = vld [vmem:[#allocation89_spill] sm:$0xff]  ;;  %v3672_v61 = vmul.f32 1.442695, %v3637_v20  ;;  %v9905_v12 = vld [vmem:[#allocation91_spill] sm:$0xff] }
 0x7f5   : > { %v6199_v46 = vpop.eup %6198  ;;  %6218 = vrcp.f32 %v2454_v36  ;;  %v3638_v14 = vsub.f32 %v9904_v24, %v8684_v6  ;;  %v9906_v36 = vld [vmem:[#allocation43_spill] sm:$0xff]  ;;  %v9912_v24 = vld [vmem:[#allocation45_spill] sm:$0xff] }
 0x7f6   : > { %v8800_v45 = vpop.eup %6200  ;;  %v2512_v33 = vmul.f32 %v6199_v46, %v8457_v40  ;;  %v2513_v3 = vmul.f32 %v6199_v46, %v9902_v42  ;;  %6220 = vpow2.f32 %v3090_v27  ;;  %v9910_v42 = vld [vmem:[#allocation38_spill] sm:$0xff] }
 0x7f7   : > { %9899 = vst [vmem:[#allocation73_spill] sm:$0xff] %v8800_v45  ;;  %v8804_v43 = vpop.eup %6202  ;;  %3115 = vadd.xlane.f32.xlu0 %v3114_v1  ;;  %3746 = vadd.xlane.f32.xlu1 %v3745_v28  ;;  %v3670_v1 = vmul.f32 1.442695, %v3636_v49  ;;  %v3674_v27 = vmul.f32 1.442695, %v3638_v14  ;;  %v9909_v49 = vld [vmem:[#allocation97_spill] sm:$0xff] }
 0x7f8   : > { %9900 = vst [vmem:[#allocation75_spill] sm:$0xff] %v8804_v43  ;;  %v2542_v60 = vpack.c.bf16 %v2512_v33, %v2510_v47  ;;  %v8812_v4 = vpop.eup %6204  ;;  %v2457_v40 = vpop.xlane.xlu0 %2456  ;;  %v2543_v39 = vpack.c.bf16 %v2513_v3, %v2511_v23  ;;  %v3751_v54 = vadd.f32 %v8804_v43, %v8800_v45  ;;  %v3639_v3 = vsub.f32 %v9905_v12, %v8684_v6  ;;  %v9907_v47 = vld [vmem:[#allocation96_spill] sm:$0xff]  ;;  %v9908_v33 = vld [vmem:[#allocation62_spill] sm:$0xff] }
 0x7f9   : > { %v8816_v13 = vpop.eup %6206  ;;  %6222 = vrcp.f32 %v2457_v40  ;;  %v3643_v23 = vsub.f32 %v9909_v49, %v8704_v25  ;;  %v9914_v12 = vld [vmem:[#allocation100_spill] sm:$0xff]  ;;  %v9916_v49 = vld [vmem:[#allocation66_spill] sm:$0xff] }
 0x7fa   : > { %2654 = vmatprep.mubr.bf16.mxu1 %v2543_v39  ;;  %v8824_v52 = vpop.eup %6208  ;;  %v3120_v46 = vadd.f32 %v8816_v13, %v8812_v4  ;;  %v3642_v39 = vsub.f32 %v9907_v47, %v8704_v25  ;;  %6224 = vpow2.f32 %v3670_v1  ;;  %v9922_v45 = vld [vmem:[#allocation46_spill] sm:$0xff] }
 0x7fb   : > { %3118 = vadd.xlane.f32.xlu0 %v3117_v44  ;;  %3752 = vadd.xlane.f32.xlu1 %v3751_v54  ;;  %v8829_v28 = vpop.eup %6210  ;;  %6226 = vpow2.f32 %v3672_v61  ;;  %v9911_v54 = vld [vmem:[#allocation99_spill] sm:$0xff]  ;;  %v3684_v25 = vmul.f32 1.442695, %v3643_v23 }
 0x7fc   : > { %2655 = vmatmul.mubr.bf16.vlgmr.msra.gmra.mrb[32].mxu1 %v2542_v60  ;;  %v8834_v6 = vpop.eup %6212  ;;  %v3676_v60 = vmul.f32 1.442695, %v3639_v3  ;;  %v3126_v20 = vadd.f32 %v8829_v28, %v8824_v52  ;;  %v3682_v44 = vmul.f32 1.442695, %v3642_v39  ;;  %v3646_v1 = vsub.f32 %v9911_v54, %v8736_v31 }
 0x7fd   : > { %5247 = vmatpush3.bf16.msra.mxu1 %v9906_v36  ;;  %v8841_v40 = vpop.eup %6214  ;;  %6228 = vpow2.f32 %v3674_v27  ;;  %v3647_v3 = vsub.f32 %v9914_v12, %v8736_v31  ;;  %v9917_v27 = vld [vmem:[#allocation108_spill] sm:$0xff] }
 0x7fe   : > { %5248 = vmatprep.subr.bf16.mxu1 %v9908_v33  ;;  %v8846_v14 = vpop.eup %6216  ;;  %6230 = vpow2.f32 %v3676_v60  ;;  %v3132_v47 = vadd.f32 %v8841_v40, %v8834_v6  ;;  %v3690_v33 = vmul.f32 1.442695, %v3646_v1  ;;  %v9918_v60 = vld [vmem:[#allocation113_spill] sm:$0xff]  ;;  %v9920_v31 = vld [vmem:[#allocation112_spill] sm:$0xff] }
 0x7ff   : > { %3121 = vadd.xlane.f32.xlu0 %v3120_v46  ;;  %9913 = vst [vmem:[#allocation78_spill] sm:$0xff] %v8846_v14  ;;  %v6219_v61 = vpop.eup %6218  ;;  %v9915_v46 = vld [vmem:[#allocation40_spill] sm:$0xff]  ;;  %6232 = vpow2.f32 %v3682_v44  ;;  %v3692_v12 = vmul.f32 1.442695, %v3647_v3 }
 0x800   : > { %v8850_v36 = vpop.eup %6220  ;;  %6234 = vpow2.f32 %v3684_v25  ;;  %v9926_v25 = vld [vmem:[#allocation47_spill] sm:$0xff]  ;;  %v6418_v3 = vld [vmem:[#allocation3 + $0x38] sm:$0xff] }
 0x801   : > { %5249 = vmatpush3.bf16.msra.mxu1 %v9910_v42  ;;  %v2515_v42 = vmul.f32 %v6219_v61, %v9917_v27  ;;  %v3138_v1 = vadd.f32 %v8850_v36, %v8846_v14  ;;  %6236 = vpow2.f32 %v3690_v33  ;;  %v9928_v27 = vld [vmem:[#allocation69_spill] sm:$0xff]  ;;  %v9930_v33 = vld [vmem:[#allocation52_spill] sm:$0xff] }
 0x802   : > { %5250 = vmatprep.subr.bf16.mxu1 %v9912_v24  ;;  %6238 = vpow2.f32 %v3692_v12  ;;  %v9934_v12 = vld [vmem:[#allocation67_spill] sm:$0xff] }
 0x803   : > { %3127 = vadd.xlane.f32.xlu0 %v3126_v20  ;;  %v6223_v39 = vpop.eup %6222  ;;  %v9919_v20 = vld [vmem:[#allocation106_spill] sm:$0xff] }
 0x804   : > { %v2517_v23 = vmul.f32 %v6223_v39, %v9918_v60  ;;  %v2514_v54 = vmul.f32 %v6219_v61, %v9919_v20  ;;  %v2516_v24 = vmul.f32 %v6223_v39, %v9920_v31  ;;  %v9932_v20 = vld [vmem:[#allocation63_spill] sm:$0xff] }
 0x805   : > { %5251 = vmatpush3.bf16.msra.mxu1 %v9915_v46  ;;  %v8860_v46 = vpop.eup %6224 }
 0x806   : > { %5252 = vmatprep.subr.bf16.mxu1 %v9916_v49  ;;  %9921 = vst [vmem:[#allocation79_spill] sm:$0xff] %v8860_v46  ;;  %v2545_v43 = vpack.c.bf16 %v2517_v23, %v2515_v42  ;;  %v2544_v44 = vpack.c.bf16 %v2516_v24, %v2514_v54  ;;  %v9924_v49 = vld [vmem:[#allocation44_spill] sm:$0xff]  ;;  %v3615_v42 = vpop.xlane.xlu1 %3614  ;;  %v2460_v24 = vpop.xlane.xlu0 %2459 }
 0x807   : > { %3133 = vadd.xlane.f32.xlu0 %v3132_v47  ;;  %v8865_v47 = vpop.eup %6226  ;;  %6240 = vrcp.f32 %v2460_v24  ;;  %v9943_v24 = vld [vmem:[#allocation119_spill] sm:$0xff] }
 0x808   : > { %9923 = vst [vmem:[#allocation85_spill] sm:$0xff] %v8865_v47  ;;  %2662 = vmatprep.mubr.bf16.mxu1 %v2545_v43  ;;  %v8868_v61 = vpop.eup %6228 }
 0x809   : > { %5253 = vmatpush3.bf16.msra.mxu1 %v9922_v45  ;;  %9925 = vst [vmem:[#allocation104_spill] sm:$0xff] %v8868_v61  ;;  %v3733_v45 = vadd.f32 %v8865_v47, %v8860_v46  ;;  %v8874_v39 = vpop.eup %6230 }
 0x80a   : > { %5254 = vmatprep.subr.bf16.mxu1 %v9924_v49  ;;  %2663 = vmatmul.mubr.bf16.gmra.mrb[36].mxu1 %v2544_v44  ;;  %9927 = vst [vmem:[#allocation87_spill] sm:$0xff] %v8874_v39  ;;  %v8877_v43 = vpop.eup %6232  ;;  %v3736_v60 = vadd.f32 %v8874_v39, %v8868_v61  ;;  %v8887_v31 = vpop.xlane.xlu1 %3620  ;;  %v9936_v49 = vld [vmem:[#allocation72_spill] sm:$0xff] }
 0x80b   : > { %3139 = vadd.xlane.f32.xlu0 %v3138_v1  ;;  %9929 = vst [vmem:[#allocation89_spill] sm:$0xff] %v8877_v43  ;;  %v8882_v23 = vpop.eup %6234  ;;  %v9940_v61 = vld [vmem:[#allocation76_spill] sm:$0xff] }
 0x80c   : > { %3856 = vrot.lane.b32.xlu1 %v6418_v3, %s6779_s15  ;;  %9931 = vst [vmem:[#allocation91_spill] sm:$0xff] %v8882_v23  ;;  %v8885_v54 = vpop.eup %6236  ;;  %v3742_v44 = vadd.f32 %v8882_v23, %v8877_v43  ;;  %v9941_v43 = vld [vmem:[#allocation116_spill] sm:$0xff] }
 0x80d   : > { %5255 = vmatpush3.bf16.msra.mxu1 %v9926_v25  ;;  %9933 = vst [vmem:[#allocation43_spill] sm:$0xff] %v8885_v54  ;;  %v8892_v1 = vpop.eup %6238  ;;  %v9937_v25 = vld [vmem:[#allocation103_spill] sm:$0xff] }
 0x80e   : > { %5256 = vmatprep.subr.bf16.mxu1 %v9928_v27  ;;  %9935 = vst [vmem:[#allocation96_spill] sm:$0xff] %v8892_v1  ;;  %v3652_v3 = vsub.f32 %v9937_v25, %v3615_v42  ;;  %v9938_v27 = vld [vmem:[#allocation71_spill] sm:$0xff] }
 0x80f   : > { %3734 = vadd.xlane.f32.xlu0 %v3733_v45  ;;  %v3627_v45 = vpop.xlane.xlu1 %3626 }
 0x810   : > { %v3660_v23 = vsub.f32 %v9941_v43, %v3627_v45  ;;  %v3702_v39 = vmul.f32 1.442695, %v3652_v3 }
 0x811   : > { %5257 = vmatpush3.bf16.msra.mxu1 %v9930_v33  ;;  %v3748_v33 = vadd.f32 %v8892_v1, %v8885_v54 }
 0x812   : > { %5258 = vmatprep.subr.bf16.mxu1 %v9932_v20  ;;  %v3718_v47 = vmul.f32 1.442695, %v3660_v23 }
 0x813   : > { %3737 = vadd.xlane.f32.xlu0 %v3736_v60  ;;  %v9939_v60 = vld [vmem:[#allocation105_spill] sm:$0xff] }
 0x814   : > { %v3653_v20 = vsub.f32 %v9939_v60, %v3615_v42  ;;  %v6241_v42 = vpop.eup %6240 }
 0x815   : > { %5259 = vmatpush3.bf16.msra.mxu1 %v9934_v12  ;;  %v8901_v12 = vpop.xlane.xlu0 %3623  ;;  %v2519_v60 = vmul.f32 %v6241_v42, %v9943_v24 }
 0x816   : > { %5260 = vmatprep.subr.bf16.mxu1 %v9936_v49  ;;  %v9942_v49 = vld [vmem:[#allocation118_spill] sm:$0xff]  ;;  %v3704_v46 = vmul.f32 1.442695, %v3653_v20 }
 0x817   : > { %3743 = vadd.xlane.f32.xlu0 %v3742_v44  ;;  %v3661_v44 = vsub.f32 %v9942_v49, %v3627_v45 }
 0x819   : > { %5261 = vmatpush3.bf16.msra.mxu1 %v9938_v27  ;;  %v3720_v27 = vmul.f32 1.442695, %v3661_v44 }
 0x81a   : > { %5342 = vmatprep.subr.bf16.mxu1 %v9940_v61 }
 0x81b   : > { %3749 = vadd.xlane.f32.xlu0 %v3748_v33  ;;  %v8905_v33 = vpop.xlane.xlu1 %3629 }
 0x81f   : > { %v2463_v25 = vpop.xlane.xlu0 %2462 }
 0x820   : > { %6242 = vrcp.f32 %v2463_v25 }
 0x821   : > { %6244 = vpow2.f32 %v3702_v39  ;;  %v9944_v39 = vld [vmem:[#allocation117_spill] sm:$0xff] }
 0x822   : > { %6246 = vpow2.f32 %v3704_v46  ;;  %v2518_v20 = vmul.f32 %v6241_v42, %v9944_v39 }
 0x823   : > { %v2466_v54 = vpop.xlane.xlu0 %2465  ;;  %6248 = vpow2.f32 %v3718_v47 }
 0x824   : > { %6250 = vpow2.f32 %v3720_v27 }
 0x825   : > { %6252 = vrcp.f32 %v2466_v54 }
 0x827   : > { %v2469_v61 = vpop.xlane.xlu0 %2468  ;;  %v2475_v54 = vpop.xlane.xlu1 %2474 }
 0x828   : > { %6254 = vrcp.f32 %v2469_v61 }
 0x829   : > { %6256 = vrcp.f32 %v2475_v54  ;;  %v9946_v54 = vld [vmem:[#allocation102_spill] sm:$0xff] }
 0x82a   : > { %v6243_v43 = vpop.eup %6242 }
 0x82b   : > { %v8907_v3 = vpop.eup %6244  ;;  %v3633_v45 = vpop.xlane.xlu0 %3632  ;;  %v2521_v23 = vmul.f32 %v6243_v43, %v8545_v21  ;;  %v2520_v46 = vmul.f32 %v6243_v43, %v8543_v7 }
 0x82c   : > { %v8913_v47 = vpop.eup %6246  ;;  %v3664_v49 = vsub.f32 %v8523_v55, %v3633_v45  ;;  %v3665_v44 = vsub.f32 %v8525_v11, %v3633_v45  ;;  %v6419_v55 = vld [vmem:[#allocation3 + $0x78] sm:$0xff] }
 0x82d   : > { %v2547_v25 = vpack.c.bf16 %v2521_v23, %v2519_v60  ;;  %v2546_v27 = vpack.c.bf16 %v2520_v46, %v2518_v20  ;;  %v8917_v61 = vpop.eup %6248  ;;  %v3757_v7 = vadd.f32 %v8913_v47, %v8907_v3  ;;  %v9945_v20 = vld [vmem:[#allocation101_spill] sm:$0xff] }
 0x82e   : > { %v3726_v1 = vmul.f32 1.442695, %v3664_v49  ;;  %v3728_v14 = vmul.f32 1.442695, %v3665_v44  ;;  %v8919_v24 = vpop.eup %6250  ;;  %v3650_v46 = vsub.f32 %v9945_v20, %v8764_v38  ;;  %v3651_v49 = vsub.f32 %v9946_v54, %v8764_v38  ;;  %v9952_v54 = vld [vmem:[#allocation115_spill] sm:$0xff] }
 0x82f   : > { %v2472_v21 = vpop.xlane.xlu0 %2471  ;;  %2670 = vmatprep.mubr.bf16.mxu1 %v2547_v25  ;;  %v6253_v42 = vpop.eup %6252  ;;  %v3769_v43 = vadd.f32 %v8919_v24, %v8917_v61 }
 0x830   : > { %6258 = vpow2.f32 %v3726_v1  ;;  %2671 = vmatmul.mubr.bf16.gmra.mrb[40].mxu1 %v2546_v27  ;;  %3758 = vadd.xlane.f32.xlu1 %v3757_v7  ;;  %v2523_v45 = vmul.f32 %v6253_v42, %v8553_v35  ;;  %v2522_v23 = vmul.f32 %v6253_v42, %v8547_v5  ;;  %v3700_v27 = vmul.f32 1.442695, %v3651_v49  ;;  %v9948_v7 = vld [vmem:[#allocation109_spill] sm:$0xff] }
 0x831   : > { %6260 = vpow2.f32 %v3728_v14  ;;  %3872 = vrot.lane.b32.xlu0 %v6419_v55, %s6779_s15  ;;  %v3655_v42 = vsub.f32 %v9948_v7, %v8794_v41  ;;  %v3659_v49 = vsub.f32 %v9952_v54, %v8901_v12 }
 0x832   : > { %v6255_v11 = vpop.eup %6254  ;;  %6262 = vrcp.f32 %v2472_v21 }
 0x833   : > { %v2525_v60 = vmul.f32 %v6255_v11, %v8557_v0  ;;  %v2524_v39 = vmul.f32 %v6255_v11, %v8555_v9  ;;  %v6257_v44 = vpop.eup %6256  ;;  %v3698_v0 = vmul.f32 1.442695, %v3650_v46  ;;  %v9947_v9 = vld [vmem:[#allocation107_spill] sm:$0xff]  ;;  %v3708_v46 = vmul.f32 1.442695, %v3655_v42 }
 0x834   : > { %3770 = vadd.xlane.f32.xlu1 %v3769_v43  ;;  %v3654_v21 = vsub.f32 %v9947_v9, %v8794_v41  ;;  %v2529_v11 = vmul.f32 %v6257_v44, %v8565_v15  ;;  %v9950_v41 = vld [vmem:[#allocation111_spill] sm:$0xff] }
 0x835   : > { %v2549_v1 = vpack.c.bf16 %v2525_v60, %v2523_v45  ;;  %v2548_v14 = vpack.c.bf16 %v2524_v39, %v2522_v23  ;;  %v2528_v45 = vmul.f32 %v6257_v44, %v8563_v48  ;;  %6264 = vpow2.f32 %v3698_v0  ;;  %v9949_v39 = vld [vmem:[#allocation110_spill] sm:$0xff]  ;;  %v9953_v0 = vld [vmem:[#allocation120_spill] sm:$0xff] }
 0x836   : > { %6266 = vpow2.f32 %v3700_v27  ;;  %v3657_v20 = vsub.f32 %v9950_v41, %v8887_v31  ;;  %v9954_v27 = vld [vmem:[#allocation121_spill] sm:$0xff] }
 0x837   : > { %2678 = vmatprep.mubr.bf16.mxu1 %v2549_v1  ;;  %v3656_v1 = vsub.f32 %v9949_v39, %v8887_v31  ;;  %v3716_v31 = vmul.f32 1.442695, %v3659_v49  ;;  %v3663_v9 = vsub.f32 %v9954_v27, %v8905_v33 }
 0x838   : > { %2679 = vmatmul.mubr.bf16.gmra.mrb[44].mxu1 %v2548_v14  ;;  %v3706_v14 = vmul.f32 1.442695, %v3654_v21 }
 0x839   : > { %v3710_v15 = vmul.f32 1.442695, %v3656_v1 }
 0x83a   : > { %v8934_v25 = vpop.eup %6258  ;;  %6268 = vpow2.f32 %v3706_v14 }
 0x83b   : > { %v8936_v35 = vpop.eup %6260  ;;  %6270 = vpow2.f32 %v3708_v46 }
 0x83c   : > { %v6263_v5 = vpop.eup %6262  ;;  %v3775_v55 = vadd.f32 %v8936_v35, %v8934_v25  ;;  %6272 = vpow2.f32 %v3710_v15  ;;  %v8990_v15 = vpop.permute.xlu0 %3870 }
 0x83d   : > { %v2527_v38 = vmul.f32 %v6263_v5, %v8581_v26  ;;  %v2526_v43 = vmul.f32 %v6263_v5, %v8577_v56  ;;  %v9951_v56 = vld [vmem:[#allocation114_spill] sm:$0xff]  ;;  %v3712_v26 = vmul.f32 1.442695, %v3657_v20  ;;  %v3662_v5 = vsub.f32 %v9953_v0, %v8905_v33  ;;  %v2481_v20 = vpop.xlane.xlu1 %2480 }
 0x83e   : > { %3776 = vadd.xlane.f32.xlu1 %v3775_v55  ;;  %v3658_v48 = vsub.f32 %v9951_v56, %v8901_v12  ;;  %v3724_v55 = vmul.f32 1.442695, %v3663_v9 }
 0x83f   : > { %v2551_v60 = vpack.c.bf16 %v2529_v11, %v2527_v38  ;;  %v2550_v23 = vpack.c.bf16 %v2528_v45, %v2526_v43  ;;  %6274 = vpow2.f32 %v3712_v26  ;;  %v8960_v21 = vpop.eup %6264  ;;  %v3722_v42 = vmul.f32 1.442695, %v3662_v5 }
 0x840   : > { %v3714_v44 = vmul.f32 1.442695, %v3658_v48  ;;  %v8962_v7 = vpop.eup %6266 }
 0x841   : > { %2686 = vmatprep.mubr.bf16.mxu1 %v2551_v60  ;;  %v3754_v12 = vadd.f32 %v8962_v7, %v8960_v21  ;;  %v2487_v56 = vpop.xlane.xlu1 %2486 }
 0x842   : > { %2687 = vmatmul.mubr.bf16.gmra.mrb[48].mxu1 %v2550_v23  ;;  %6276 = vpow2.f32 %v3714_v44 }
 0x843   : > { %6278 = vpow2.f32 %v3716_v31 }
 0x844   : > { %v8964_v38 = vpop.eup %6268  ;;  %6280 = vpow2.f32 %v3722_v42  ;;  %v9955_v42 = vld [vmem:[#allocation123_spill] sm:$0xff] }
 0x845   : > { %v8968_v11 = vpop.eup %6270  ;;  %6282 = vpow2.f32 %v3724_v55  ;;  %v2493_v54 = vpop.xlane.xlu1 %2492 }
 0x846   : > { %v8970_v43 = vpop.eup %6272  ;;  %v3760_v33 = vadd.f32 %v8968_v11, %v8964_v38  ;;  %6284 = vrcp.f32 %v2481_v20 }
 0x849   : > { %v8974_v45 = vpop.eup %6274 }
 0x84a   : > { %v3763_v23 = vadd.f32 %v8974_v45, %v8970_v43 }
 0x84c   : > { %v8976_v60 = vpop.eup %6276 }
 0x84d   : > { %v8980_v39 = vpop.eup %6278 }
 0x84e   : > { %v8982_v1 = vpop.eup %6280  ;;  %v3766_v14 = vadd.f32 %v8980_v39, %v8976_v60 }
 0x84f   : > { %v8986_v41 = vpop.eup %6282 }
 0x850   : > { %3755 = vadd.xlane.f32.xlu0 %v3754_v12  ;;  %v3772_v46 = vadd.f32 %v8986_v41, %v8982_v1  ;;  %v6285_v44 = vpop.eup %6284 }
 0x851   : > { %v2533_v27 = vmul.f32 %v6285_v44, %v8575_v16  ;;  %v2532_v55 = vmul.f32 %v6285_v44, %v9955_v42 }
 0x854   : > { %3761 = vadd.xlane.f32.xlu0 %v3760_v33  ;;  %v3101_v33 = vpop.xlane.xlu1 %3100 }
 0x858   : > { %3764 = vadd.xlane.f32.xlu0 %v3763_v23 }
 0x85c   : > { %3767 = vadd.xlane.f32.xlu0 %v3766_v14 }
 0x860   : > { %3773 = vadd.xlane.f32.xlu0 %v3772_v46 }
 0x864   : > { %v2478_v48 = vpop.xlane.xlu0 %2477 }
 0x865   : > { %6286 = vrcp.f32 %v2478_v48  ;;  %v9956_v48 = vld [vmem:[#allocation125_spill] sm:$0xff] }
 0x866   : > { %6288 = vrcp.f32 %v2487_v56 }
 0x868   : > { %v2484_v26 = vpop.xlane.xlu0 %2483 }
 0x869   : > { %6290 = vrcp.f32 %v2484_v26 }
 0x86a   : > { %6292 = vrcp.f32 %v2493_v54 }
 0x86c   : > { %v2490_v49 = vpop.xlane.xlu0 %2489 }
 0x86d   : > { %6294 = vrcp.f32 %v2490_v49 }
 0x86f   : > { %v6287_v0 = vpop.eup %6286 }
 0x870   : > { %v3098_v5 = vpop.xlane.xlu0 %3097  ;;  %v2531_v31 = vmul.f32 %v6287_v0, %v8648_v10  ;;  %v2530_v9 = vmul.f32 %v6287_v0, %v8644_v62  ;;  %v6289_v12 = vpop.eup %6288  ;;  %v9957_v0 = vld [vmem:[#allocation124_spill] sm:$0xff] }
 0x871   : > { %6296 = vrcp.f32 %v3098_v5  ;;  %v2537_v26 = vmul.f32 %v6289_v12, %v9956_v48  ;;  %v9958_v5 = vld [vmem:[#allocation127_spill] sm:$0xff]  ;;  %v9960_v48 = vld [vmem:[#allocation129_spill] sm:$0xff] }
 0x872   : > { %v2553_v23 = vpack.c.bf16 %v2533_v27, %v2531_v31  ;;  %v2552_v14 = vpack.c.bf16 %v2532_v55, %v2530_v9  ;;  %6298 = vrcp.f32 %v3101_v33  ;;  %v2536_v31 = vmul.f32 %v6289_v12, %v9957_v0  ;;  %v9002_v9 = vpop.permute.xlu1 %3854  ;;  %v9959_v12 = vld [vmem:[#allocation126_spill] sm:$0xff] }
 0x873   : > { %v6291_v20 = vpop.eup %6290 }
 0x874   : > { %v3104_v46 = vpop.xlane.xlu0 %3103  ;;  %2694 = vmatprep.mubr.bf16.mxu1 %v2553_v23  ;;  %v2535_v56 = vmul.f32 %v6291_v20, %v8658_v37  ;;  %v6293_v10 = vpop.eup %6292  ;;  %v2534_v62 = vmul.f32 %v6291_v20, %v8653_v50 }
 0x875   : > { %2695 = vmatmul.mubr.bf16.gmra.mrb[52].mxu1 %v2552_v14  ;;  %v2541_v27 = vmul.f32 %v6293_v10, %v9958_v5 }
 0x876   : > { %v2555_v16 = vpack.c.bf16 %v2537_v26, %v2535_v56  ;;  %v2554_v37 = vpack.c.bf16 %v2536_v31, %v2534_v62  ;;  %v3125_v50 = vpop.xlane.xlu1 %3124  ;;  %v2540_v56 = vmul.f32 %v6293_v10, %v9959_v12 }
 0x877   : > { %v6295_v54 = vpop.eup %6294 }
 0x878   : > { %v3107_v49 = vpop.xlane.xlu0 %3106  ;;  %2702 = vmatprep.mubr.bf16.mxu1 %v2555_v16  ;;  %v2539_v44 = vmul.f32 %v6295_v54, %v8668_v19  ;;  %v2538_v14 = vmul.f32 %v6295_v54, %v8664_v22 }
 0x879   : > { %6300 = vrcp.f32 %v3107_v49 }
 0x87a   : > { %v2557_v55 = vpack.c.bf16 %v2541_v27, %v2539_v44  ;;  %6302 = vrcp.f32 %v3104_v46  ;;  %v2556_v16 = vpack.c.bf16 %v2540_v56, %v2538_v14  ;;  %v3131_v0 = vpop.xlane.xlu1 %3130  ;;  %v9964_v56 = vld [vmem:[#allocation77_spill] sm:$0xff] }
 0x87b   : > { %v6297_v33 = vpop.eup %6296 }
 0x87c   : > { %v3110_v42 = vpop.xlane.xlu0 %3109  ;;  %v6299_v23 = vpop.eup %6298  ;;  %v3161_v19 = vmul.f32 %v6297_v33, %v8686_v29  ;;  %v3160_v31 = vmul.f32 %v6297_v33, %v8671_v18  ;;  %v9961_v29 = vld [vmem:[#allocation128_spill] sm:$0xff] }
 0x87d   : > { %2703 = vmatmul.mubr.bf16.gmra.mrb[56].mxu1 %v2554_v37  ;;  %v3163_v26 = vmul.f32 %v6299_v23, %v9960_v48  ;;  %v3162_v5 = vmul.f32 %v6299_v23, %v9961_v29  ;;  %v9963_v33 = vld [vmem:[#allocation80_spill] sm:$0xff]  ;;  %v9968_v29 = vld [vmem:[#allocation90_spill] sm:$0xff] }
 0x87e   : > { %2710 = vmatprep.mubr.bf16.mxu1 %v2557_v55  ;;  %v9012_v27 = vpop.xlane.xlu1 %3136 }
 0x87f   : > { %v3193_v49 = vpack.c.bf16 %v3163_v26, %v3161_v19  ;;  %v3192_v37 = vpack.c.bf16 %v3162_v5, %v3160_v31  ;;  %v9965_v26 = vld [vmem:[#allocation81_spill] sm:$0xff]  ;;  %v9969_v5 = vld [vmem:[#allocation88_spill] sm:$0xff] }
 0x880   : > { %v3113_v20 = vpop.xlane.xlu0 %3112 }
 0x881   : > { %6304 = vrcp.f32 %v3113_v20 }
 0x882   : > { %6306 = vrcp.f32 %v3110_v42  ;;  %v9962_v42 = vld [vmem:[#allocation74_spill] sm:$0xff]  ;;  %v9018_v19 = vpop.xlane.xlu1 %3142 }
 0x883   : > { %v6301_v44 = vpop.eup %6300 }
 0x884   : > { %v3116_v62 = vpop.xlane.xlu0 %3115  ;;  %v6303_v46 = vpop.eup %6302  ;;  %v3167_v54 = vmul.f32 %v6301_v44, %v8724_v51  ;;  %v3166_v51 = vmul.f32 %v6301_v44, %v8722_v8  ;;  %v9966_v8 = vld [vmem:[#allocation86_spill] sm:$0xff] }
 0x885   : > { %2711 = vmatmul.mubr.bf16.gmra.mrb[60].mxu1 %v2556_v16  ;;  %v3165_v10 = vmul.f32 %v6303_v46, %v8706_v53  ;;  %v3164_v12 = vmul.f32 %v6303_v46, %v8689_v17  ;;  %v9967_v17 = vld [vmem:[#allocation83_spill] sm:$0xff] }
 0x886   : > { %3288 = vmatprep.mubr.bf16.mxu1 %v3193_v49  ;;  %v9025_v44 = vpop.xlane.xlu1 %3731 }
 0x887   : > { %v3195_v14 = vpack.c.bf16 %v3167_v54, %v3165_v10  ;;  %v3194_v16 = vpack.c.bf16 %v3166_v51, %v3164_v12  ;;  %v9972_v51 = vld [vmem:[#allocation122_spill] sm:$0xff] }
 0x888   : > { %v3119_v22 = vpop.xlane.xlu0 %3118 }
 0x889   : > { %6308 = vrcp.f32 %v3119_v22 }
 0x88a   : > { %6310 = vrcp.f32 %v3116_v62 }
 0x88b   : > { %v6305_v20 = vpop.eup %6304 }
 0x88c   : > { %v3122_v55 = vpop.xlane.xlu0 %3121  ;;  %v6307_v18 = vpop.eup %6306  ;;  %v3171_v53 = vmul.f32 %v6305_v20, %v8754_v34  ;;  %v3170_v46 = vmul.f32 %v6305_v20, %v8742_v58  ;;  %v9970_v58 = vld [vmem:[#allocation95_spill] sm:$0xff]  ;;  %v9971_v20 = vld [vmem:[#allocation94_spill] sm:$0xff] }
 0x88d   : > { %3289 = vmatmul.mubr.bf16.vlgmr.msra.gmra.mrb[64].mxu1 %v3192_v37  ;;  %v3169_v48 = vmul.f32 %v6307_v18, %v8738_v59  ;;  %6312 = vrcp.f32 %v3122_v55  ;;  %v3168_v54 = vmul.f32 %v6307_v18, %v8709_v30 }
 0x88e   : > { %5343 = vmatpush3.bf16.msra.mxu1 %v9962_v42  ;;  %3296 = vmatprep.mubr.bf16.mxu1 %v3195_v14  ;;  %6314 = vrcp.f32 %v3125_v50  ;;  %v3741_v42 = vpop.xlane.xlu1 %3740 }
 0x88f   : > { %5344 = vmatprep.subr.bf16.mxu1 %v9963_v33  ;;  %v3197_v49 = vpack.c.bf16 %v3171_v53, %v3169_v48  ;;  %v3196_v10 = vpack.c.bf16 %v3170_v46, %v3168_v54  ;;  %v9976_v54 = vld [vmem:[#allocation48_spill] sm:$0xff] }
 0x890   : > { %v3128_v23 = vpop.xlane.xlu0 %3127 }
 0x891   : > { %6316 = vrcp.f32 %v3128_v23  ;;  %v9973_v23 = vld [vmem:[#allocation84_spill] sm:$0xff] }
 0x892   : > { %5345 = vmatpush3.bf16.msra.mxu1 %v9964_v56  ;;  %6318 = vrcp.f32 %v3131_v0  ;;  %v3747_v0 = vpop.xlane.xlu1 %3746 }
 0x893   : > { %5346 = vmatprep.subr.bf16.mxu1 %v9965_v26  ;;  %v6309_v31 = vpop.eup %6308 }
 0x894   : > { %v3134_v62 = vpop.xlane.xlu0 %3133  ;;  %v6311_v34 = vpop.eup %6310  ;;  %v3175_v22 = vmul.f32 %v6309_v31, %v8790_v57  ;;  %v3174_v30 = vmul.f32 %v6309_v31, %v8758_v63 }
 0x895   : > { %3297 = vmatmul.mubr.bf16.gmra.mrb[68].mxu1 %v3194_v16  ;;  %v3173_v50 = vmul.f32 %v6311_v34, %v8776_v2  ;;  %v3172_v33 = vmul.f32 %v6311_v34, %v8774_v32  ;;  %6320 = vrcp.f32 %v3134_v62  ;;  %v9974_v62 = vld [vmem:[#allocation82_spill] sm:$0xff] }
 0x896   : > { %5347 = vmatpush3.bf16.msra.mxu1 %v9966_v8  ;;  %3304 = vmatprep.mubr.bf16.mxu1 %v3197_v49  ;;  %6322 = vrcp.f32 %v9012_v27  ;;  %v3753_v49 = vpop.xlane.xlu1 %3752 }
 0x897   : > { %5348 = vmatprep.subr.bf16.mxu1 %v9967_v17  ;;  %v3199_v55 = vpack.c.bf16 %v3175_v22, %v3173_v50  ;;  %v6313_v14 = vpop.eup %6312  ;;  %v3198_v12 = vpack.c.bf16 %v3174_v30, %v3172_v33  ;;  %v9977_v50 = vld [vmem:[#allocation93_spill] sm:$0xff] }
 0x898   : > { %v3140_v59 = vpop.xlane.xlu0 %3139  ;;  %v6315_v57 = vpop.eup %6314  ;;  %v3177_v2 = vmul.f32 %v6313_v14, %v8816_v13  ;;  %v3176_v32 = vmul.f32 %v6313_v14, %v8812_v4 }
 0x899   : > { %v3179_v53 = vmul.f32 %v6315_v57, %v9973_v23  ;;  %v3178_v31 = vmul.f32 %v6315_v57, %v9974_v62  ;;  %6324 = vrcp.f32 %v3140_v59  ;;  %v9981_v23 = vld [vmem:[#allocation85_spill] sm:$0xff]  ;;  %v9985_v62 = vld [vmem:[#allocation87_spill] sm:$0xff] }
 0x89a   : > { %5349 = vmatpush3.bf16.msra.mxu1 %v9968_v29  ;;  %6326 = vrcp.f32 %v9018_v19 }
 0x89b   : > { %5350 = vmatprep.subr.bf16.mxu1 %v9969_v5  ;;  %v3201_v48 = vpack.c.bf16 %v3179_v53, %v3177_v2  ;;  %v6317_v26 = vpop.eup %6316  ;;  %v3200_v34 = vpack.c.bf16 %v3178_v31, %v3176_v32 }
 0x89c   : > { %v3735_v37 = vpop.xlane.xlu0 %3734  ;;  %v6319_v63 = vpop.eup %6318  ;;  %v3181_v16 = vmul.f32 %v6317_v26, %v8829_v28  ;;  %v3180_v28 = vmul.f32 %v6317_v26, %v8824_v52  ;;  %v9978_v52 = vld [vmem:[#allocation92_spill] sm:$0xff] }
 0x89d   : > { %3305 = vmatmul.mubr.bf16.gmra.mrb[72].mxu1 %v3196_v10  ;;  %v3182_v29 = vmul.f32 %v6319_v63, %v9976_v54  ;;  %6328 = vrcp.f32 %v3735_v37  ;;  %v9989_v54 = vld [vmem:[#allocation91_spill] sm:$0xff] }
 0x89e   : > { %5351 = vmatpush3.bf16.msra.mxu1 %v9970_v58  ;;  %3312 = vmatprep.mubr.bf16.mxu1 %v3199_v55  ;;  %6330 = vrcp.f32 %v9025_v44  ;;  %v9980_v44 = vld [vmem:[#allocation78_spill] sm:$0xff] }
 0x89f   : > { %5352 = vmatprep.subr.bf16.mxu1 %v9971_v20  ;;  %v6321_v27 = vpop.eup %6320  ;;  %v3202_v5 = vpack.c.bf16 %v3182_v29, %v3180_v28 }
 0x8a0   : > { %v3738_v18 = vpop.xlane.xlu0 %3737  ;;  %v6323_v4 = vpop.eup %6322  ;;  %v3185_v22 = vmul.f32 %v6321_v27, %v8841_v40  ;;  %v3184_v14 = vmul.f32 %v6321_v27, %v8834_v6  ;;  %v9979_v40 = vld [vmem:[#allocation50_spill] sm:$0xff] }
 0x8a1   : > { %v3187_v59 = vmul.f32 %v6323_v4, %v9977_v50  ;;  %v3186_v57 = vmul.f32 %v6323_v4, %v9978_v52  ;;  %6332 = vrcp.f32 %v3738_v18  ;;  %v9988_v4 = vld [vmem:[#allocation104_spill] sm:$0xff] }
 0x8a2   : > { %5353 = vmatpush3.bf16.msra.mxu1 %v9972_v51  ;;  %6334 = vrcp.f32 %v3741_v42  ;;  %v9984_v42 = vld [vmem:[#allocation79_spill] sm:$0xff] }
 0x8a3   : > { %5354 = vmatprep.subr.bf16.mxu1 %v8990_v15  ;;  %v9975_v15 = vld [vmem:[#allocation51_spill] sm:$0xff]  ;;  %v3205_v10 = vpack.c.bf16 %v3187_v59, %v3185_v22  ;;  %v6325_v55 = vpop.eup %6324  ;;  %v3204_v30 = vpack.c.bf16 %v3186_v57, %v3184_v14 }
 0x8a4   : > { %v3744_v56 = vpop.xlane.xlu0 %3743  ;;  %v3183_v8 = vmul.f32 %v6319_v63, %v9975_v15  ;;  %v6327_v19 = vpop.eup %6326  ;;  %v3189_v58 = vmul.f32 %v6325_v55, %v8850_v36  ;;  %v3188_v51 = vmul.f32 %v6325_v55, %v9980_v44  ;;  %v9986_v15 = vld [vmem:[#allocation98_spill] sm:$0xff]  ;;  %v9994_v44 = vld [vmem:[#allocation68_spill] sm:$0xff] }
 0x8a5   : > { %3313 = vmatmul.mubr.bf16.gmra.mrb[76].mxu1 %v3198_v12  ;;  %v3191_v20 = vmul.f32 %v6327_v19, %v9979_v40  ;;  %v9982_v12 = vld [vmem:[#allocation49_spill] sm:$0xff]  ;;  %6336 = vrcp.f32 %v3744_v56 }
 0x8a6   : > { %5355 = vmatpush3.bf16.msra.mxu1 %v9002_v9  ;;  %3320 = vmatprep.mubr.bf16.mxu1 %v3201_v48  ;;  %v3203_v46 = vpack.c.bf16 %v3183_v8, %v3181_v16  ;;  %v3857_v9 = vpop.permute.xlu1 %3856  ;;  %v3190_v6 = vmul.f32 %v6327_v19, %v9982_v12  ;;  %v9983_v48 = vld [vmem:[#allocation53_spill] sm:$0xff]  ;;  %6338 = vrcp.f32 %v3747_v0  ;;  %v9991_v19 = vld [vmem:[#allocation70_spill] sm:$0xff] }
 0x8a7   : > { %v3207_v2 = vpack.c.bf16 %v3191_v20, %v3189_v58  ;;  %v6329_v37 = vpop.eup %6328  ;;  %v9992_v20 = vld [vmem:[#allocation89_spill] sm:$0xff] }
 0x8a8   : > { %v3750_v13 = vpop.xlane.xlu0 %3749  ;;  %v6331_v33 = vpop.eup %6330  ;;  %v3797_v53 = vmul.f32 %v6329_v37, %v9981_v23  ;;  %v3206_v26 = vpack.c.bf16 %v3190_v6, %v3188_v51  ;;  %v3796_v16 = vmul.f32 %v6329_v37, %v9984_v42  ;;  %v9995_v23 = vld [vmem:[#allocation75_spill] sm:$0xff] }
 0x8a9   : > { %v3795_v36 = vmul.f32 %v6331_v33, %v9983_v48  ;;  %v3794_v8 = vmul.f32 %v6331_v33, %v9986_v15  ;;  %6340 = vrcp.f32 %v3750_v13 }
 0x8aa   : > { %6342 = vrcp.f32 %v3753_v49 }
 0x8ab   : > { %v3827_v63 = vpack.c.bf16 %v3797_v53, %v3795_v36  ;;  %v6333_v32 = vpop.eup %6332 }
 0x8ac   : > { %v3873_v17 = vpop.permute.xlu0 %3872  ;;  %v6335_v18 = vpop.eup %6334  ;;  %v3799_v31 = vmul.f32 %v6333_v32, %v9985_v62  ;;  %v3798_v28 = vmul.f32 %v6333_v32, %v9988_v4  ;;  %v9997_v62 = vld [vmem:[#allocation73_spill] sm:$0xff] }
 0x8ad   : > { %3321 = vmatmul.mubr.bf16.gmra.mrb[80].mxu1 %v3200_v34  ;;  %5356 = vmatprep.subr.bf16.mxu1 %v3873_v17  ;;  %v9987_v34 = vld [vmem:[#allocation65_spill] sm:$0xff] }
 0x8ae   : > { %3328 = vmatprep.mubr.bf16.mxu1 %v3203_v46  ;;  %5357 = vmatpush3.bf16.msra.mxu1 %v3857_v9  ;;  %v3801_v17 = vmul.f32 %v6335_v18, %v9987_v34  ;;  %v3826_v46 = vpack.c.bf16 %v3796_v16, %v3794_v8 }
 0x8af   : > { %v6337_v9 = vpop.eup %6336 }
 0x8b0   : > { %v3829_v27 = vpack.c.bf16 %v3801_v17, %v3799_v31  ;;  %v6339_v56 = vpop.eup %6338  ;;  %v3803_v29 = vmul.f32 %v6337_v9, %v9989_v54 }
 0x8b1   : > { %v3805_v13 = vmul.f32 %v6339_v56, %v9991_v19  ;;  %v3804_v51 = vmul.f32 %v6339_v56, %v9994_v44 }
 0x8b3   : > { %v3831_v52 = vpack.c.bf16 %v3805_v13, %v3803_v29  ;;  %v6341_v49 = vpop.eup %6340 }
 0x8b4   : > { %v6343_v40 = vpop.eup %6342 }
 0x8b5   : > { %3329 = vmatmul.mubr.bf16.gmra.mrb[84].mxu1 %v3202_v5  ;;  %v9990_v5 = vld [vmem:[#allocation64_spill] sm:$0xff]  ;;  %v3809_v53 = vmul.f32 %v6343_v40, %v9995_v23  ;;  %v3808_v31 = vmul.f32 %v6343_v40, %v9997_v62 }
 0x8b6   : > { %3336 = vmatprep.mubr.bf16.mxu1 %v3205_v10  ;;  %v3800_v10 = vmul.f32 %v6335_v18, %v9990_v5 }
 0x8b8   : > { %v3828_v58 = vpack.c.bf16 %v3800_v10, %v3798_v28 }
 0x8bd   : > { %3337 = vmatmul.mubr.bf16.gmra.mrb[88].mxu1 %v3204_v30  ;;  %v3802_v30 = vmul.f32 %v6337_v9, %v9992_v20  ;;  %v3759_v33 = vpop.xlane.xlu1 %3758 }
 0x8be   : > { %3344 = vmatprep.mubr.bf16.mxu1 %v3207_v2  ;;  %v9993_v2 = vld [vmem:[#allocation96_spill] sm:$0xff]  ;;  %6344 = vrcp.f32 %v3759_v33 }
 0x8bf   : > { %v3807_v37 = vmul.f32 %v6341_v49, %v9993_v2  ;;  %v3830_v12 = vpack.c.bf16 %v3804_v51, %v3802_v30 }
 0x8c1   : > { %v3833_v6 = vpack.c.bf16 %v3809_v53, %v3807_v37  ;;  %v3771_v17 = vpop.xlane.xlu1 %3770 }
 0x8c5   : > { %3345 = vmatmul.mubr.bf16.gmra.mrb[92].mxu1 %v3206_v26  ;;  %v9996_v26 = vld [vmem:[#allocation43_spill] sm:$0xff] }
 0x8c6   : > { %3922 = vmatprep.mubr.bf16.mxu1 %v3827_v63  ;;  %v3806_v63 = vmul.f32 %v6341_v49, %v9996_v26 }
 0x8c8   : > { %v3832_v34 = vpack.c.bf16 %v3808_v31, %v3806_v63  ;;  %v6345_v9 = vpop.eup %6344 }
 0x8c9   : > { %v3813_v28 = vmul.f32 %v6345_v9, %v8913_v47  ;;  %v3812_v54 = vmul.f32 %v6345_v9, %v8907_v3 }
 0x8cb   : > { %v3777_v29 = vpop.xlane.xlu1 %3776 }
 0x8cd   : > { %3923 = vmatmul.mubr.bf16.vlgmr.msra.gmra.mrb[96].mxu1 %v3826_v46 }
 0x8ce   : > { %3930 = vmatprep.mubr.bf16.mxu1 %v3829_v27 }
 0x8cf   : > { %v5166_v0 = vpop.f32.mrb[32].mxu1 }
 0x8d0   : > { %v5167_v22 = vpop.f32.mrb[33].mxu1 }
 0x8d1   : > { %v5168_v50 = vadd.f32 %v5167_v22, %v5166_v0  ;;  %v5169_v59 = vpop.f32.mrb[34].mxu1 }
 0x8d2   : > { %v5170_v55 = vpop.f32.mrb[35].mxu1 }
 0x8d3   : > { %v5171_v14 = vadd.f32 %v5170_v55, %v5169_v59 }
 0x8d5   : > { %v5840_v57 = vpack.i.bf16 %v5171_v14, %v5168_v50  ;;  %3931 = vmatmul.mubr.bf16.gmra.mrb[100].mxu1 %v3828_v58 }
 0x8d6   : > { %3938 = vmatprep.mubr.bf16.mxu1 %v3831_v52 }
 0x8d7   : > { %5841 = vrot.lane.b32.xlu0 %v5840_v57, %s6779_s15 }
 0x8dd   : > { %v3756_v48 = vpop.xlane.xlu0 %3755  ;;  %3939 = vmatmul.mubr.bf16.gmra.mrb[104].mxu1 %v3830_v12  ;;  %v5172_v36 = vpop.f32.mrb[36].mxu1 }
 0x8de   : > { %6346 = vrcp.f32 %v3756_v48  ;;  %3946 = vmatprep.mubr.bf16.mxu1 %v3833_v6  ;;  %v5173_v32 = vpop.f32.mrb[37].mxu1 }
 0x8df   : > { %v5174_v18 = vadd.f32 %v5173_v32, %v5172_v36  ;;  %v5175_v42 = vpop.f32.mrb[38].mxu1 }
 0x8e0   : > { %v5176_v15 = vpop.f32.mrb[39].mxu1 }
 0x8e1   : > { %v3762_v16 = vpop.xlane.xlu0 %3761  ;;  %v5177_v8 = vadd.f32 %v5176_v15, %v5175_v42 }
 0x8e2   : > { %6348 = vrcp.f32 %v3762_v16 }
 0x8e3   : > { %v5845_v46 = vpack.i.bf16 %v5177_v8, %v5174_v18 }
 0x8e5   : > { %v3765_v27 = vpop.xlane.xlu0 %3764  ;;  %3947 = vmatmul.mubr.bf16.gmra.mrb[108].mxu1 %v3832_v34  ;;  %5846 = vrot.lane.b32.xlu1 %v5845_v46, %s6779_s15 }
 0x8e6   : > { %6350 = vrcp.f32 %v3765_v27 }
 0x8e7   : > { %6352 = vrcp.f32 %v3771_v17 }
 0x8e8   : > { %v6347_v56 = vpop.eup %6346 }
 0x8e9   : > { %v3768_v0 = vpop.xlane.xlu0 %3767  ;;  %v3811_v4 = vmul.f32 %v6347_v56, %v8962_v7  ;;  %v3810_v22 = vmul.f32 %v6347_v56, %v8960_v21 }
 0x8ea   : > { %6354 = vrcp.f32 %v3768_v0 }
 0x8eb   : > { %v3835_v50 = vpack.c.bf16 %v3813_v28, %v3811_v4  ;;  %v3834_v59 = vpack.c.bf16 %v3812_v54, %v3810_v22  ;;  %6356 = vrcp.f32 %v3777_v29 }
 0x8ec   : > { %v6349_v10 = vpop.eup %6348 }
 0x8ed   : > { %v3774_v5 = vpop.xlane.xlu0 %3773  ;;  %3954 = vmatprep.mubr.bf16.mxu1 %v3835_v50  ;;  %v3815_v19 = vmul.f32 %v6349_v10, %v8968_v11  ;;  %v3814_v47 = vmul.f32 %v6349_v10, %v8964_v38 }
 0x8ee   : > { %6358 = vrcp.f32 %v3774_v5  ;;  %3955 = vmatmul.mubr.bf16.gmra.mrb[112].mxu1 %v3834_v59 }
 0x8f0   : > { %v6351_v55 = vpop.eup %6350 }
 0x8f1   : > { %v3817_v7 = vmul.f32 %v6351_v55, %v8974_v45  ;;  %v3816_v21 = vmul.f32 %v6351_v55, %v8970_v43  ;;  %v6353_v3 = vpop.eup %6352 }
 0x8f2   : > { %v3821_v49 = vmul.f32 %v6353_v3, %v8919_v24  ;;  %v3820_v43 = vmul.f32 %v6353_v3, %v8917_v61 }
 0x8f3   : > { %v3837_v13 = vpack.c.bf16 %v3817_v7, %v3815_v19  ;;  %v3836_v14 = vpack.c.bf16 %v3816_v21, %v3814_v47 }
 0x8f4   : > { %v6355_v58 = vpop.eup %6354 }
 0x8f5   : > { %3962 = vmatprep.mubr.bf16.mxu1 %v3837_v13  ;;  %v3819_v52 = vmul.f32 %v6355_v58, %v8980_v39  ;;  %v6357_v57 = vpop.eup %6356  ;;  %v3818_v11 = vmul.f32 %v6355_v58, %v8976_v60 }
 0x8f6   : > { %3963 = vmatmul.mubr.bf16.gmra.mrb[116].mxu1 %v3836_v14  ;;  %v3825_v45 = vmul.f32 %v6357_v57, %v8936_v35  ;;  %v3824_v24 = vmul.f32 %v6357_v57, %v8934_v25 }
 0x8f7   : > { %v3839_v40 = vpack.c.bf16 %v3821_v49, %v3819_v52  ;;  %v3838_v30 = vpack.c.bf16 %v3820_v43, %v3818_v11 }
 0x8f8   : > { %v6359_v20 = vpop.eup %6358 }
 0x8f9   : > { %3970 = vmatprep.mubr.bf16.mxu1 %v3839_v40  ;;  %v3823_v38 = vmul.f32 %v6359_v20, %v8986_v41  ;;  %v3822_v39 = vmul.f32 %v6359_v20, %v8982_v1 }
 0x8fb   : > { %v3841_v2 = vpack.c.bf16 %v3825_v45, %v3823_v38  ;;  %v3840_v44 = vpack.c.bf16 %v3824_v24, %v3822_v39 }
 0x8fe   : > { %3971 = vmatmul.mubr.bf16.gmra.mrb[120].mxu1 %v3838_v30 }
 0x8ff   : > { %3978 = vmatprep.mubr.bf16.mxu1 %v3841_v2 }
 0x903   : > { %v5178_v37 = vpop.f32.mrb[40].mxu1 }
 0x904   : > { %v5179_v33 = vpop.f32.mrb[41].mxu1 }
 0x905   : > { %v5180_v51 = vadd.f32 %v5179_v33, %v5178_v37  ;;  %v5181_v60 = vpop.f32.mrb[42].mxu1 }
 0x906   : > { %v5182_v23 = vpop.f32.mrb[43].mxu1  ;;  %3979 = vmatmul.mubr.bf16.gmra.mrb[124].mxu1 %v3840_v44 }
 0x907   : > { %v5183_v41 = vadd.f32 %v5182_v23, %v5181_v60 }
 0x909   : > { %v5850_v53 = vpack.i.bf16 %v5183_v41, %v5180_v51  ;;  %v5968_v41 = vld [vmem:[#allocation15] sm:$0xff]  }
 0x90a   : > { %5550 = vmatprep.subr.bf16.mxu0 %v5968_v41  ;;  %5582 = vmatprep.subr.bf16.mxu1 %v5968_v41 }
 0x90b   : > { %v5184_v61 = vpop.f32.mrb[44].mxu1  ;;  %5851 = vrot.lane.b32.xlu0 %v5850_v53, %s6779_s15  ;;  %5551 = vmatpush3.bf16.msra.mxu0 %v5968_v41 }
 0x90c   : > { %v5185_v35 = vpop.f32.mrb[45].mxu1  ;;  %5590 = vmatpush3.bf16.msra.mxu1 %v5968_v41 }
 0x90d   : > { %v5186_v12 = vadd.f32 %v5185_v35, %v5184_v61  ;;  %v5187_v6 = vpop.f32.mrb[46].mxu1 }
 0x90e   : > { %v5188_v48 = vpop.f32.mrb[47].mxu1 }
 0x90f   : > { %v5189_v36 = vadd.f32 %v5188_v48, %v5187_v6 }
 0x911   : > { %v5855_v1 = vpack.i.bf16 %v5189_v36, %v5186_v12 }
 0x913   : > { %5856 = vrot.lane.b32.xlu0 %v5855_v1, %s6779_s15  ;;  %v5969_v1 = vld [vmem:[#allocation15 + $0x8] sm:$0xff]  }
 0x914   : > { %5552 = vmatprep.subr.bf16.mxu0 %v5969_v1  ;;  %5583 = vmatprep.subr.bf16.mxu1 %v5969_v1 }
 0x915   : > { %v5190_v25 = vpop.f32.mrb[48].mxu1  ;;  %5553 = vmatpush3.bf16.msra.mxu0 %v5969_v1  ;;  %5591 = vmatpush3.bf16.msra.mxu1 %v5969_v1 }
 0x916   : > { %v5191_v26 = vpop.f32.mrb[49].mxu1 }
 0x917   : > { %v5192_v63 = vadd.f32 %v5191_v26, %v5190_v25  ;;  %v5193_v32 = vpop.f32.mrb[50].mxu1 }
 0x918   : > { %v5194_v18 = vpop.f32.mrb[51].mxu1 }
 0x919   : > { %v5195_v42 = vadd.f32 %v5194_v18, %v5193_v32 }
 0x91b   : > { %v5860_v16 = vpack.i.bf16 %v5195_v42, %v5192_v63 }
 0x91d   : > { %5861 = vrot.lane.b32.xlu1 %v5860_v16, %s6779_s15 }
 0x948   : > { %v5196_v62 = vpop.f32.mrb[52].mxu1 }
 0x949   : > { %v5197_v31 = vpop.f32.mrb[53].mxu1 }
 0x94a   : > { %v5198_v15 = vadd.f32 %v5197_v31, %v5196_v62  ;;  %v5199_v8 = vpop.f32.mrb[54].mxu1  ;;  %v5970_v62 = vld [vmem:[#allocation15 + $0x10] sm:$0xff]  }
 0x94b   : > { %v5200_v34 = vpop.f32.mrb[55].mxu1  ;;  %5554 = vmatprep.subr.bf16.mxu0 %v5970_v62  ;;  %5584 = vmatprep.subr.bf16.mxu1 %v5970_v62 }
 0x94c   : > { %v5201_v17 = vadd.f32 %v5200_v34, %v5199_v8  ;;  %5555 = vmatpush3.bf16.msra.mxu0 %v5970_v62  ;;  %5592 = vmatpush3.bf16.msra.mxu1 %v5970_v62 }
 0x94e   : > { %v5865_v46 = vpack.i.bf16 %v5201_v17, %v5198_v15 }
 0x950   : > { %5866 = vrot.lane.b32.xlu1 %v5865_v46, %s6779_s15  ;;  %v5202_v27 = vpop.f32.mrb[56].mxu1 }
 0x951   : > { %v5203_v9 = vpop.f32.mrb[57].mxu1 }
 0x952   : > { %v5204_v56 = vadd.f32 %v5203_v9, %v5202_v27  ;;  %v5205_v0 = vpop.f32.mrb[58].mxu1  ;;  %v5971_v9 = vld [vmem:[#allocation15 + $0x18] sm:$0xff]  }
 0x953   : > { %v5206_v4 = vpop.f32.mrb[59].mxu1  ;;  %5556 = vmatprep.subr.bf16.mxu0 %v5971_v9  ;;  %5585 = vmatprep.subr.bf16.mxu1 %v5971_v9 }
 0x954   : > { %v5207_v28 = vadd.f32 %v5206_v4, %v5205_v0  ;;  %5557 = vmatpush3.bf16.msra.mxu0 %v5971_v9  ;;  %5593 = vmatpush3.bf16.msra.mxu1 %v5971_v9 }
 0x956   : > { %v5870_v22 = vpack.i.bf16 %v5207_v28, %v5204_v56  ;;  %v5972_v56 = vld [vmem:[#allocation15 + $0x20] sm:$0xff]  }
 0x957   : > { %5558 = vmatprep.subr.bf16.mxu0 %v5972_v56  ;;  %5586 = vmatprep.subr.bf16.mxu1 %v5972_v56 }
 0x958   : > { %5871 = vrot.lane.b32.xlu1 %v5870_v22, %s6779_s15  ;;  %v5208_v54 = vpop.f32.mrb[60].mxu1  ;;  %5559 = vmatpush3.bf16.msra.mxu0 %v5972_v56 }
 0x959   : > { %v5209_v29 = vpop.f32.mrb[61].mxu1  ;;  %5594 = vmatpush3.bf16.msra.mxu1 %v5972_v56 }
 0x95a   : > { %v5210_v50 = vadd.f32 %v5209_v29, %v5208_v54  ;;  %v5211_v59 = vpop.f32.mrb[62].mxu1 }
 0x95b   : > { %v5212_v5 = vpop.f32.mrb[63].mxu1 }
 0x95c   : > { %v5213_v10 = vadd.f32 %v5212_v5, %v5211_v59  ;;  %v5974_v5 = vld [vmem:[#allocation15 + $0x30] sm:$0xff]  }
 0x95e   : > { %v5875_v55 = vpack.i.bf16 %v5213_v10, %v5210_v50  ;;  %v5973_v50 = vld [vmem:[#allocation15 + $0x28] sm:$0xff]  }
 0x95f   : > { %5560 = vmatprep.subr.bf16.mxu0 %v5973_v50  ;;  %5587 = vmatprep.subr.bf16.mxu1 %v5973_v50 }
 0x960   : > { %5876 = vrot.lane.b32.xlu1 %v5875_v55, %s6779_s15  ;;  %v5262_v19 = vpop.f32.mrb[64].mxu1  ;;  %5561 = vmatpush3.bf16.msra.mxu0 %v5973_v50  ;;  %s4638_s15 = scalar_lea.sflag [#allocation6], %s7202_s10 }
 0x961   : > { %v5263_v7 = vpop.f32.mrb[65].mxu1  ;;  %5562 = vmatprep.subr.bf16.mxu0 %v5974_v5  ;;  %5595 = vmatpush3.bf16.msra.mxu1 %v5973_v50 }
 0x962   : > { %v5264_v47 = vadd.f32 %v5263_v7, %v5262_v19  ;;  %v5265_v21 = vpop.f32.mrb[66].mxu1  ;;  %5588 = vmatprep.subr.bf16.mxu1 %v5974_v5 }
 0x963   : > { %v5266_v3 = vpop.f32.mrb[67].mxu1 }
 0x964   : > { %v5267_v13 = vadd.f32 %v5266_v3, %v5265_v21  ;;  %5563 = vmatpush3.bf16.msra.mxu0 %v5974_v5 }
 0x965   : > { %5596 = vmatpush3.bf16.msra.mxu1 %v5974_v5 }
 0x966   : > { %v5880_v14 = vpack.i.bf16 %v5267_v13, %v5264_v47 }
 0x968   : > { %v5268_v58 = vpop.f32.mrb[68].mxu1  ;;  %5881 = vrot.lane.b32.xlu0 %v5880_v14, %s6778_s8  ;;  %v5975_v14 = vld [vmem:[#allocation15 + $0x38] sm:$0xff]  }
 0x969   : > { %v5269_v52 = vpop.f32.mrb[69].mxu1  ;;  %5564 = vmatprep.subr.bf16.mxu0 %v5975_v14  ;;  %5589 = vmatprep.subr.bf16.mxu1 %v5975_v14 }
 0x96a   : > { %v5270_v49 = vadd.f32 %v5269_v52, %v5268_v58  ;;  %v5271_v57 = vpop.f32.mrb[70].mxu1  ;;  %5565 = vmatpush3.bf16.msra.mxu0 %v5975_v14  ;;  %5597 = vmatpush3.bf16.msra.mxu1 %v5975_v14 }
 0x96b   : > { %v5272_v40 = vpop.f32.mrb[71].mxu1 }
 0x96c   : > { %v5273_v20 = vadd.f32 %v5272_v40, %v5271_v57 }
 0x96e   : > { %v5885_v11 = vpack.i.bf16 %v5273_v20, %v5270_v49 }
 0x970   : > { %v5274_v38 = vpop.f32.mrb[72].mxu1  ;;  %5886 = vrot.lane.b32.xlu0 %v5885_v11, %s6778_s8 }
 0x971   : > { %v5275_v43 = vpop.f32.mrb[73].mxu1 }
 0x972   : > { %v5276_v45 = vadd.f32 %v5275_v43, %v5274_v38  ;;  %v5277_v30 = vpop.f32.mrb[74].mxu1 }
 0x973   : > { %v5278_v2 = vpop.f32.mrb[75].mxu1 }
 0x974   : > { %v5279_v39 = vadd.f32 %v5278_v2, %v5277_v30 }
 0x976   : > { %v5890_v24 = vpack.i.bf16 %v5279_v39, %v5276_v45 }
 0x978   : > { %v5280_v37 = vpop.f32.mrb[76].mxu1  ;;  %5891 = vrot.lane.b32.xlu0 %v5890_v24, %s6778_s8 }
 0x979   : > { %v5281_v33 = vpop.f32.mrb[77].mxu1 }
 0x97a   : > { %v5282_v44 = vadd.f32 %v5281_v33, %v5280_v37  ;;  %v5283_v51 = vpop.f32.mrb[78].mxu1 }
 0x97b   : > { %v5284_v60 = vpop.f32.mrb[79].mxu1 }
 0x97c   : > { %v5285_v23 = vadd.f32 %v5284_v60, %v5283_v51 }
 0x97e   : > { %v5895_v53 = vpack.i.bf16 %v5285_v23, %v5282_v44 }
 0x980   : > { %5896 = vrot.lane.b32.xlu0 %v5895_v53, %s6778_s8  ;;  %v5286_v61 = vpop.f32.mrb[80].mxu1 }
 0x981   : > { %v5287_v35 = vpop.f32.mrb[81].mxu1 }
 0x982   : > { %v5288_v12 = vadd.f32 %v5287_v35, %v5286_v61  ;;  %v5289_v6 = vpop.f32.mrb[82].mxu1 }
 0x983   : > { %v5290_v48 = vpop.f32.mrb[83].mxu1 }
 0x984   : > { %v5291_v36 = vadd.f32 %v5290_v48, %v5289_v6 }
 0x986   : > { %v5900_v25 = vpack.i.bf16 %v5291_v36, %v5288_v12 }
 0x988   : > { %5901 = vrot.lane.b32.xlu1 %v5900_v25, %s6778_s8  ;;  %v5292_v26 = vpop.f32.mrb[84].mxu1 }
 0x989   : > { %v5293_v63 = vpop.f32.mrb[85].mxu1 }
 0x98a   : > { %v5294_v32 = vadd.f32 %v5293_v63, %v5292_v26  ;;  %v5295_v18 = vpop.f32.mrb[86].mxu1 }
 0x98b   : > { %v5296_v42 = vpop.f32.mrb[87].mxu1 }
 0x98c   : > { %v5297_v16 = vadd.f32 %v5296_v42, %v5295_v18 }
 0x98e   : > { %v5905_v31 = vpack.i.bf16 %v5297_v16, %v5294_v32 }
 0x990   : > { %5906 = vrot.lane.b32.xlu1 %v5905_v31, %s6778_s8  ;;  %v5298_v15 = vpop.f32.mrb[88].mxu1 }
 0x991   : > { %v5299_v8 = vpop.f32.mrb[89].mxu1 }
 0x992   : > { %v5300_v34 = vadd.f32 %v5299_v8, %v5298_v15  ;;  %v5301_v17 = vpop.f32.mrb[90].mxu1 }
 0x993   : > { %v5302_v46 = vpop.f32.mrb[91].mxu1 }
 0x994   : > { %v5303_v27 = vadd.f32 %v5302_v46, %v5301_v17 }
 0x996   : > { %v5910_v0 = vpack.i.bf16 %v5303_v27, %v5300_v34 }
 0x998   : > { %5911 = vrot.lane.b32.xlu1 %v5910_v0, %s6778_s8  ;;  %v5304_v4 = vpop.f32.mrb[92].mxu1 }
 0x999   : > { %v5305_v28 = vpop.f32.mrb[93].mxu1 }
 0x99a   : > { %v5306_v22 = vadd.f32 %v5305_v28, %v5304_v4  ;;  %v5307_v54 = vpop.f32.mrb[94].mxu1 }
 0x99b   : > { %v5308_v29 = vpop.f32.mrb[95].mxu1 }
 0x99c   : > { %v5309_v59 = vadd.f32 %v5308_v29, %v5307_v54 }
 0x99e   : > { %v5915_v10 = vpack.i.bf16 %v5309_v59, %v5306_v22  ;;  %v5842_v22 = vpop.permute.xlu0 %5841 }
 0x9a0   : > { %5916 = vrot.lane.b32.xlu1 %v5915_v10, %s6778_s8  ;;  %v5358_v55 = vpop.f32.mrb[96].mxu1 }
 0x9a1   : > { %v5359_v19 = vpop.f32.mrb[97].mxu1 }
 0x9a2   : > { %v5360_v7 = vadd.f32 %v5359_v19, %v5358_v55  ;;  %v5361_v47 = vpop.f32.mrb[98].mxu1  ;;  %v5852_v54 = vpop.permute.xlu0 %5851  ;;  %v5844_v55 = vunpack.i.h.bf16 %v5842_v22  ;;  %v5843_v19 = vunpack.i.l.bf16 %v5842_v22 }
 0x9a3   : > { %v5362_v21 = vpop.f32.mrb[99].mxu1 }
 0x9a4   : > { %v5363_v3 = vadd.f32 %v5362_v21, %v5361_v47 }
 0x9a6   : > { %v5920_v13 = vpack.i.bf16 %v5363_v3, %v5360_v7  ;;  %v9116_v29 = vpop.permute.xlu0 %5856  ;;  %v5847_v7 = vpop.permute.xlu1 %5846 }
 0x9a7   : > { %v5859_v22 = vunpack.i.h.bf16 %v9116_v29 }
 0x9a8   : > { %v5364_v58 = vpop.f32.mrb[100].mxu1  ;;  %5921 = vrot.lane.b32.xlu0 %v5920_v13, %s6777_s25  ;;  %v9998_v13 = vld [vmem:[#allocation54_spill] sm:$0xff] }
 0x9a9   : > { %v5365_v52 = vpop.f32.mrb[101].mxu1  ;;  %v4180_v14 = vsel %vm1506_vm0, %v9998_v13, %v5844_v55 }
 0x9aa   : > { %v5366_v49 = vadd.f32 %v5365_v52, %v5364_v58  ;;  %v5367_v57 = vpop.f32.mrb[102].mxu1  ;;  %v9999_v58 = vld [vmem:[#allocation35_spill] sm:$0xff] }
 0x9ab   : > { %v5368_v40 = vpop.f32.mrb[103].mxu1  ;;  %v4179_v52 = vsel %vm1506_vm0, %v9999_v58, %v5843_v19  ;;  %v10004_v19 = vld [vmem:[#allocation59_spill] sm:$0xff] }
 0x9ac   : > { %v5369_v20 = vadd.f32 %v5368_v40, %v5367_v57 }
 0x9ae   : > { %v5925_v11 = vpack.i.bf16 %v5369_v20, %v5366_v49  ;;  %v9124_v49 = vpop.permute.xlu1 %5861 }
 0x9b0   : > { %v5370_v38 = vpop.f32.mrb[104].mxu1  ;;  %5926 = vrot.lane.b32.xlu0 %v5925_v11, %s6777_s25 }
 0x9b1   : > { %v5371_v43 = vpop.f32.mrb[105].mxu1 }
 0x9b2   : > { %v5372_v45 = vadd.f32 %v5371_v43, %v5370_v38  ;;  %v5373_v30 = vpop.f32.mrb[106].mxu1 }
 0x9b3   : > { %v5374_v2 = vpop.f32.mrb[107].mxu1 }
 0x9b4   : > { %v5375_v39 = vadd.f32 %v5374_v2, %v5373_v30  ;;  %v5849_v30 = vunpack.i.h.bf16 %v5847_v7  ;;  %v5848_v2 = vunpack.i.l.bf16 %v5847_v7  ;;  %v4186_v7 = vsel %vm1506_vm0, %v10004_v19, %v5859_v22 }
 0x9b6   : > { %v5930_v24 = vpack.i.bf16 %v5375_v39, %v5372_v45 }
 0x9b8   : > { %v5376_v37 = vpop.f32.mrb[108].mxu1  ;;  %5931 = vrot.lane.b32.xlu0 %v5930_v24, %s6777_s25 }
 0x9b9   : > { %v5377_v33 = vpop.f32.mrb[109].mxu1 }
 0x9ba   : > { %v5378_v44 = vadd.f32 %v5377_v33, %v5376_v37  ;;  %v5379_v51 = vpop.f32.mrb[110].mxu1 }
 0x9bb   : > { %v5380_v60 = vpop.f32.mrb[111].mxu1 }
 0x9bc   : > { %v5381_v23 = vadd.f32 %v5380_v60, %v5379_v51  ;;  %v9136_v51 = vld [vmem:[%s7206_s28 + $0x8] sm:$0xff]  ;;  %v10000_v60 = vld [vmem:[#allocation57_spill] sm:$0xff] }
 0x9be   : > { %v5935_v41 = vpack.i.bf16 %v5381_v23, %v5378_v44  ;;  %v9133_v44 = vld [vmem:[%s7206_s28] sm:$0xff]  ;;  %v4182_v23 = vsel %vm1506_vm0, %v10000_v60, %v5849_v30  ;;  %v10006_v30 = vld [vmem:[#allocation56_spill] sm:$0xff] }
 0x9c0   : > { %5936 = vrot.lane.b32.xlu0 %v5935_v41, %s6777_s25  ;;  %v10001_v41 = vld [vmem:[#allocation36_spill] sm:$0xff] }
 0x9c1   : > { %v5382_v53 = vpop.f32.mrb[112].mxu1 }
 0x9c2   : > { %v5383_v61 = vpop.f32.mrb[113].mxu1  ;;  %v9130_v39 = vpop.permute.xlu1 %5866 }
 0x9c3   : > { %v5384_v35 = vadd.f32 %v5383_v61, %v5382_v53  ;;  %v5385_v12 = vpop.f32.mrb[114].mxu1  ;;  %v4181_v53 = vsel %vm1506_vm0, %v10001_v41, %v5848_v2 }
 0x9c4   : > { %v5386_v6 = vpop.f32.mrb[115].mxu1 }
 0x9c5   : > { %v5387_v48 = vadd.f32 %v5386_v6, %v5385_v12 }
 0x9c7   : > { %v5940_v36 = vpack.i.bf16 %v5387_v48, %v5384_v35 }
 0x9c9   : > { %v5388_v1 = vpop.f32.mrb[116].mxu1  ;;  %5941 = vrot.lane.b32.xlu1 %v5940_v36, %s6777_s25 }
 0x9ca   : > { %v5389_v25 = vpop.f32.mrb[117].mxu1  ;;  %v9142_v61 = vpop.permute.xlu1 %5871 }
 0x9cb   : > { %v5390_v26 = vadd.f32 %v5389_v25, %v5388_v1  ;;  %v5391_v63 = vpop.f32.mrb[118].mxu1  ;;  %v1297_v25 = vpack.c.bf16 %v9136_v51, %v9133_v44 }
 0x9cc   : > { %v5392_v32 = vpop.f32.mrb[119].mxu1 }
 0x9cd   : > { %v5393_v18 = vadd.f32 %v5392_v32, %v5391_v63  ;;  %v5854_v63 = vunpack.i.h.bf16 %v5852_v54  ;;  %v5853_v32 = vunpack.i.l.bf16 %v5852_v54  ;;  %v5858_v54 = vunpack.i.l.bf16 %v9116_v29 }
 0x9cf   : > { %v5945_v42 = vpack.i.bf16 %v5393_v18, %v5390_v26 }
 0x9d1   : > { %5946 = vrot.lane.b32.xlu1 %v5945_v42, %s6777_s25  ;;  %v5394_v16 = vpop.f32.mrb[120].mxu1 }
 0x9d2   : > { %v5395_v62 = vpop.f32.mrb[121].mxu1  ;;  %v9150_v18 = vpop.permute.xlu1 %5876 }
 0x9d3   : > { %v5396_v31 = vadd.f32 %v5395_v62, %v5394_v16  ;;  %v5397_v15 = vpop.f32.mrb[122].mxu1  ;;  %v5879_v19 = vunpack.i.h.bf16 %v9150_v18 }
 0x9d4   : > { %v5398_v8 = vpop.f32.mrb[123].mxu1 }
 0x9d5   : > { %v5399_v34 = vadd.f32 %v5398_v8, %v5397_v15  ;;  %v10003_v8 = vld [vmem:[#allocation33_spill] sm:$0xff] }
 0x9d7   : > { %v5950_v17 = vpack.i.bf16 %v5399_v34, %v5396_v31  ;;  %v10002_v31 = vld [vmem:[#allocation34_spill] sm:$0xff]  ;;  %v4183_v34 = vsel %vm1506_vm0, %v10003_v8, %v5853_v32 }
 0x9d8   : > { %v4184_v15 = vsel %vm1506_vm0, %v10002_v31, %v5854_v63  ;;  %v10009_v63 = vld [vmem:[#allocation58_spill] sm:$0xff] }
 0x9d9   : > { %5951 = vrot.lane.b32.xlu1 %v5950_v17, %s6777_s25  ;;  %v5400_v46 = vpop.f32.mrb[124].mxu1 }
 0x9da   : > { %v5401_v27 = vpop.f32.mrb[125].mxu1  ;;  %v5882_v50 = vpop.permute.xlu0 %5881 }
 0x9db   : > { %v5402_v9 = vadd.f32 %v5401_v27, %v5400_v46  ;;  %v5403_v56 = vpop.f32.mrb[126].mxu1  ;;  %v5884_v47 = vunpack.i.h.bf16 %v5882_v50  ;;  %v5883_v21 = vunpack.i.l.bf16 %v5882_v50 }
 0x9dc   : > { %v5404_v0 = vpop.f32.mrb[127].mxu1 }
 0x9dd   : > { %v5405_v4 = vadd.f32 %v5404_v0, %v5403_v56  ;;  %v4197_v20 = vsel %vm4195_vm1, %v4180_v14, %v5884_v47  ;;  %v4196_v11 = vsel %vm4195_vm1, %v4179_v52, %v5883_v21  ;;  %v10005_v47 = vld [vmem:[#allocation55_spill] sm:$0xff] }
 0x9de   : > { %v4185_v21 = vsel %vm1506_vm0, %v10005_v47, %v5858_v54 }
 0x9df   : > { %v5955_v28 = vpack.i.bf16 %v5405_v4, %v5402_v9 }
 0x9e1   : > { %5956 = vrot.lane.b32.xlu1 %v5955_v28, %s6777_s25  ;;  %s10019_s25 = sld [smem:[#allocation138_spill]] }
 0x9e2   : > { %v5887_v59 = vpop.permute.xlu0 %5886 }
 0x9e3   : > { %v5889_v24 = vunpack.i.h.bf16 %v5887_v59  ;;  %v5888_v37 = vunpack.i.l.bf16 %v5887_v59 }
 0x9e5   : > { %v4198_v6 = vsel %vm4195_vm1, %v4181_v53, %v5888_v37  ;;  %v4199_v48 = vsel %vm4195_vm1, %v4182_v23, %v5889_v24  ;;  %v10007_v24 = vld [vmem:[#allocation37_spill] sm:$0xff] }
 0x9e7   : > { %s9441_s8 = scalar_lea.hbm %s10019_s25, %s4953_s5 }
 0x9ea   : > { %v5892_v5 = vpop.permute.xlu0 %5891 }
 0x9eb   : > { %v5894_v42 = vunpack.i.h.bf16 %v5892_v5  ;;  %v5893_v16 = vunpack.i.l.bf16 %v5892_v5 }
 0x9ed   : > { %v4200_v9 = vsel %vm4195_vm1, %v4183_v34, %v5893_v16  ;;  %v4201_v56 = vsel %vm4195_vm1, %v4184_v15, %v5894_v42  ;;  %v5874_v34 = vunpack.i.h.bf16 %v9142_v61 }
 0x9f2   : > { %v9118_v10 = vpop.permute.xlu0 %5896 }
 0x9f3   : > { %v5899_v59 = vunpack.i.h.bf16 %v9118_v10  ;;  %v5898_v5 = vunpack.i.l.bf16 %v9118_v10 }
 0x9f5   : > { %v4203_v58 = vsel %vm4195_vm1, %v4186_v7, %v5899_v59  ;;  %v4202_v29 = vsel %vm4195_vm1, %v4185_v21, %v5898_v5  ;;  %v5878_v7 = vunpack.i.l.bf16 %v9150_v18 }
 0x9fa   : > { %v5902_v17 = vpop.permute.xlu1 %5901 }
 0xa02   : > { %v5907_v50 = vpop.permute.xlu1 %5906 }
 0xa1a   : > { %v5922_v3 = vpop.permute.xlu0 %5921 }
 0xa1b   : > { %v5924_v57 = vunpack.i.h.bf16 %v5922_v3  ;;  %v5923_v40 = vunpack.i.l.bf16 %v5922_v3  ;;  %v5912_v3 = vpop.permute.xlu1 %5911 }
 0xa1d   : > { %v4213_v38 = vsel %vm4212_vm2, %v4196_v11, %v5923_v40  ;;  %v4214_v43 = vsel %vm4212_vm2, %v4197_v20, %v5924_v57  ;;  %v5864_v20 = vunpack.i.h.bf16 %v9124_v49  ;;  %v5863_v11 = vunpack.i.l.bf16 %v9124_v49 }
 0xa1e   : > { %v4229_v45 = vpack.c.bf16 %v4214_v43, %v4213_v38  ;;  %v5904_v38 = vunpack.i.h.bf16 %v5902_v17  ;;  %v5903_v43 = vunpack.i.l.bf16 %v5902_v17  ;;  %v5873_v17 = vunpack.i.l.bf16 %v9142_v61 }
 0xa1f   : > { %v5917_v40 = vpop.permute.xlu1 %5916  ;;  %v4188_v2 = vsel %vm1506_vm0, %v10006_v30, %v5864_v20  ;;  %v4187_v37 = vsel %vm1506_vm0, %v10007_v24, %v5863_v11 }
 0xa20   : > { %5566 = vmatprep.mubr.bf16.mxu0 %v4229_v45  ;;  %v4204_v23 = vsel %vm4195_vm1, %v4187_v37, %v5903_v43  ;;  %v4205_v41 = vsel %vm4195_vm1, %v4188_v2, %v5904_v38  ;;  %v5919_v47 = vunpack.i.h.bf16 %v5917_v40  ;;  %v5918_v21 = vunpack.i.l.bf16 %v5917_v40  ;;  %v1285_v38 = vld [vmem:[%s7206_s28 + $0x20] sm:$0xff]  ;;  %v1286_v43 = vld [vmem:[%s7206_s28 + $0x28] sm:$0xff]  ;;  %v6420_v2 = vld [vmem:[%s7206_s28 + $0x10] sm:$0xff] }
 0xa22   : > { %v5927_v33 = vpop.permute.xlu0 %5926 }
 0xa23   : > { %v5929_v35 = vunpack.i.h.bf16 %v5927_v33  ;;  %v5928_v12 = vunpack.i.l.bf16 %v5927_v33 }
 0xa25   : > { %v4215_v36 = vsel %vm4212_vm2, %v4198_v6, %v5928_v12  ;;  %v4216_v1 = vsel %vm4212_vm2, %v4199_v48, %v5929_v35  ;;  %v5869_v12 = vunpack.i.h.bf16 %v9130_v39  ;;  %v5868_v6 = vunpack.i.l.bf16 %v9130_v39 }
 0xa26   : > { %v4230_v26 = vpack.c.bf16 %v4216_v1, %v4215_v36  ;;  %v5909_v48 = vunpack.i.h.bf16 %v5907_v50  ;;  %v5908_v36 = vunpack.i.l.bf16 %v5907_v50 }
 0xa27   : > { %v4189_v32 = vsel %vm1506_vm0, %v10009_v63, %v5868_v6 }
 0xa28   : > { %5567 = vmatmul.mubr.bf16.vlgmr.msra.gmra.mrb[144].mxu0 %v4230_v26 }
 0xa29   : > { %5534 = vmatprep.mubr.bf16.mxu0 %v1297_v25  ;;  %v10008_v25 = vld [vmem:[#allocation61_spill] sm:$0xff] }
 0xa2a   : > { %v5932_v62 = vpop.permute.xlu0 %5931  ;;  %v4190_v26 = vsel %vm1506_vm0, %v10008_v25, %v5869_v12  ;;  %v6422_v12 = vld [vmem:[%s7206_s28 + $0x30] sm:$0xff] }
 0xa2b   : > { %v5934_v46 = vunpack.i.h.bf16 %v5932_v62  ;;  %v5933_v27 = vunpack.i.l.bf16 %v5932_v62  ;;  %v4206_v62 = vsel %vm4195_vm1, %v4189_v32, %v5908_v36  ;;  %v4207_v31 = vsel %vm4195_vm1, %v4190_v26, %v5909_v48  ;;  %v6424_v32 = vld [vmem:[%s7206_s28 + $0x50] sm:$0xff] }
 0xa2d   : > { %v4217_v0 = vsel %vm4212_vm2, %v4200_v9, %v5933_v27  ;;  %v4218_v4 = vsel %vm4212_vm2, %v4201_v56, %v5934_v46  ;;  %v5914_v46 = vunpack.i.h.bf16 %v5912_v3  ;;  %v5913_v27 = vunpack.i.l.bf16 %v5912_v3  ;;  %v10010_v56 = vld [vmem:[#allocation39_spill] sm:$0xff] }
 0xa2e   : > { %v4231_v28 = vpack.c.bf16 %v4218_v4, %v4217_v0  ;;  %v4192_v0 = vsel %vm1506_vm0, %v10010_v56, %v5874_v34  ;;  %v10011_v4 = vld [vmem:[#allocation60_spill] sm:$0xff]  ;;  %v9246_v34 = vld [vmem:[%s7206_s28 + $0x48] sm:$0xff] }
 0xa2f   : > { %v4209_v59 = vsel %vm4195_vm1, %v4192_v0, %v5914_v46  ;;  %v9261_v0 = vld [vmem:[%s7206_s28 + $0x68] sm:$0xff] }
 0xa30   : > { %5570 = vmatprep.mubr.bf16.mxu0 %v4231_v28  ;;  %v4191_v28 = vsel %vm1506_vm0, %v10011_v4, %v5873_v17 }
 0xa31   : > { %v4208_v50 = vsel %vm4195_vm1, %v4191_v28, %v5913_v27  ;;  %v9258_v27 = vld [vmem:[%s7206_s28 + $0x60] sm:$0xff] }
 0xa32   : > { %v5937_v55 = vpop.permute.xlu0 %5936 }
 0xa33   : > { %v5939_v13 = vunpack.i.h.bf16 %v5937_v55  ;;  %v5938_v14 = vunpack.i.l.bf16 %v5937_v55 }
 0xa35   : > { %v4219_v52 = vsel %vm4212_vm2, %v4202_v29, %v5938_v14  ;;  %v4220_v57 = vsel %vm4212_vm2, %v4203_v58, %v5939_v13  ;;  %v10012_v13 = vld [vmem:[#allocation42_spill] sm:$0xff]  ;;  %v10013_v58 = vld [vmem:[#allocation41_spill] sm:$0xff] }
 0xa36   : > { %v4232_v10 = vpack.c.bf16 %v4220_v57, %v4219_v52  ;;  %v4194_v14 = vsel %vm1506_vm0, %v10012_v13, %v5879_v19  ;;  %v4193_v29 = vsel %vm1506_vm0, %v10013_v58, %v5878_v7 }
 0xa37   : > { %v4211_v20 = vsel %vm4195_vm1, %v4194_v14, %v5919_v47 }
 0xa38   : > { %5571 = vmatmul.mubr.bf16.gmra.mrb[148].mxu0 %v4232_v10  ;;  %v4210_v10 = vsel %vm4195_vm1, %v4193_v29, %v5918_v21 }
 0xa3b   : > { %v5942_v45 = vpop.permute.xlu1 %5941 }
 0xa3c   : > { %v5944_v33 = vunpack.i.h.bf16 %v5942_v45  ;;  %v5943_v60 = vunpack.i.l.bf16 %v5942_v45  ;;  %v1299_v45 = vpack.c.bf16 %v1286_v43, %v1285_v38 }
 0xa3e   : > { %v4221_v53 = vsel %vm4212_vm2, %v4204_v23, %v5943_v60  ;;  %v4222_v49 = vsel %vm4212_vm2, %v4205_v41, %v5944_v33  ;;  %5538 = vmatprep.mubr.bf16.mxu0 %v1299_v45 }
 0xa3f   : > { %v4233_v35 = vpack.c.bf16 %v4222_v49, %v4221_v53  ;;  %v6421_v53 = vld [vmem:[%s7206_s28 + $0x18] sm:$0xff] }
 0xa41   : > { %5574 = vmatprep.mubr.bf16.mxu1 %v4233_v35 }
 0xa43   : > { %v5947_v1 = vpop.permute.xlu1 %5946 }
 0xa44   : > { %v5949_v42 = vunpack.i.h.bf16 %v5947_v1  ;;  %v5948_v16 = vunpack.i.l.bf16 %v5947_v1  ;;  %v6423_v1 = vld [vmem:[%s7206_s28 + $0x38] sm:$0xff] }
 0xa46   : > { %v4223_v15 = vsel %vm4212_vm2, %v4206_v62, %v5948_v16  ;;  %v4224_v39 = vsel %vm4212_vm2, %v4207_v31, %v5949_v42  ;;  %v9239_v62 = vld [vmem:[%s7206_s28 + $0x40] sm:$0xff] }
 0xa47   : > { %v4234_v8 = vpack.c.bf16 %v4224_v39, %v4223_v15  ;;  %v6425_v15 = vld [vmem:[%s7206_s28 + $0x58] sm:$0xff] }
 0xa49   : > { %5575 = vmatmul.mubr.bf16.vlgmr.msra.gmra.mrb[128].mxu1 %v4234_v8 }
 0xa4b   : > { %v5952_v9 = vpop.permute.xlu1 %5951 }
 0xa4c   : > { %v5954_v22 = vunpack.i.h.bf16 %v5952_v9  ;;  %v5953_v54 = vunpack.i.l.bf16 %v5952_v9 }
 0xa4e   : > { %v4225_v5 = vsel %vm4212_vm2, %v4208_v50, %v5953_v54  ;;  %v4226_v61 = vsel %vm4212_vm2, %v4209_v59, %v5954_v22  ;;  %v6426_v50 = vld [vmem:[%s7206_s28 + $0x70] sm:$0xff] }
 0xa4f   : > { %v4235_v55 = vpack.c.bf16 %v4226_v61, %v4225_v5  ;;  %v6427_v5 = vld [vmem:[%s7206_s28 + $0x78] sm:$0xff]  ;;  %s10015_s28 = sld [smem:[#allocation137_spill]] }
 0xa51   : > { %5578 = vmatprep.mubr.bf16.mxu1 %v4235_v55 }
 0xa53   : > { %v5957_v3 = vpop.permute.xlu1 %5956 }
 0xa54   : > { %v5959_v52 = vunpack.i.h.bf16 %v5957_v3  ;;  %v5958_v57 = vunpack.i.l.bf16 %v5957_v3 }
 0xa56   : > { %v4227_v18 = vsel %vm4212_vm2, %v4210_v10, %v5958_v57  ;;  %v4228_v11 = vsel %vm4212_vm2, %v4211_v20, %v5959_v52 }
 0xa57   : > { %v4236_v40 = vpack.c.bf16 %v4228_v11, %v4227_v18 }
 0xa59   : > { %5579 = vmatmul.mubr.bf16.gmra.mrb[132].mxu1 %v4236_v40 }
 0xafb   : > { %v5568_v30 = vpop.f32.mrb[144].mxu0 }
 0xafc   : > { %v4344_v24 = vadd.f32 %v6420_v2, %v5568_v30  ;;  %v4335_v37 = vpop.f32.mrb[145].mxu0 }
 0xafd   : > { %v5569_v33 = vpop.f32.mrb[146].mxu0  ;;  %v4336_v41 = vadd.f32 %v4335_v37, %v9133_v44 }
 0xafe   : > { %4402 = vadd.xlane.f32.xlu0 %v4344_v24  ;;  %v4338_v60 = vpop.f32.mrb[147].mxu0  ;;  %v4347_v49 = vadd.f32 %v6421_v53, %v5569_v33 }
 0xaff   : > { %v9216_v23 = vadd.f32 %v4338_v60, %v9136_v51 }
 0xb01   : > { %4400 = vadd.xlane.f32.xlu1 %v9216_v23 }
 0xb02   : > { %4398 = vadd.xlane.f32.xlu0 %v4336_v41 }
 0xb06   : > { %4404 = vadd.xlane.f32.xlu0 %v4347_v49 }
 0xb0b   : > { %v5572_v35 = vpop.f32.mrb[148].mxu0 }
 0xb0c   : > { %v9222_v6 = vadd.f32 %v6422_v12, %v5572_v35  ;;  %v4351_v48 = vpop.f32.mrb[149].mxu0 }
 0xb0d   : > { %v5573_v36 = vpop.f32.mrb[150].mxu0  ;;  %v9228_v44 = vadd.f32 %v4351_v48, %v1285_v38 }
 0xb0e   : > { %v9225_v51 = vadd.f32 %v6423_v1, %v5573_v36  ;;  %v4354_v25 = vpop.f32.mrb[151].mxu0  ;;  %4410 = vadd.xlane.f32.xlu0 %v9222_v6 }
 0xb0f   : > { %v9231_v26 = vadd.f32 %v4354_v25, %v1286_v43 }
 0xb10   : > { %4412 = vadd.xlane.f32.xlu1 %v9225_v51 }
 0xb12   : > { %4406 = vadd.xlane.f32.xlu0 %v9228_v44 }
 0xb14   : > { %4408 = vadd.xlane.f32.xlu1 %v9231_v26 }
 0xb1c   : > { %v5576_v63 = vpop.f32.mrb[128].mxu1 }
 0xb1d   : > { %v9236_v42 = vadd.f32 %v6424_v32, %v5576_v63  ;;  %v4367_v16 = vpop.f32.mrb[129].mxu1 }
 0xb1e   : > { %v5577_v31 = vpop.f32.mrb[130].mxu1  ;;  %v9249_v17 = vadd.f32 %v4367_v16, %v9239_v62 }
 0xb1f   : > { %v9242_v39 = vadd.f32 %v6425_v15, %v5577_v31  ;;  %v4370_v8 = vpop.f32.mrb[131].mxu1  ;;  %4418 = vadd.xlane.f32.xlu0 %v9236_v42 }
 0xb20   : > { %v9253_v46 = vadd.f32 %v4370_v8, %v9246_v34 }
 0xb21   : > { %4420 = vadd.xlane.f32.xlu1 %v9242_v39 }
 0xb23   : > { %4414 = vadd.xlane.f32.xlu0 %v9249_v17 }
 0xb25   : > { %4416 = vadd.xlane.f32.xlu1 %v9253_v46 }
 0xb2c   : > { %v5580_v9 = vpop.f32.mrb[132].mxu1 }
 0xb2d   : > { %v4383_v56 = vpop.f32.mrb[133].mxu1  ;;  %v9271_v59 = vadd.f32 %v6426_v50, %v5580_v9 }
 0xb2e   : > { %v9264_v4 = vadd.f32 %v4383_v56, %v9258_v27  ;;  %v5581_v28 = vpop.f32.mrb[134].mxu1 }
 0xb2f   : > { %v4386_v22 = vpop.f32.mrb[135].mxu1  ;;  %v9275_v61 = vadd.f32 %v6427_v5, %v5581_v28 }
 0xb30   : > { %v9267_v54 = vadd.f32 %v4386_v22, %v9261_v0  ;;  %4422 = vadd.xlane.f32.xlu0 %v9264_v4 }
 0xb32   : > { %4424 = vadd.xlane.f32.xlu1 %v9267_v54 }
 0xb34   : > { %4426 = vadd.xlane.f32.xlu0 %v9271_v59 }
 0xb36   : > { %4428 = vadd.xlane.f32.xlu1 %v9275_v61 }
 0xb8b   : > { %v4403_v55 = vpop.xlane.xlu0 %4402 }
 0xb8c   : > { %v4433_v19 = vmul.f32 0.0078125, %v4403_v55 }
 0xb8e   : > { %v9279_v7 = vsub.f32 %v4344_v24, %v4433_v19  ;;  %v4401_v13 = vpop.xlane.xlu1 %4400 }
 0xb8f   : > { %v4399_v47 = vpop.xlane.xlu0 %4398  ;;  %v4432_v29 = vmul.f32 0.0078125, %v4401_v13 }
 0xb90   : > { %v4431_v21 = vmul.f32 0.0078125, %v4399_v47  ;;  %v4465_v3 = vmul.f32 %v9279_v7, %v9279_v7 }
 0xb91   : > { %v9290_v20 = vsub.f32 %v9216_v23, %v4432_v29 }
 0xb92   : > { %v9283_v14 = vsub.f32 %v4336_v41, %v4431_v21  ;;  %4483 = vadd.xlane.f32.xlu0 %v4465_v3 }
 0xb93   : > { %v4405_v58 = vpop.xlane.xlu0 %4404  ;;  %v4464_v38 = vmul.f32 %v9290_v20, %v9290_v20 }
 0xb94   : > { %v4434_v52 = vmul.f32 0.0078125, %v4405_v58  ;;  %v4463_v57 = vmul.f32 %v9283_v14, %v9283_v14  ;;  %v1303_v58 = vpack.c.bf16 %v9261_v0, %v9258_v27 }
 0xb96   : > { %v9287_v10 = vsub.f32 %v4347_v49, %v4434_v52  ;;  %4479 = vadd.xlane.f32.xlu0 %v4463_v57 }
 0xb98   : > { %v4466_v18 = vmul.f32 %v9287_v10, %v9287_v10 }
 0xb9a   : > { %4485 = vadd.xlane.f32.xlu1 %v4466_v18 }
 0xb9b   : > { %v4411_v11 = vpop.xlane.xlu0 %4410 }
 0xb9c   : > { %v4437_v40 = vmul.f32 0.0078125, %v4411_v11 }
 0xb9d   : > { %v4413_v43 = vpop.xlane.xlu1 %4412 }
 0xb9e   : > { %v9297_v45 = vsub.f32 %v9222_v6, %v4437_v40  ;;  %v4438_v30 = vmul.f32 0.0078125, %v4413_v43  ;;  %4481 = vadd.xlane.f32.xlu1 %v4464_v38 }
 0xb9f   : > { %v4407_v2 = vpop.xlane.xlu0 %4406 }
 0xba0   : > { %v9300_v24 = vsub.f32 %v9225_v51, %v4438_v30  ;;  %v4435_v37 = vmul.f32 0.0078125, %v4407_v2  ;;  %v4469_v33 = vmul.f32 %v9297_v45, %v9297_v45 }
 0xba1   : > { %v4409_v60 = vpop.xlane.xlu1 %4408 }
 0xba2   : > { %v9305_v23 = vsub.f32 %v9228_v44, %v4435_v37  ;;  %v4436_v41 = vmul.f32 0.0078125, %v4409_v60  ;;  %4491 = vadd.xlane.f32.xlu0 %v4469_v33  ;;  %v4470_v53 = vmul.f32 %v9300_v24, %v9300_v24  ;;  %v9369_v33 = vld [vmem:[%s10015_s28] ss:$0 sm:$0xff] }
 0xba4   : > { %v9310_v49 = vsub.f32 %v9231_v26, %v4436_v41  ;;  %4493 = vadd.xlane.f32.xlu1 %v4470_v53  ;;  %v4467_v35 = vmul.f32 %v9305_v23, %v9305_v23 }
 0xba6   : > { %4487 = vadd.xlane.f32.xlu0 %v4467_v35  ;;  %v4468_v12 = vmul.f32 %v9310_v49, %v9310_v49 }
 0xba8   : > { %4489 = vadd.xlane.f32.xlu1 %v4468_v12 }
 0xbac   : > { %v4419_v6 = vpop.xlane.xlu0 %4418 }
 0xbad   : > { %v4441_v48 = vmul.f32 0.0078125, %v4419_v6 }
 0xbae   : > { %v4421_v36 = vpop.xlane.xlu1 %4420 }
 0xbaf   : > { %v9317_v1 = vsub.f32 %v9236_v42, %v4441_v48  ;;  %v4442_v51 = vmul.f32 0.0078125, %v4421_v36 }
 0xbb0   : > { %v4415_v25 = vpop.xlane.xlu0 %4414 }
 0xbb1   : > { %v9320_v44 = vsub.f32 %v9242_v39, %v4442_v51  ;;  %v4439_v26 = vmul.f32 0.0078125, %v4415_v25  ;;  %v4473_v63 = vmul.f32 %v9317_v1, %v9317_v1 }
 0xbb2   : > { %v4417_v32 = vpop.xlane.xlu1 %4416 }
 0xbb3   : > { %v9325_v16 = vsub.f32 %v9249_v17, %v4439_v26  ;;  %v4440_v31 = vmul.f32 0.0078125, %v4417_v32  ;;  %4499 = vadd.xlane.f32.xlu0 %v4473_v63  ;;  %v4474_v15 = vmul.f32 %v9320_v44, %v9320_v44 }
 0xbb5   : > { %v9330_v42 = vsub.f32 %v9253_v46, %v4440_v31  ;;  %4501 = vadd.xlane.f32.xlu1 %v4474_v15  ;;  %v4471_v39 = vmul.f32 %v9325_v16, %v9325_v16 }
 0xbb7   : > { %4495 = vadd.xlane.f32.xlu0 %v4471_v39  ;;  %v4472_v8 = vmul.f32 %v9330_v42, %v9330_v42 }
 0xbb9   : > { %4497 = vadd.xlane.f32.xlu1 %v4472_v8 }
 0xbbd   : > { %v4423_v9 = vpop.xlane.xlu0 %4422 }
 0xbbe   : > { %v4443_v17 = vmul.f32 0.0078125, %v4423_v9 }
 0xbbf   : > { %v4425_v56 = vpop.xlane.xlu1 %4424 }
 0xbc0   : > { %v9337_v28 = vsub.f32 %v9264_v4, %v4443_v17  ;;  %v4444_v22 = vmul.f32 0.0078125, %v4425_v56 }
 0xbc1   : > { %v4427_v50 = vpop.xlane.xlu0 %4426 }
 0xbc2   : > { %v9340_v46 = vsub.f32 %v9267_v54, %v4444_v22  ;;  %v4445_v5 = vmul.f32 0.0078125, %v4427_v50  ;;  %v4475_v55 = vmul.f32 %v9337_v28, %v9337_v28 }
 0xbc3   : > { %v4429_v19 = vpop.xlane.xlu1 %4428 }
 0xbc4   : > { %v9345_v47 = vsub.f32 %v9271_v59, %v4445_v5  ;;  %v4446_v21 = vmul.f32 0.0078125, %v4429_v19  ;;  %4503 = vadd.xlane.f32.xlu0 %v4475_v55  ;;  %v4476_v3 = vmul.f32 %v9340_v46, %v9340_v46  ;;  %v1301_v59 = vpack.c.bf16 %v9246_v34, %v9239_v62  ;;  %v9363_v34 = vld [vmem:[%s10014_s30] ss:$0 sm:$0xff]  ;;  %s6634_s30 = sshll.u32 %s6780_s12, 4  ;;  %s6635_s30 = int_to_ptr.vmem [resolvable:$false] %s6634_s30 }
 0xbc5   : > { %s6636_s20 = scalar_lea.vmem %s6635_s30, 4096  ;;  %p6637_p9 = scmp.lt.s32.totalorder %s9434_s1, %s6635_s30 }
 0xbc6   : > { %v9350_v4 = vsub.f32 %v9275_v61, %v4446_v21  ;;  %4505 = vadd.xlane.f32.xlu1 %v4476_v3  ;;  %v4477_v54 = vmul.f32 %v9345_v47, %v9345_v47  ;;  %5542 = vmatprep.mubr.bf16.mxu0 %v1301_v59  ;;  %p6638_p8 = scmp.lt.s32.totalorder %s6636_s20, %s6630_s7 }
 0xbc7   : > { %5546 = vmatprep.mubr.bf16.mxu0 %v1303_v58 }
 0xbc8   : > { %4507 = vadd.xlane.f32.xlu0 %v4477_v54  ;;  %v4478_v13 = vmul.f32 %v9350_v4, %v9350_v4  ;;  %p6639_p0 = por %p6638_p8, %p6637_p9 }
 0xbca   : > { %4509 = vadd.xlane.f32.xlu1 %v4478_v13  ;;  %p6640_p2 = pnand %p6639_p0, %p6633_p13 }
 0xc1f   : > { %v4484_v29 = vpop.xlane.xlu0 %4483 }
 0xc20   : > { %v4513_v61 = vmul.f32 0.0078125, %v4484_v29 }
 0xc22   : > { %v4529_v52 = vadd.f32 1e-06, %v4513_v61 }
 0xc23   : > { %v4480_v57 = vpop.xlane.xlu0 %4479 }
 0xc24   : > { %6360 = vrsqrt.f32 %v4529_v52  ;;  %v4511_v18 = vmul.f32 0.0078125, %v4480_v57 }
 0xc26   : > { %v4527_v11 = vadd.f32 1e-06, %v4511_v18 }
 0xc27   : > { %v4486_v40 = vpop.xlane.xlu1 %4485 }
 0xc28   : > { %6362 = vrsqrt.f32 %v4527_v11  ;;  %v4514_v38 = vmul.f32 0.0078125, %v4486_v40 }
 0xc2a   : > { %v4530_v43 = vadd.f32 1e-06, %v4514_v38 }
 0xc2b   : > { %v4482_v30 = vpop.xlane.xlu1 %4481 }
 0xc2c   : > { %6364 = vrsqrt.f32 %v4530_v43  ;;  %v4512_v2 = vmul.f32 0.0078125, %v4482_v30 }
 0xc2e   : > { %v6361_v62 = vpop.eup %6360  ;;  %v4528_v27 = vadd.f32 1e-06, %v4512_v2 }
 0xc2f   : > { %v4561_v0 = vmul.f32 %v6361_v62, %v9279_v7  ;;  %v4492_v37 = vpop.xlane.xlu0 %4491 }
 0xc30   : > { %6366 = vrsqrt.f32 %v4528_v27  ;;  %v4517_v60 = vmul.f32 0.0078125, %v4492_v37 }
 0xc31   : > { %v4584_v41 = vmul.f32 %v9363_v34, %v4561_v0  ;;  %v4494_v53 = vpop.xlane.xlu1 %4493 }
 0xc32   : > { %v6363_v35 = vpop.eup %6362  ;;  %v4533_v12 = vadd.f32 1e-06, %v4517_v60  ;;  %v4518_v6 = vmul.f32 0.0078125, %v4494_v53 }
 0xc33   : > { %v4607_v48 = vadd.f32 %v9369_v33, %v4584_v41  ;;  %v4559_v36 = vmul.f32 %v6363_v35, %v9283_v14  ;;  %v4488_v7 = vpop.xlane.xlu0 %4487 }
 0xc34   : > { %6368 = vrsqrt.f32 %v4533_v12  ;;  %v4534_v51 = vadd.f32 1e-06, %v4518_v6  ;;  %v4515_v25 = vmul.f32 0.0078125, %v4488_v7 }
 0xc35   : > { %4623 = vst [vmem:[%s7230_s16 + $0x10] sm:$0xff] %v4607_v48  ;;  %v4582_v26 = vmul.f32 %v9363_v34, %v4559_v36  ;;  %v4490_v63 = vpop.xlane.xlu1 %4489 }
 0xc36   : > { %v6365_v32 = vpop.eup %6364  ;;  %6370 = vrsqrt.f32 %v4534_v51  ;;  %v4531_v31 = vadd.f32 1e-06, %v4515_v25  ;;  %v4516_v15 = vmul.f32 0.0078125, %v4490_v63 }
 0xc37   : > { %v4605_v39 = vadd.f32 %v9369_v33, %v4582_v26  ;;  %v4562_v8 = vmul.f32 %v6365_v32, %v9287_v10 }
 0xc38   : > { %6372 = vrsqrt.f32 %v4531_v31  ;;  %v4532_v14 = vadd.f32 1e-06, %v4516_v15 }
 0xc39   : > { %4621 = vst [vmem:[%s7230_s16] sm:$0xff] %v4605_v39  ;;  %v4585_v9 = vmul.f32 %v9363_v34, %v4562_v8 }
 0xc3a   : > { %v6367_v17 = vpop.eup %6366  ;;  %6374 = vrsqrt.f32 %v4532_v14 }
 0xc3b   : > { %v4608_v56 = vadd.f32 %v9369_v33, %v4585_v9  ;;  %v4560_v22 = vmul.f32 %v6367_v17, %v9290_v20 }
 0xc3d   : > { %4624 = vst [vmem:[%s7230_s16 + $0x18] sm:$0xff] %v4608_v56  ;;  %v4583_v50 = vmul.f32 %v9363_v34, %v4560_v22 }
 0xc3e   : > { %v6369_v5 = vpop.eup %6368 }
 0xc3f   : > { %v4606_v55 = vadd.f32 %v9369_v33, %v4583_v50  ;;  %v4565_v10 = vmul.f32 %v6369_v5, %v9297_v45 }
 0xc40   : > { %v6371_v19 = vpop.eup %6370  ;;  %v4500_v21 = vpop.xlane.xlu0 %4499 }
 0xc41   : > { %4622 = vst [vmem:[%s7230_s16 + $0x8] sm:$0xff] %v4606_v55  ;;  %v4588_v3 = vmul.f32 %v9363_v34, %v4565_v10  ;;  %v4566_v54 = vmul.f32 %v6371_v19, %v9300_v24  ;;  %v4521_v13 = vmul.f32 0.0078125, %v4500_v21 }
 0xc42   : > { %v6373_v59 = vpop.eup %6372  ;;  %v4502_v58 = vpop.xlane.xlu1 %4501 }
 0xc43   : > { %v4611_v20 = vadd.f32 %v9369_v33, %v4588_v3  ;;  %v4589_v29 = vmul.f32 %v9363_v34, %v4566_v54  ;;  %v4563_v61 = vmul.f32 %v6373_v59, %v9305_v23  ;;  %v4537_v52 = vadd.f32 1e-06, %v4521_v13 }
 0xc44   : > { %v6375_v45 = vpop.eup %6374  ;;  %v4522_v57 = vmul.f32 0.0078125, %v4502_v58  ;;  %v4496_v18 = vpop.xlane.xlu0 %4495 }
 0xc45   : > { %4627 = vst [vmem:[%s7230_s16 + $0x30] sm:$0xff] %v4611_v20  ;;  %v4612_v11 = vadd.f32 %v9369_v33, %v4589_v29  ;;  %v4586_v24 = vmul.f32 %v9363_v34, %v4563_v61  ;;  %v4564_v40 = vmul.f32 %v6375_v45, %v9310_v49  ;;  %6376 = vrsqrt.f32 %v4537_v52 }
 0xc46   : > { %v4538_v38 = vadd.f32 1e-06, %v4522_v57  ;;  %v4519_v43 = vmul.f32 0.0078125, %v4496_v18  ;;  %v4498_v30 = vpop.xlane.xlu1 %4497 }
 0xc47   : > { %4628 = vst [vmem:[%s7230_s16 + $0x38] sm:$0xff] %v4612_v11  ;;  %v4609_v23 = vadd.f32 %v9369_v33, %v4586_v24  ;;  %v4587_v2 = vmul.f32 %v9363_v34, %v4564_v40  ;;  %v4520_v62 = vmul.f32 0.0078125, %v4498_v30 }
 0xc48   : > { %6378 = vrsqrt.f32 %v4538_v38  ;;  %v4535_v27 = vadd.f32 1e-06, %v4519_v43 }
 0xc49   : > { %4625 = vst [vmem:[%s7230_s16 + $0x20] sm:$0xff] %v4609_v23  ;;  %v4610_v0 = vadd.f32 %v9369_v33, %v4587_v2  ;;  %v4536_v37 = vadd.f32 1e-06, %v4520_v62 }
 0xc4a   : > { %6380 = vrsqrt.f32 %v4535_v27 }
 0xc4b   : > { %4626 = vst [vmem:[%s7230_s16 + $0x28] sm:$0xff] %v4610_v0  ;;  %6382 = vrsqrt.f32 %v4536_v37 }
 0xc4f   : > { %v6377_v49 = vpop.eup %6376 }
 0xc50   : > { %v4569_v60 = vmul.f32 %v6377_v49, %v9317_v1 }
 0xc51   : > { %v4504_v41 = vpop.xlane.xlu0 %4503 }
 0xc52   : > { %v6379_v53 = vpop.eup %6378  ;;  %v4592_v35 = vmul.f32 %v9363_v34, %v4569_v60  ;;  %v4523_v12 = vmul.f32 0.0078125, %v4504_v41 }
 0xc53   : > { %v4570_v6 = vmul.f32 %v6379_v53, %v9320_v44  ;;  %v4506_v48 = vpop.xlane.xlu1 %4505 }
 0xc54   : > { %v6381_v36 = vpop.eup %6380  ;;  %v4615_v7 = vadd.f32 %v9369_v33, %v4592_v35  ;;  %v4539_v51 = vadd.f32 1e-06, %v4523_v12  ;;  %v4524_v25 = vmul.f32 0.0078125, %v4506_v48 }
 0xc55   : > { %v6383_v26 = vpop.eup %6382  ;;  %v4593_v63 = vmul.f32 %v9363_v34, %v4570_v6  ;;  %v4567_v32 = vmul.f32 %v6381_v36, %v9325_v16  ;;  %v4508_v1 = vpop.xlane.xlu0 %4507 }
 0xc56   : > { %4631 = vst [vmem:[%s7230_s16 + $0x50] sm:$0xff] %v4615_v7  ;;  %v4568_v31 = vmul.f32 %v6383_v26, %v9330_v42  ;;  %6384 = vrsqrt.f32 %v4539_v51  ;;  %v4540_v44 = vadd.f32 1e-06, %v4524_v25  ;;  %v4525_v15 = vmul.f32 0.0078125, %v4508_v1 }
 0xc57   : > { %v4616_v39 = vadd.f32 %v9369_v33, %v4593_v63  ;;  %v4590_v8 = vmul.f32 %v9363_v34, %v4567_v32  ;;  %v4510_v14 = vpop.xlane.xlu1 %4509 }
 0xc58   : > { %v4591_v9 = vmul.f32 %v9363_v34, %v4568_v31  ;;  %6386 = vrsqrt.f32 %v4540_v44  ;;  %v4541_v16 = vadd.f32 1e-06, %v4525_v15  ;;  %v4526_v17 = vmul.f32 0.0078125, %v4510_v14 }
 0xc59   : > { %4632 = vst [vmem:[%s7230_s16 + $0x58] sm:$0xff] %v4616_v39  ;;  %v4613_v42 = vadd.f32 %v9369_v33, %v4590_v8 }
 0xc5a   : > { %v4614_v56 = vadd.f32 %v9369_v33, %v4591_v9  ;;  %6388 = vrsqrt.f32 %v4541_v16  ;;  %v4542_v22 = vadd.f32 1e-06, %v4526_v17 }
 0xc5b   : > { %4629 = vst [vmem:[%s7230_s16 + $0x40] sm:$0xff] %v4613_v42 }
 0xc5c   : > { %4630 = vst [vmem:[%s7230_s16 + $0x48] sm:$0xff] %v4614_v56  ;;  %6390 = vrsqrt.f32 %v4542_v22 }
 0xc60   : > { %v6385_v50 = vpop.eup %6384 }
 0xc61   : > { %v4571_v5 = vmul.f32 %v6385_v50, %v9337_v28 }
 0xc62   : > { %v6387_v55 = vpop.eup %6386 }
 0xc63   : > { %v4594_v10 = vmul.f32 %v9363_v34, %v4571_v5  ;;  %v4572_v19 = vmul.f32 %v6387_v55, %v9340_v46 }
 0xc64   : > { %v6389_v21 = vpop.eup %6388 }
 0xc65   : > { %v4617_v3 = vadd.f32 %v9369_v33, %v4594_v10  ;;  %v4595_v54 = vmul.f32 %v9363_v34, %v4572_v19  ;;  %v4573_v13 = vmul.f32 %v6389_v21, %v9345_v47 }
 0xc66   : > { %v6391_v28 = vpop.eup %6390 }
 0xc67   : > { %4633 = vst [vmem:[%s7230_s16 + $0x60] sm:$0xff] %v4617_v3  ;;  %v4618_v59 = vadd.f32 %v9369_v33, %v4595_v54  ;;  %v4596_v58 = vmul.f32 %v9363_v34, %v4573_v13  ;;  %v4574_v46 = vmul.f32 %v6391_v28, %v9350_v4 }
 0xc69   : > { %4634 = vst [vmem:[%s7230_s16 + $0x68] sm:$0xff] %v4618_v59  ;;  %v4619_v20 = vadd.f32 %v9369_v33, %v4596_v58  ;;  %v4597_v29 = vmul.f32 %v9363_v34, %v4574_v46 }
 0xc6b   : > { %4635 = vst [vmem:[%s7230_s16 + $0x70] sm:$0xff] %v4619_v20  ;;  %v4620_v47 = vadd.f32 %v9369_v33, %v4597_v29 }
 0xc6d   : > { %4636 = vst [vmem:[%s7230_s16 + $0x78] sm:$0xff] %v4620_v47 }
 0xc6e   : > { %6643 = shalt.err (!%p6640_p2)
}
 0xc6f   : > { %s6644_s16 = scalar_lea.hbm %s9441_s8, 2048  ;;  %s6648_s21 = scalar_lea.hbm %s10019_s25, 8192 }
 0xc70   : > { %p6645_p7 = scmp.ne.s32.totalorder %s9441_s8, %s6644_s16  ;;  %p6649_p11 = scmp.lt.u32.totalorder %s9441_s8, %s10019_s25 }
 0xc71   : > { %p6650_p10 = scmp.lt.u32.totalorder %s6648_s21, %s6644_s16  ;;  %p6652_p3 = scmp.lt.u32.totalorder %s6644_s16, %s9441_s8 }
 0xc72   : > { %p6646_p6 = pnand %p6645_p7, %p10020_p1 }
 0xc73   : > { %p6651_p12 = por %p6650_p10, %p6649_p11 }
 0xc74   : > { %p6647_p5 = pneg %p6646_p6 }
 0xc75   : > { %p6653_p4 = por %p6652_p3, %p6651_p12 }
 0xc77   : > { %p6654_p13 = pnand %p6653_p4, %p6647_p5 }
 0xc79   : > { %6657 = shalt.err (!%p6654_p13)
}
 0xc7a   : > { %s6781_s3 = smov 128   ;;  %s6782_s9 = smov 8  }
 0xc7b   : > { %5652 = dma.vmem_to_hbm [thread:$0]  (%p10020_p1), %s9434_s1, 2048, %s9441_s8, %s4638_s15, %s6781_s3, %s6781_s3, %s6782_s9  }
 0xc7c PF: > { %s10021_s5 = sld [smem:[#allocation23_spill]]  ;;  %s10022_s24 = sld [smem:[#allocation32_spill]] }
 0xc7d   : > { %p5690_p9 = scmp.ge.s32.totalorder %s6764_s19, 2 }
 0xc82   : > { %s4668_s0 = sand.u32 1, %s10021_s5   ;;  %p10023_p8 = scmp.ne.s32.totalorder %s10022_s24, 0 }
 0xc83   : > { %s4669_s7 = scalar_lea.sflag [#allocation6], %s4668_s0 }
 0xc84   : > { %p5678_p0 = pnand %p5690_p9, %p10023_p8 }
 0xc86   : > { %6719 = dma.done.wait (!%p5678_p0), %s4669_s7, 2048  }
 0xc87   : > { %6721 = vsyncadd (!%p5678_p0), %s4669_s7, 4294965248  ;;  %s30_s19 = sadd.s32 1, %s6764_s19   ;;  %s10024_s30 = sld [smem:[#allocation22_spill]] }
 0xc88   : > { %p27_p2 = scmp.ge.s32.totalorder %s30_s19, 6   ;;  %s10025_s26 = sld [smem:[#allocation29_spill]] }
 0xc89   : > { %s10026_s1 = sld [smem:[#allocation31_spill]]  ;;  %s10027_s10 = smov %s6732_s11 }
 0xc8a   : > { %s10028_s11 = smov %s7122_s4  ;;  %s10029_s12 = smov %s6740_s13 }
 0xc8b   : > { %s10030_s13 = smov %s6744_s14  ;;  %s10031_s14 = smov %s7125_s6 }
 0xc8c   : > { %s10032_s15 = smov %s6756_s17  ;;  %s10033_s16 = smov %s6760_s18 }
 0xc8d   :  { %29 = sbr.rel (!%p27_p2) target bundleno = 23 (0x17), region = 145 }
 0xc8e   : > { %s10034_s17 = smov %s10025_s26 }
 0xc8f   : > { %s10035_s18 = smov %s10026_s1 }
 0xc94   :  { %4674 = vsyncpa [#allocation5], 1 }
 0xc95   :  { %4676 = vsyncpa [#allocation5 + $0x1], 1 }
 0xc96   :  { %4677 = vsyncpa [#allocation8], 1 }
 0xc97   :  { %4679 = vsyncpa [#allocation8 + $0x1], 1 }
 0xc98   :  { %4680 = vsyncpa [#allocation11], 1 }
 0xc99   :  { %4681 = vsyncpa [#allocation14], 1 }
 0xc9a   :  { %4682 = vsyncpa [#allocation6], 1 }
 0xc9b   :  { %4684 = vsyncpa [#allocation6 + $0x1], 1 }

</bundles_post_ra>
